<compile_context>
chip_gen: v7x
topology: tpu7x:2x2x1
jax: 0.10.0
libtpu: 0.0.40
codegen_flags: <defaults>
</compile_context>

<pallas_src>
import functools
import math

import jax
import jax.numpy as jnp
from jax.experimental import pallas as pl
from jax.experimental.pallas import tpu as pltpu


# ----------------------------------------------------------------------------
# Pallas kernels: out^T[Cout, M] = W^T(scale-folded) @ patches^T + shift
#                 [+ residual] [ReLU];  bf16 in -> f32 acc -> bf16 out.
# ----------------------------------------------------------------------------
def _conv_kernel(w_ref, p_ref, s_ref, o_ref, *, relu):
    acc = jnp.dot(w_ref[...], p_ref[...], preferred_element_type=jnp.float32)
    acc = acc + s_ref[...]                                   # folded BN shift
    if relu:
        acc = jnp.maximum(acc, 0.0)
    o_ref[...] = acc.astype(o_ref.dtype)


def _conv_res_kernel(w_ref, p_ref, s_ref, r_ref, o_ref, *, relu):
    acc = jnp.dot(w_ref[...], p_ref[...], preferred_element_type=jnp.float32)
    acc = acc + s_ref[...] + r_ref[...].astype(jnp.float32)  # BN shift + residual
    if relu:
        acc = jnp.maximum(acc, 0.0)
    o_ref[...] = acc.astype(o_ref.dtype)


def _conv_down_kernel(w1_ref, wd_ref, p_ref, s1_ref, sd_ref, o1_ref, od_ref, *, cin):
    """Transition-block entry: 3x3 stride-2 conv (+BN+ReLU) and the 1x1 stride-2
    downsample conv (+BN, no ReLU) share one im2col patch tile.  The 1x1 conv's
    input equals the centre tap, i.e. patch rows [4*cin, 5*cin)."""
    acc1 = jnp.dot(w1_ref[...], p_ref[...], preferred_element_type=jnp.float32)
    acc1 = acc1 + s1_ref[...]
    o1_ref[...] = jnp.maximum(acc1, 0.0).astype(o1_ref.dtype)

    centre = p_ref[4 * cin:5 * cin, :]                       # static sublane slice
    accd = jnp.dot(wd_ref[...], centre, preferred_element_type=jnp.float32)
    accd = accd + sd_ref[...]
    od_ref[...] = accd.astype(od_ref.dtype)


def _pick_tile(m):
    # Largest lane tile (<=1024) that evenly divides the padded M.
    for t in (1024, 512, 256, 128):
        if m % t == 0:
            return t
    return 128


def fused_conv_matmul(wT, patchesT, shift, residual=None, relu=True):
    """wT: [Cout, K] bf16 (BN scale folded), patchesT: [K, M] bf16,
    shift: [Cout, 1] f32, residual: [Cout, M] bf16 or None -> [Cout, M] bf16."""
    cout, k = wT.shape
    m = patchesT.shape[1]
    mp = pl.cdiv(m, 128) * 128
    if mp != m:  # not hit at these shapes; kept for generality
        patchesT = jnp.pad(patchesT, ((0, 0), (0, mp - m)))
        if residual is not None:
            residual = jnp.pad(residual, ((0, 0), (0, mp - m)))
    tm = _pick_tile(mp)

    in_specs = [
        pl.BlockSpec((cout, k), lambda i: (0, 0)),   # weights (resident, full block)
        pl.BlockSpec((k, tm), lambda i: (0, i)),     # lane-dense patch tile
        pl.BlockSpec((cout, 1), lambda i: (0, 0)),   # BN shift / bias
    ]
    args = [wT, patchesT, shift]
    if residual is None:
        kernel = functools.partial(_conv_kernel, relu=relu)
    else:
        in_specs.append(pl.BlockSpec((cout, tm), lambda i: (0, i)))
        args.append(residual)
        kernel = functools.partial(_conv_res_kernel, relu=relu)

    out = pl.pallas_call(
        kernel,
        out_shape=jax.ShapeDtypeStruct((cout, mp), jnp.bfloat16),
        grid_spec=pltpu.PrefetchScalarGridSpec(
            num_scalar_prefetch=0,
            grid=(mp // tm,),
            in_specs=in_specs,
            out_specs=pl.BlockSpec((cout, tm), lambda i: (0, i)),
        ),
        compiler_params=pltpu.CompilerParams(dimension_semantics=("parallel",)),
    )(*args)
    return out if mp == m else out[:, :m]


def fused_conv_down_matmul(w1T, wdT, patchesT, shift1, shiftd, cin):
    """Fused transition entry: returns (conv1_out [Cout,M], downsample_out [Cout,M])."""
    cout, k = w1T.shape
    m = patchesT.shape[1]
    mp = pl.cdiv(m, 128) * 128
    if mp != m:
        patchesT = jnp.pad(patchesT, ((0, 0), (0, mp - m)))
    tm = _pick_tile(mp)

    kernel = functools.partial(_conv_down_kernel, cin=cin)
    out1, outd = pl.pallas_call(
        kernel,
        out_shape=(jax.ShapeDtypeStruct((cout, mp), jnp.bfloat16),
                   jax.ShapeDtypeStruct((cout, mp), jnp.bfloat16)),
        grid_spec=pltpu.PrefetchScalarGridSpec(
            num_scalar_prefetch=0,
            grid=(mp // tm,),
            in_specs=[
                pl.BlockSpec((cout, k), lambda i: (0, 0)),    # 3x3 weights
                pl.BlockSpec((cout, cin), lambda i: (0, 0)),  # 1x1 downsample weights
                pl.BlockSpec((k, tm), lambda i: (0, i)),      # shared patch tile
                pl.BlockSpec((cout, 1), lambda i: (0, 0)),    # conv1 BN shift
                pl.BlockSpec((cout, 1), lambda i: (0, 0)),    # downsample BN shift
            ],
            out_specs=[pl.BlockSpec((cout, tm), lambda i: (0, i)),
                       pl.BlockSpec((cout, tm), lambda i: (0, i))],
        ),
        compiler_params=pltpu.CompilerParams(dimension_semantics=("parallel",)),
    )(w1T, wdT, patchesT, shift1, shiftd)
    if mp != m:
        out1, outd = out1[:, :m], outd[:, :m]
    return out1, outd


# ----------------------------------------------------------------------------
# Glue: transposed im2col (pure data movement), conv wrappers, ResNet structure.
# Activations are kept channel-first [C, N, H, W] so conv outputs stay lane-dense
# and flow to the next conv without transposes.
# ----------------------------------------------------------------------------
def im2col_t(x, k, stride, pad, k_target):
    """x: [C, N, H, W] -> patches^T [k_target, N*Ho*Wo] (tap-major, channel inner)."""
    C, N, H, W = x.shape
    Ho = (H + 2 * pad - k) // stride + 1
    Wo = (W + 2 * pad - k) // stride + 1
    xp = jnp.pad(x, ((0, 0), (0, 0), (pad, pad), (pad, pad))) if pad > 0 else x
    taps = [xp[:, :, i:i + stride * Ho:stride, j:j + stride * Wo:stride]
            for i in range(k) for j in range(k)]
    pt = jnp.concatenate(taps, axis=0).reshape(k * k * C, N * Ho * Wo)
    if k_target > k * k * C:  # contraction-dim padding (matches padded weight)
        pt = jnp.pad(pt, ((0, k_target - k * k * C), (0, 0)))
    return pt, (N, Ho, Wo)


def conv_bn_act(x, p, *, k, stride, pad, relu, residual=None):
    """x: [Cin, N, H, W] bf16 -> [Cout, N, Ho, Wo] bf16."""
    pT, (N, Ho, Wo) = im2col_t(x, k, stride, pad, p["w"].shape[1])
    res = None if residual is None else residual.reshape(residual.shape[0], -1)
    out = fused_conv_matmul(p["w"], pT, p["shift"], res, relu)
    return out.reshape(-1, N, Ho, Wo)


def conv_down_block_entry(x, p):
    """Fused conv1 (3x3, stride 2) + downsample (1x1, stride 2) for stage entry."""
    pT, (N, Ho, Wo) = im2col_t(x, 3, 2, 1, p["conv1"]["w"].shape[1])
    out1, down = fused_conv_down_matmul(
        p["conv1"]["w"], p["down"]["w"], pT,
        p["conv1"]["shift"], p["down"]["shift"], x.shape[0])
    return out1.reshape(-1, N, Ho, Wo), down.reshape(-1, N, Ho, Wo)


def basic_block(x, p, stride):
    if "down" in p:
        out, identity = conv_down_block_entry(x, p)
    else:
        identity = x
        out = conv_bn_act(x, p["conv1"], k=3, stride=stride, pad=1, relu=True)
    out = conv_bn_act(out, p["conv2"], k=3, stride=1, pad=1, relu=True,
                      residual=identity)
    return out


def resnet20_forward(x_nchw, params):
    x = jnp.transpose(x_nchw, (1, 0, 2, 3)).astype(jnp.bfloat16)  # [C, N, H, W]
    x = conv_bn_act(x, params["stem"], k=3, stride=1, pad=1, relu=True)
    for li, layer in enumerate(params["layers"]):
        for bi, blk in enumerate(layer):
            stride = 2 if (li > 0 and bi == 0) else 1
            x = basic_block(x, blk, stride)
    # Global average pool + tiny FC in plain JAX/f32 (too small for a launch).
    pooled = jnp.mean(x.astype(jnp.float32), axis=(2, 3)).T          # [N, 64]
    fc = params["fc"]
    logits = pooled @ fc["w"] + fc["b"]                              # [N, 10]
    return logits


# ----------------------------------------------------------------------------
# Deterministic parameter construction (synthetic, not the pretrained weights).
# BN scale is folded into the conv weights; K padded to a multiple of 16.
# ----------------------------------------------------------------------------
def make_conv_bn(key, cin, cout, k):
    kw_, kg = jax.random.split(key)
    fan_in = cin * k * k
    w = jax.random.normal(kw_, (cout, cin, k, k), jnp.float32) * math.sqrt(2.0 / fan_in)
    gamma = 1.0 + 0.1 * jax.random.normal(kg, (cout,), jnp.float32)
    beta = jnp.zeros((cout,), jnp.float32)
    mean = jnp.zeros((cout,), jnp.float32)
    var = jnp.ones((cout,), jnp.float32)
    scale = gamma / jnp.sqrt(var + 1e-5)
    shift = beta - mean * scale
    wf = w * scale[:, None, None, None]                       # fold BN scale
    wT = jnp.transpose(wf, (0, 2, 3, 1)).reshape(cout, k * k * cin)  # [Cout, K]
    K = k * k * cin
    Kp = ((K + 15) // 16) * 16
    if Kp != K:
        wT = jnp.pad(wT, ((0, 0), (0, Kp - K)))
    return dict(w=wT.astype(jnp.bfloat16),
                shift=shift.reshape(cout, 1).astype(jnp.float32))


def make_params(key):
    keys = iter(jax.random.split(key, 64))
    params = {"stem": make_conv_bn(next(keys), 3, 16, 3), "layers": []}
    widths = [(16, 16), (16, 32), (32, 64)]
    for li, (cin, cout) in enumerate(widths):
        layer = []
        for bi in range(3):
            in_ch = cin if bi == 0 else cout
            blk = {
                "conv1": make_conv_bn(next(keys), in_ch, cout, 3),
                "conv2": make_conv_bn(next(keys), cout, cout, 3),
            }
            if li > 0 and bi == 0:
                blk["down"] = make_conv_bn(next(keys), in_ch, cout, 1)
            layer.append(blk)
        params["layers"].append(layer)
    kfc_w, kfc_b = jax.random.split(next(keys))
    params["fc"] = dict(
        w=jax.random.normal(kfc_w, (64, 10), jnp.float32) * math.sqrt(1.0 / 64),
        b=0.01 * jax.random.normal(kfc_b, (10,), jnp.float32))
    return params


if __name__ == "__main__":
    key = jax.random.PRNGKey(0)
    kx, kp = jax.random.split(key)
    # CIFAR-sized input: batch=2, 3 channels, 32x32 (NCHW, like the PyTorch module)
    x = jax.random.normal(kx, (2, 3, 32, 32), jnp.float32)
    params = make_params(kp)

    logits = jax.jit(resnet20_forward)(x, params)
    logits = jax.block_until_ready(logits)

    assert logits.shape == (2, 10), logits.shape
    assert bool(jnp.all(jnp.isfinite(logits)))
    print("KERNEL_OK")
</pallas_src>

<mosaic_0001>
module attributes {stable_mosaic.version = 11 : i64} {
  func.func @_conv_kernel(%arg0: i32, %arg1: memref<16x32xbf16, #tpu.memory_space<vmem>>, %arg2: memref<32x1024xbf16, #tpu.memory_space<vmem>>, %arg3: memref<16x1xf32, #tpu.memory_space<vmem>>, %arg4: memref<16x1024xbf16, #tpu.memory_space<vmem>>) attributes {dimension_semantics = [#tpu.dimension_semantics<parallel>], iteration_bounds = array<i64: 2>, scalar_prefetch = 0 : i64, scratch_operands = 0 : i64, tpu.core_type = #tpu.core_type<tc>, window_params = [{pipeline_mode = #tpu.pipeline_mode<synchronous>, transform_indices = @transform_0, window_bounds = array<i64: 16, 32>}, {transform_indices = @transform_1, window_bounds = array<i64: 32, 1024>}, {pipeline_mode = #tpu.pipeline_mode<synchronous>, transform_indices = @transform_2, window_bounds = array<i64: 16, 1>}, {transform_indices = @transform_3, window_bounds = array<i64: 16, 1024>}]} {
    %c0 = arith.constant 0 : index
    %c0_0 = arith.constant 0 : index
    %0 = vector.load %arg1[%c0, %c0_0] : memref<16x32xbf16, #tpu.memory_space<vmem>>, vector<16x32xbf16>
    %c0_1 = arith.constant 0 : index
    %c0_2 = arith.constant 0 : index
    %1 = vector.load %arg2[%c0_1, %c0_2] : memref<32x1024xbf16, #tpu.memory_space<vmem>>, vector<32x1024xbf16>
    %cst = arith.constant dense<0.000000e+00> : vector<16x1024xf32>
    %2 = tpu.matmul %0, %1, %cst {dimension_numbers = #tpu.dot_dimension_numbers<[1], [0], [0], [1], [0, 0, 1, 1], [], []>} : vector<16x32xbf16>, vector<32x1024xbf16>, vector<16x1024xf32> -> vector<16x1024xf32>
    %c0_3 = arith.constant 0 : index
    %c0_4 = arith.constant 0 : index
    %3 = vector.load %arg3[%c0_3, %c0_4] : memref<16x1xf32, #tpu.memory_space<vmem>>, vector<16x1xf32>
    %4 = vector.broadcast %3 : vector<16x1xf32> to vector<16x1024xf32>
    %5 = arith.addf %2, %4 : vector<16x1024xf32>
    %cst_5 = arith.constant 0.000000e+00 : f32
    %6 = vector.broadcast %cst_5 : f32 to vector<16x1024xf32>
    %7 = arith.maximumf %5, %6 : vector<16x1024xf32>
    %8 = arith.truncf %7 : vector<16x1024xf32> to vector<16x1024xbf16>
    %c0_6 = arith.constant 0 : index
    %c0_7 = arith.constant 0 : index
    %9 = vector.load %arg4[%c0_6, %c0_7] : memref<16x1024xbf16, #tpu.memory_space<vmem>>, vector<16x1024xbf16>
    tpu.vector_store %arg4[%c0_6, %c0_7], %8 {strides = array<i32>} : memref<16x1024xbf16, #tpu.memory_space<vmem>>, vector<16x1024xbf16>,
    return
  }
  func.func @transform_0(%arg0: i32) -> (i32, i32) {
    %c0_i32 = arith.constant 0 : i32
    %c0_i32_0 = arith.constant 0 : i32
    %c0_i32_1 = arith.constant 0 : i32
    return %c0_i32, %c0_i32_0 : i32, i32
  }
  func.func @transform_1(%arg0: i32) -> (i32, i32) {
    %c0_i32 = arith.constant 0 : i32
    %c0_i32_0 = arith.constant 0 : i32
    return %c0_i32, %arg0 : i32, i32
  }
  func.func @transform_2(%arg0: i32) -> (i32, i32) {
    %c0_i32 = arith.constant 0 : i32
    %c0_i32_0 = arith.constant 0 : i32
    %c0_i32_1 = arith.constant 0 : i32
    return %c0_i32, %c0_i32_0 : i32, i32
  }
  func.func @transform_3(%arg0: i32) -> (i32, i32) {
    %c0_i32 = arith.constant 0 : i32
    %c0_i32_0 = arith.constant 0 : i32
    return %c0_i32, %arg0 : i32, i32
  }
}

module attributes {stable_mosaic.version = 11 : i64} {
  func.func @_conv_kernel(%arg0: i32, %arg1: memref<16x144xbf16, #tpu.memory_space<vmem>>, %arg2: memref<144x1024xbf16, #tpu.memory_space<vmem>>, %arg3: memref<16x1xf32, #tpu.memory_space<vmem>>, %arg4: memref<16x1024xbf16, #tpu.memory_space<vmem>>) attributes {dimension_semantics = [#tpu.dimension_semantics<parallel>], iteration_bounds = array<i64: 2>, scalar_prefetch = 0 : i64, scratch_operands = 0 : i64, tpu.core_type = #tpu.core_type<tc>, window_params = [{pipeline_mode = #tpu.pipeline_mode<synchronous>, transform_indices = @transform_0, window_bounds = array<i64: 16, 144>}, {transform_indices = @transform_1, window_bounds = array<i64: 144, 1024>}, {pipeline_mode = #tpu.pipeline_mode<synchronous>, transform_indices = @transform_2, window_bounds = array<i64: 16, 1>}, {transform_indices = @transform_3, window_bounds = array<i64: 16, 1024>}]} {
    %c0 = arith.constant 0 : index
    %c0_0 = arith.constant 0 : index
    %0 = vector.load %arg1[%c0, %c0_0] : memref<16x144xbf16, #tpu.memory_space<vmem>>, vector<16x144xbf16>
    %c0_1 = arith.constant 0 : index
    %c0_2 = arith.constant 0 : index
    %1 = vector.load %arg2[%c0_1, %c0_2] : memref<144x1024xbf16, #tpu.memory_space<vmem>>, vector<144x1024xbf16>
    %cst = arith.constant dense<0.000000e+00> : vector<16x1024xf32>
    %2 = tpu.matmul %0, %1, %cst {dimension_numbers = #tpu.dot_dimension_numbers<[1], [0], [0], [1], [0, 0, 1, 1], [], []>} : vector<16x144xbf16>, vector<144x1024xbf16>, vector<16x1024xf32> -> vector<16x1024xf32>
    %c0_3 = arith.constant 0 : index
    %c0_4 = arith.constant 0 : index
    %3 = vector.load %arg3[%c0_3, %c0_4] : memref<16x1xf32, #tpu.memory_space<vmem>>, vector<16x1xf32>
    %4 = vector.broadcast %3 : vector<16x1xf32> to vector<16x1024xf32>
    %5 = arith.addf %2, %4 : vector<16x1024xf32>
    %cst_5 = arith.constant 0.000000e+00 : f32
    %6 = vector.broadcast %cst_5 : f32 to vector<16x1024xf32>
    %7 = arith.maximumf %5, %6 : vector<16x1024xf32>
    %8 = arith.truncf %7 : vector<16x1024xf32> to vector<16x1024xbf16>
    %c0_6 = arith.constant 0 : index
    %c0_7 = arith.constant 0 : index
    %9 = vector.load %arg4[%c0_6, %c0_7] : memref<16x1024xbf16, #tpu.memory_space<vmem>>, vector<16x1024xbf16>
    tpu.vector_store %arg4[%c0_6, %c0_7], %8 {strides = array<i32>} : memref<16x1024xbf16, #tpu.memory_space<vmem>>, vector<16x1024xbf16>,
    return
  }
  func.func @transform_0(%arg0: i32) -> (i32, i32) {
    %c0_i32 = arith.constant 0 : i32
    %c0_i32_0 = arith.constant 0 : i32
    %c0_i32_1 = arith.constant 0 : i32
    return %c0_i32, %c0_i32_0 : i32, i32
  }
  func.func @transform_1(%arg0: i32) -> (i32, i32) {
    %c0_i32 = arith.constant 0 : i32
    %c0_i32_0 = arith.constant 0 : i32
    return %c0_i32, %arg0 : i32, i32
  }
  func.func @transform_2(%arg0: i32) -> (i32, i32) {
    %c0_i32 = arith.constant 0 : i32
    %c0_i32_0 = arith.constant 0 : i32
    %c0_i32_1 = arith.constant 0 : i32
    return %c0_i32, %c0_i32_0 : i32, i32
  }
  func.func @transform_3(%arg0: i32) -> (i32, i32) {
    %c0_i32 = arith.constant 0 : i32
    %c0_i32_0 = arith.constant 0 : i32
    return %c0_i32, %arg0 : i32, i32
  }
}

module attributes {stable_mosaic.version = 11 : i64} {
  func.func @_conv_res_kernel(%arg0: i32, %arg1: memref<16x144xbf16, #tpu.memory_space<vmem>>, %arg2: memref<144x1024xbf16, #tpu.memory_space<vmem>>, %arg3: memref<16x1xf32, #tpu.memory_space<vmem>>, %arg4: memref<16x1024xbf16, #tpu.memory_space<vmem>>, %arg5: memref<16x1024xbf16, #tpu.memory_space<vmem>>) attributes {dimension_semantics = [#tpu.dimension_semantics<parallel>], iteration_bounds = array<i64: 2>, scalar_prefetch = 0 : i64, scratch_operands = 0 : i64, tpu.core_type = #tpu.core_type<tc>, window_params = [{pipeline_mode = #tpu.pipeline_mode<synchronous>, transform_indices = @transform_0, window_bounds = array<i64: 16, 144>}, {transform_indices = @transform_1, window_bounds = array<i64: 144, 1024>}, {pipeline_mode = #tpu.pipeline_mode<synchronous>, transform_indices = @transform_2, window_bounds = array<i64: 16, 1>}, {transform_indices = @transform_3, window_bounds = array<i64: 16, 1024>}, {transform_indices = @transform_4, window_bounds = array<i64: 16, 1024>}]} {
    %c0 = arith.constant 0 : index
    %c0_0 = arith.constant 0 : index
    %0 = vector.load %arg1[%c0, %c0_0] : memref<16x144xbf16, #tpu.memory_space<vmem>>, vector<16x144xbf16>
    %c0_1 = arith.constant 0 : index
    %c0_2 = arith.constant 0 : index
    %1 = vector.load %arg2[%c0_1, %c0_2] : memref<144x1024xbf16, #tpu.memory_space<vmem>>, vector<144x1024xbf16>
    %cst = arith.constant dense<0.000000e+00> : vector<16x1024xf32>
    %2 = tpu.matmul %0, %1, %cst {dimension_numbers = #tpu.dot_dimension_numbers<[1], [0], [0], [1], [0, 0, 1, 1], [], []>} : vector<16x144xbf16>, vector<144x1024xbf16>, vector<16x1024xf32> -> vector<16x1024xf32>
    %c0_3 = arith.constant 0 : index
    %c0_4 = arith.constant 0 : index
    %3 = vector.load %arg3[%c0_3, %c0_4] : memref<16x1xf32, #tpu.memory_space<vmem>>, vector<16x1xf32>
    %4 = vector.broadcast %3 : vector<16x1xf32> to vector<16x1024xf32>
    %5 = arith.addf %2, %4 : vector<16x1024xf32>
    %c0_5 = arith.constant 0 : index
    %c0_6 = arith.constant 0 : index
    %6 = vector.load %arg4[%c0_5, %c0_6] : memref<16x1024xbf16, #tpu.memory_space<vmem>>, vector<16x1024xbf16>
    %7 = arith.extf %6 : vector<16x1024xbf16> to vector<16x1024xf32>
    %8 = arith.addf %5, %7 : vector<16x1024xf32>
    %cst_7 = arith.constant 0.000000e+00 : f32
    %9 = vector.broadcast %cst_7 : f32 to vector<16x1024xf32>
    %10 = arith.maximumf %8, %9 : vector<16x1024xf32>
    %11 = arith.truncf %10 : vector<16x1024xf32> to vector<16x1024xbf16>
    %c0_8 = arith.constant 0 : index
    %c0_9 = arith.constant 0 : index
    %12 = vector.load %arg5[%c0_8, %c0_9] : memref<16x1024xbf16, #tpu.memory_space<vmem>>, vector<16x1024xbf16>
    tpu.vector_store %arg5[%c0_8, %c0_9], %11 {strides = array<i32>} : memref<16x1024xbf16, #tpu.memory_space<vmem>>, vector<16x1024xbf16>,
    return
  }
  func.func @transform_0(%arg0: i32) -> (i32, i32) {
    %c0_i32 = arith.constant 0 : i32
    %c0_i32_0 = arith.constant 0 : i32
    %c0_i32_1 = arith.constant 0 : i32
    return %c0_i32, %c0_i32_0 : i32, i32
  }
  func.func @transform_1(%arg0: i32) -> (i32, i32) {
    %c0_i32 = arith.constant 0 : i32
    %c0_i32_0 = arith.constant 0 : i32
    return %c0_i32, %arg0 : i32, i32
  }
  func.func @transform_2(%arg0: i32) -> (i32, i32) {
    %c0_i32 = arith.constant 0 : i32
    %c0_i32_0 = arith.constant 0 : i32
    %c0_i32_1 = arith.constant 0 : i32
    return %c0_i32, %c0_i32_0 : i32, i32
  }
  func.func @transform_3(%arg0: i32) -> (i32, i32) {
    %c0_i32 = arith.constant 0 : i32
    %c0_i32_0 = arith.constant 0 : i32
    return %c0_i32, %arg0 : i32, i32
  }
  func.func @transform_4(%arg0: i32) -> (i32, i32) {
    %c0_i32 = arith.constant 0 : i32
    %c0_i32_0 = arith.constant 0 : i32
    return %c0_i32, %arg0 : i32, i32
  }
}

module attributes {stable_mosaic.version = 11 : i64} {
  func.func @_conv_down_kernel(%arg0: i32, %arg1: memref<32x144xbf16, #tpu.memory_space<vmem>>, %arg2: memref<32x16xbf16, #tpu.memory_space<vmem>>, %arg3: memref<144x512xbf16, #tpu.memory_space<vmem>>, %arg4: memref<32x1xf32, #tpu.memory_space<vmem>>, %arg5: memref<32x1xf32, #tpu.memory_space<vmem>>, %arg6: memref<32x512xbf16, #tpu.memory_space<vmem>>, %arg7: memref<32x512xbf16, #tpu.memory_space<vmem>>) attributes {dimension_semantics = [#tpu.dimension_semantics<parallel>], iteration_bounds = array<i64: 1>, scalar_prefetch = 0 : i64, scratch_operands = 0 : i64, tpu.core_type = #tpu.core_type<tc>, window_params = [{pipeline_mode = #tpu.pipeline_mode<synchronous>, transform_indices = @transform_0, window_bounds = array<i64: 32, 144>}, {pipeline_mode = #tpu.pipeline_mode<synchronous>, transform_indices = @transform_1, window_bounds = array<i64: 32, 16>}, {transform_indices = @transform_2, window_bounds = array<i64: 144, 512>}, {pipeline_mode = #tpu.pipeline_mode<synchronous>, transform_indices = @transform_3, window_bounds = array<i64: 32, 1>}, {pipeline_mode = #tpu.pipeline_mode<synchronous>, transform_indices = @transform_4, window_bounds = array<i64: 32, 1>}, {transform_indices = @transform_5, window_bounds = array<i64: 32, 512>}, {transform_indices = @transform_6, window_bounds = array<i64: 32, 512>}]} {
    %c0 = arith.constant 0 : index
    %c0_0 = arith.constant 0 : index
    %0 = vector.load %arg1[%c0, %c0_0] : memref<32x144xbf16, #tpu.memory_space<vmem>>, vector<32x144xbf16>
    %c0_1 = arith.constant 0 : index
    %c0_2 = arith.constant 0 : index
    %1 = vector.load %arg3[%c0_1, %c0_2] : memref<144x512xbf16, #tpu.memory_space<vmem>>, vector<144x512xbf16>
    %cst = arith.constant dense<0.000000e+00> : vector<32x512xf32>
    %2 = tpu.matmul %0, %1, %cst {dimension_numbers = #tpu.dot_dimension_numbers<[1], [0], [0], [1], [0, 0, 1, 1], [], []>} : vector<32x144xbf16>, vector<144x512xbf16>, vector<32x512xf32> -> vector<32x512xf32>
    %c0_3 = arith.constant 0 : index
    %c0_4 = arith.constant 0 : index
    %3 = vector.load %arg4[%c0_3, %c0_4] : memref<32x1xf32, #tpu.memory_space<vmem>>, vector<32x1xf32>
    %4 = vector.broadcast %3 : vector<32x1xf32> to vector<32x512xf32>
    %5 = arith.addf %2, %4 : vector<32x512xf32>
    %cst_5 = arith.constant 0.000000e+00 : f32
    %6 = vector.broadcast %cst_5 : f32 to vector<32x512xf32>
    %7 = arith.maximumf %5, %6 : vector<32x512xf32>
    %8 = arith.truncf %7 : vector<32x512xf32> to vector<32x512xbf16>
    %c0_6 = arith.constant 0 : index
    %c0_7 = arith.constant 0 : index
    %9 = vector.load %arg6[%c0_6, %c0_7] : memref<32x512xbf16, #tpu.memory_space<vmem>>, vector<32x512xbf16>
    tpu.vector_store %arg6[%c0_6, %c0_7], %8 {strides = array<i32>} : memref<32x512xbf16, #tpu.memory_space<vmem>>, vector<32x512xbf16>,
    %c64 = arith.constant 64 : index
    %c0_8 = arith.constant 0 : index
    %10 = vector.load %arg3[%c64, %c0_8] : memref<144x512xbf16, #tpu.memory_space<vmem>>, vector<16x512xbf16>
    %c0_9 = arith.constant 0 : index
    %c0_10 = arith.constant 0 : index
    %11 = vector.load %arg2[%c0_9, %c0_10] : memref<32x16xbf16, #tpu.memory_space<vmem>>, vector<32x16xbf16>
    %cst_11 = arith.constant dense<0.000000e+00> : vector<32x512xf32>
    %12 = tpu.matmul %11, %10, %cst_11 {dimension_numbers = #tpu.dot_dimension_numbers<[1], [0], [0], [1], [0, 0, 1, 1], [], []>} : vector<32x16xbf16>, vector<16x512xbf16>, vector<32x512xf32> -> vector<32x512xf32>
    %c0_12 = arith.constant 0 : index
    %c0_13 = arith.constant 0 : index
    %13 = vector.load %arg5[%c0_12, %c0_13] : memref<32x1xf32, #tpu.memory_space<vmem>>, vector<32x1xf32>
    %14 = vector.broadcast %13 : vector<32x1xf32> to vector<32x512xf32>
    %15 = arith.addf %12, %14 : vector<32x512xf32>
    %16 = arith.truncf %15 : vector<32x512xf32> to vector<32x512xbf16>
    %c0_14 = arith.constant 0 : index
    %c0_15 = arith.constant 0 : index
    %17 = vector.load %arg7[%c0_14, %c0_15] : memref<32x512xbf16, #tpu.memory_space<vmem>>, vector<32x512xbf16>
    tpu.vector_store %arg7[%c0_14, %c0_15], %16 {strides = array<i32>} : memref<32x512xbf16, #tpu.memory_space<vmem>>, vector<32x512xbf16>,
    return
  }
  func.func @transform_0(%arg0: i32) -> (i32, i32) {
    %c0_i32 = arith.constant 0 : i32
    %c0_i32_0 = arith.constant 0 : i32
    %c0_i32_1 = arith.constant 0 : i32
    return %c0_i32, %c0_i32_0 : i32, i32
  }
  func.func @transform_1(%arg0: i32) -> (i32, i32) {
    %c0_i32 = arith.constant 0 : i32
    %c0_i32_0 = arith.constant 0 : i32
    %c0_i32_1 = arith.constant 0 : i32
    return %c0_i32, %c0_i32_0 : i32, i32
  }
  func.func @transform_2(%arg0: i32) -> (i32, i32) {
    %c0_i32 = arith.constant 0 : i32
    %c0_i32_0 = arith.constant 0 : i32
    return %c0_i32, %arg0 : i32, i32
  }
  func.func @transform_3(%arg0: i32) -> (i32, i32) {
    %c0_i32 = arith.constant 0 : i32
    %c0_i32_0 = arith.constant 0 : i32
    %c0_i32_1 = arith.constant 0 : i32
    return %c0_i32, %c0_i32_0 : i32, i32
  }
  func.func @transform_4(%arg0: i32) -> (i32, i32) {
    %c0_i32 = arith.constant 0 : i32
    %c0_i32_0 = arith.constant 0 : i32
    %c0_i32_1 = arith.constant 0 : i32
    return %c0_i32, %c0_i32_0 : i32, i32
  }
  func.func @transform_5(%arg0: i32) -> (i32, i32) {
    %c0_i32 = arith.constant 0 : i32
    %c0_i32_0 = arith.constant 0 : i32
    return %c0_i32, %arg0 : i32, i32
  }
  func.func @transform_6(%arg0: i32) -> (i32, i32) {
    %c0_i32 = arith.constant 0 : i32
    %c0_i32_0 = arith.constant 0 : i32
    return %c0_i32, %arg0 : i32, i32
  }
}

module attributes {stable_mosaic.version = 11 : i64} {
  func.func @_conv_res_kernel(%arg0: i32, %arg1: memref<32x288xbf16, #tpu.memory_space<vmem>>, %arg2: memref<288x512xbf16, #tpu.memory_space<vmem>>, %arg3: memref<32x1xf32, #tpu.memory_space<vmem>>, %arg4: memref<32x512xbf16, #tpu.memory_space<vmem>>, %arg5: memref<32x512xbf16, #tpu.memory_space<vmem>>) attributes {dimension_semantics = [#tpu.dimension_semantics<parallel>], iteration_bounds = array<i64: 1>, scalar_prefetch = 0 : i64, scratch_operands = 0 : i64, tpu.core_type = #tpu.core_type<tc>, window_params = [{pipeline_mode = #tpu.pipeline_mode<synchronous>, transform_indices = @transform_0, window_bounds = array<i64: 32, 288>}, {transform_indices = @transform_1, window_bounds = array<i64: 288, 512>}, {pipeline_mode = #tpu.pipeline_mode<synchronous>, transform_indices = @transform_2, window_bounds = array<i64: 32, 1>}, {transform_indices = @transform_3, window_bounds = array<i64: 32, 512>}, {transform_indices = @transform_4, window_bounds = array<i64: 32, 512>}]} {
    %c0 = arith.constant 0 : index
    %c0_0 = arith.constant 0 : index
    %0 = vector.load %arg1[%c0, %c0_0] : memref<32x288xbf16, #tpu.memory_space<vmem>>, vector<32x288xbf16>
    %c0_1 = arith.constant 0 : index
    %c0_2 = arith.constant 0 : index
    %1 = vector.load %arg2[%c0_1, %c0_2] : memref<288x512xbf16, #tpu.memory_space<vmem>>, vector<288x512xbf16>
    %cst = arith.constant dense<0.000000e+00> : vector<32x512xf32>
    %2 = tpu.matmul %0, %1, %cst {dimension_numbers = #tpu.dot_dimension_numbers<[1], [0], [0], [1], [0, 0, 1, 1], [], []>} : vector<32x288xbf16>, vector<288x512xbf16>, vector<32x512xf32> -> vector<32x512xf32>
    %c0_3 = arith.constant 0 : index
    %c0_4 = arith.constant 0 : index
    %3 = vector.load %arg3[%c0_3, %c0_4] : memref<32x1xf32, #tpu.memory_space<vmem>>, vector<32x1xf32>
    %4 = vector.broadcast %3 : vector<32x1xf32> to vector<32x512xf32>
    %5 = arith.addf %2, %4 : vector<32x512xf32>
    %c0_5 = arith.constant 0 : index
    %c0_6 = arith.constant 0 : index
    %6 = vector.load %arg4[%c0_5, %c0_6] : memref<32x512xbf16, #tpu.memory_space<vmem>>, vector<32x512xbf16>
    %7 = arith.extf %6 : vector<32x512xbf16> to vector<32x512xf32>
    %8 = arith.addf %5, %7 : vector<32x512xf32>
    %cst_7 = arith.constant 0.000000e+00 : f32
    %9 = vector.broadcast %cst_7 : f32 to vector<32x512xf32>
    %10 = arith.maximumf %8, %9 : vector<32x512xf32>
    %11 = arith.truncf %10 : vector<32x512xf32> to vector<32x512xbf16>
    %c0_8 = arith.constant 0 : index
    %c0_9 = arith.constant 0 : index
    %12 = vector.load %arg5[%c0_8, %c0_9] : memref<32x512xbf16, #tpu.memory_space<vmem>>, vector<32x512xbf16>
    tpu.vector_store %arg5[%c0_8, %c0_9], %11 {strides = array<i32>} : memref<32x512xbf16, #tpu.memory_space<vmem>>, vector<32x512xbf16>,
    return
  }
  func.func @transform_0(%arg0: i32) -> (i32, i32) {
    %c0_i32 = arith.constant 0 : i32
    %c0_i32_0 = arith.constant 0 : i32
    %c0_i32_1 = arith.constant 0 : i32
    return %c0_i32, %c0_i32_0 : i32, i32
  }
  func.func @transform_1(%arg0: i32) -> (i32, i32) {
    %c0_i32 = arith.constant 0 : i32
    %c0_i32_0 = arith.constant 0 : i32
    return %c0_i32, %arg0 : i32, i32
  }
  func.func @transform_2(%arg0: i32) -> (i32, i32) {
    %c0_i32 = arith.constant 0 : i32
    %c0_i32_0 = arith.constant 0 : i32
    %c0_i32_1 = arith.constant 0 : i32
    return %c0_i32, %c0_i32_0 : i32, i32
  }
  func.func @transform_3(%arg0: i32) -> (i32, i32) {
    %c0_i32 = arith.constant 0 : i32
    %c0_i32_0 = arith.constant 0 : i32
    return %c0_i32, %arg0 : i32, i32
  }
  func.func @transform_4(%arg0: i32) -> (i32, i32) {
    %c0_i32 = arith.constant 0 : i32
    %c0_i32_0 = arith.constant 0 : i32
    return %c0_i32, %arg0 : i32, i32
  }
}

module attributes {stable_mosaic.version = 11 : i64} {
  func.func @_conv_kernel(%arg0: i32, %arg1: memref<32x288xbf16, #tpu.memory_space<vmem>>, %arg2: memref<288x512xbf16, #tpu.memory_space<vmem>>, %arg3: memref<32x1xf32, #tpu.memory_space<vmem>>, %arg4: memref<32x512xbf16, #tpu.memory_space<vmem>>) attributes {dimension_semantics = [#tpu.dimension_semantics<parallel>], iteration_bounds = array<i64: 1>, scalar_prefetch = 0 : i64, scratch_operands = 0 : i64, tpu.core_type = #tpu.core_type<tc>, window_params = [{pipeline_mode = #tpu.pipeline_mode<synchronous>, transform_indices = @transform_0, window_bounds = array<i64: 32, 288>}, {transform_indices = @transform_1, window_bounds = array<i64: 288, 512>}, {pipeline_mode = #tpu.pipeline_mode<synchronous>, transform_indices = @transform_2, window_bounds = array<i64: 32, 1>}, {transform_indices = @transform_3, window_bounds = array<i64: 32, 512>}]} {
    %c0 = arith.constant 0 : index
    %c0_0 = arith.constant 0 : index
    %0 = vector.load %arg1[%c0, %c0_0] : memref<32x288xbf16, #tpu.memory_space<vmem>>, vector<32x288xbf16>
    %c0_1 = arith.constant 0 : index
    %c0_2 = arith.constant 0 : index
    %1 = vector.load %arg2[%c0_1, %c0_2] : memref<288x512xbf16, #tpu.memory_space<vmem>>, vector<288x512xbf16>
    %cst = arith.constant dense<0.000000e+00> : vector<32x512xf32>
    %2 = tpu.matmul %0, %1, %cst {dimension_numbers = #tpu.dot_dimension_numbers<[1], [0], [0], [1], [0, 0, 1, 1], [], []>} : vector<32x288xbf16>, vector<288x512xbf16>, vector<32x512xf32> -> vector<32x512xf32>
    %c0_3 = arith.constant 0 : index
    %c0_4 = arith.constant 0 : index
    %3 = vector.load %arg3[%c0_3, %c0_4] : memref<32x1xf32, #tpu.memory_space<vmem>>, vector<32x1xf32>
    %4 = vector.broadcast %3 : vector<32x1xf32> to vector<32x512xf32>
    %5 = arith.addf %2, %4 : vector<32x512xf32>
    %cst_5 = arith.constant 0.000000e+00 : f32
    %6 = vector.broadcast %cst_5 : f32 to vector<32x512xf32>
    %7 = arith.maximumf %5, %6 : vector<32x512xf32>
    %8 = arith.truncf %7 : vector<32x512xf32> to vector<32x512xbf16>
    %c0_6 = arith.constant 0 : index
    %c0_7 = arith.constant 0 : index
    %9 = vector.load %arg4[%c0_6, %c0_7] : memref<32x512xbf16, #tpu.memory_space<vmem>>, vector<32x512xbf16>
    tpu.vector_store %arg4[%c0_6, %c0_7], %8 {strides = array<i32>} : memref<32x512xbf16, #tpu.memory_space<vmem>>, vector<32x512xbf16>,
    return
  }
  func.func @transform_0(%arg0: i32) -> (i32, i32) {
    %c0_i32 = arith.constant 0 : i32
    %c0_i32_0 = arith.constant 0 : i32
    %c0_i32_1 = arith.constant 0 : i32
    return %c0_i32, %c0_i32_0 : i32, i32
  }
  func.func @transform_1(%arg0: i32) -> (i32, i32) {
    %c0_i32 = arith.constant 0 : i32
    %c0_i32_0 = arith.constant 0 : i32
    return %c0_i32, %arg0 : i32, i32
  }
  func.func @transform_2(%arg0: i32) -> (i32, i32) {
    %c0_i32 = arith.constant 0 : i32
    %c0_i32_0 = arith.constant 0 : i32
    %c0_i32_1 = arith.constant 0 : i32
    return %c0_i32, %c0_i32_0 : i32, i32
  }
  func.func @transform_3(%arg0: i32) -> (i32, i32) {
    %c0_i32 = arith.constant 0 : i32
    %c0_i32_0 = arith.constant 0 : i32
    return %c0_i32, %arg0 : i32, i32
  }
}

module attributes {stable_mosaic.version = 11 : i64} {
  func.func @_conv_down_kernel(%arg0: i32, %arg1: memref<64x288xbf16, #tpu.memory_space<vmem>>, %arg2: memref<64x32xbf16, #tpu.memory_space<vmem>>, %arg3: memref<288x128xbf16, #tpu.memory_space<vmem>>, %arg4: memref<64x1xf32, #tpu.memory_space<vmem>>, %arg5: memref<64x1xf32, #tpu.memory_space<vmem>>, %arg6: memref<64x128xbf16, #tpu.memory_space<vmem>>, %arg7: memref<64x128xbf16, #tpu.memory_space<vmem>>) attributes {dimension_semantics = [#tpu.dimension_semantics<parallel>], iteration_bounds = array<i64: 1>, scalar_prefetch = 0 : i64, scratch_operands = 0 : i64, tpu.core_type = #tpu.core_type<tc>, window_params = [{pipeline_mode = #tpu.pipeline_mode<synchronous>, transform_indices = @transform_0, window_bounds = array<i64: 64, 288>}, {pipeline_mode = #tpu.pipeline_mode<synchronous>, transform_indices = @transform_1, window_bounds = array<i64: 64, 32>}, {transform_indices = @transform_2, window_bounds = array<i64: 288, 128>}, {pipeline_mode = #tpu.pipeline_mode<synchronous>, transform_indices = @transform_3, window_bounds = array<i64: 64, 1>}, {pipeline_mode = #tpu.pipeline_mode<synchronous>, transform_indices = @transform_4, window_bounds = array<i64: 64, 1>}, {transform_indices = @transform_5, window_bounds = array<i64: 64, 128>}, {transform_indices = @transform_6, window_bounds = array<i64: 64, 128>}]} {
    %c0 = arith.constant 0 : index
    %c0_0 = arith.constant 0 : index
    %0 = vector.load %arg1[%c0, %c0_0] : memref<64x288xbf16, #tpu.memory_space<vmem>>, vector<64x288xbf16>
    %c0_1 = arith.constant 0 : index
    %c0_2 = arith.constant 0 : index
    %1 = vector.load %arg3[%c0_1, %c0_2] : memref<288x128xbf16, #tpu.memory_space<vmem>>, vector<288x128xbf16>
    %cst = arith.constant dense<0.000000e+00> : vector<64x128xf32>
    %2 = tpu.matmul %0, %1, %cst {dimension_numbers = #tpu.dot_dimension_numbers<[1], [0], [0], [1], [0, 0, 1, 1], [], []>} : vector<64x288xbf16>, vector<288x128xbf16>, vector<64x128xf32> -> vector<64x128xf32>
    %c0_3 = arith.constant 0 : index
    %c0_4 = arith.constant 0 : index
    %3 = vector.load %arg4[%c0_3, %c0_4] : memref<64x1xf32, #tpu.memory_space<vmem>>, vector<64x1xf32>
    %4 = vector.broadcast %3 : vector<64x1xf32> to vector<64x128xf32>
    %5 = arith.addf %2, %4 : vector<64x128xf32>
    %cst_5 = arith.constant 0.000000e+00 : f32
    %6 = vector.broadcast %cst_5 : f32 to vector<64x128xf32>
    %7 = arith.maximumf %5, %6 : vector<64x128xf32>
    %8 = arith.truncf %7 : vector<64x128xf32> to vector<64x128xbf16>
    %c0_6 = arith.constant 0 : index
    %c0_7 = arith.constant 0 : index
    %9 = vector.load %arg6[%c0_6, %c0_7] : memref<64x128xbf16, #tpu.memory_space<vmem>>, vector<64x128xbf16>
    tpu.vector_store %arg6[%c0_6, %c0_7], %8 {strides = array<i32>} : memref<64x128xbf16, #tpu.memory_space<vmem>>, vector<64x128xbf16>,
    %c128 = arith.constant 128 : index
    %c0_8 = arith.constant 0 : index
    %10 = vector.load %arg3[%c128, %c0_8] : memref<288x128xbf16, #tpu.memory_space<vmem>>, vector<32x128xbf16>
    %c0_9 = arith.constant 0 : index
    %c0_10 = arith.constant 0 : index
    %11 = vector.load %arg2[%c0_9, %c0_10] : memref<64x32xbf16, #tpu.memory_space<vmem>>, vector<64x32xbf16>
    %cst_11 = arith.constant dense<0.000000e+00> : vector<64x128xf32>
    %12 = tpu.matmul %11, %10, %cst_11 {dimension_numbers = #tpu.dot_dimension_numbers<[1], [0], [0], [1], [0, 0, 1, 1], [], []>} : vector<64x32xbf16>, vector<32x128xbf16>, vector<64x128xf32> -> vector<64x128xf32>
    %c0_12 = arith.constant 0 : index
    %c0_13 = arith.constant 0 : index
    %13 = vector.load %arg5[%c0_12, %c0_13] : memref<64x1xf32, #tpu.memory_space<vmem>>, vector<64x1xf32>
    %14 = vector.broadcast %13 : vector<64x1xf32> to vector<64x128xf32>
    %15 = arith.addf %12, %14 : vector<64x128xf32>
    %16 = arith.truncf %15 : vector<64x128xf32> to vector<64x128xbf16>
    %c0_14 = arith.constant 0 : index
    %c0_15 = arith.constant 0 : index
    %17 = vector.load %arg7[%c0_14, %c0_15] : memref<64x128xbf16, #tpu.memory_space<vmem>>, vector<64x128xbf16>
    tpu.vector_store %arg7[%c0_14, %c0_15], %16 {strides = array<i32>} : memref<64x128xbf16, #tpu.memory_space<vmem>>, vector<64x128xbf16>,
    return
  }
  func.func @transform_0(%arg0: i32) -> (i32, i32) {
    %c0_i32 = arith.constant 0 : i32
    %c0_i32_0 = arith.constant 0 : i32
    %c0_i32_1 = arith.constant 0 : i32
    return %c0_i32, %c0_i32_0 : i32, i32
  }
  func.func @transform_1(%arg0: i32) -> (i32, i32) {
    %c0_i32 = arith.constant 0 : i32
    %c0_i32_0 = arith.constant 0 : i32
    %c0_i32_1 = arith.constant 0 : i32
    return %c0_i32, %c0_i32_0 : i32, i32
  }
  func.func @transform_2(%arg0: i32) -> (i32, i32) {
    %c0_i32 = arith.constant 0 : i32
    %c0_i32_0 = arith.constant 0 : i32
    return %c0_i32, %arg0 : i32, i32
  }
  func.func @transform_3(%arg0: i32) -> (i32, i32) {
    %c0_i32 = arith.constant 0 : i32
    %c0_i32_0 = arith.constant 0 : i32
    %c0_i32_1 = arith.constant 0 : i32
    return %c0_i32, %c0_i32_0 : i32, i32
  }
  func.func @transform_4(%arg0: i32) -> (i32, i32) {
    %c0_i32 = arith.constant 0 : i32
    %c0_i32_0 = arith.constant 0 : i32
    %c0_i32_1 = arith.constant 0 : i32
    return %c0_i32, %c0_i32_0 : i32, i32
  }
  func.func @transform_5(%arg0: i32) -> (i32, i32) {
    %c0_i32 = arith.constant 0 : i32
    %c0_i32_0 = arith.constant 0 : i32
    return %c0_i32, %arg0 : i32, i32
  }
  func.func @transform_6(%arg0: i32) -> (i32, i32) {
    %c0_i32 = arith.constant 0 : i32
    %c0_i32_0 = arith.constant 0 : i32
    return %c0_i32, %arg0 : i32, i32
  }
}

module attributes {stable_mosaic.version = 11 : i64} {
  func.func @_conv_res_kernel(%arg0: i32, %arg1: memref<64x576xbf16, #tpu.memory_space<vmem>>, %arg2: memref<576x128xbf16, #tpu.memory_space<vmem>>, %arg3: memref<64x1xf32, #tpu.memory_space<vmem>>, %arg4: memref<64x128xbf16, #tpu.memory_space<vmem>>, %arg5: memref<64x128xbf16, #tpu.memory_space<vmem>>) attributes {dimension_semantics = [#tpu.dimension_semantics<parallel>], iteration_bounds = array<i64: 1>, scalar_prefetch = 0 : i64, scratch_operands = 0 : i64, tpu.core_type = #tpu.core_type<tc>, window_params = [{pipeline_mode = #tpu.pipeline_mode<synchronous>, transform_indices = @transform_0, window_bounds = array<i64: 64, 576>}, {transform_indices = @transform_1, window_bounds = array<i64: 576, 128>}, {pipeline_mode = #tpu.pipeline_mode<synchronous>, transform_indices = @transform_2, window_bounds = array<i64: 64, 1>}, {transform_indices = @transform_3, window_bounds = array<i64: 64, 128>}, {transform_indices = @transform_4, window_bounds = array<i64: 64, 128>}]} {
    %c0 = arith.constant 0 : index
    %c0_0 = arith.constant 0 : index
    %0 = vector.load %arg1[%c0, %c0_0] : memref<64x576xbf16, #tpu.memory_space<vmem>>, vector<64x576xbf16>
    %c0_1 = arith.constant 0 : index
    %c0_2 = arith.constant 0 : index
    %1 = vector.load %arg2[%c0_1, %c0_2] : memref<576x128xbf16, #tpu.memory_space<vmem>>, vector<576x128xbf16>
    %cst = arith.constant dense<0.000000e+00> : vector<64x128xf32>
    %2 = tpu.matmul %0, %1, %cst {dimension_numbers = #tpu.dot_dimension_numbers<[1], [0], [0], [1], [0, 0, 1, 1], [], []>} : vector<64x576xbf16>, vector<576x128xbf16>, vector<64x128xf32> -> vector<64x128xf32>
    %c0_3 = arith.constant 0 : index
    %c0_4 = arith.constant 0 : index
    %3 = vector.load %arg3[%c0_3, %c0_4] : memref<64x1xf32, #tpu.memory_space<vmem>>, vector<64x1xf32>
    %4 = vector.broadcast %3 : vector<64x1xf32> to vector<64x128xf32>
    %5 = arith.addf %2, %4 : vector<64x128xf32>
    %c0_5 = arith.constant 0 : index
    %c0_6 = arith.constant 0 : index
    %6 = vector.load %arg4[%c0_5, %c0_6] : memref<64x128xbf16, #tpu.memory_space<vmem>>, vector<64x128xbf16>
    %7 = arith.extf %6 : vector<64x128xbf16> to vector<64x128xf32>
    %8 = arith.addf %5, %7 : vector<64x128xf32>
    %cst_7 = arith.constant 0.000000e+00 : f32
    %9 = vector.broadcast %cst_7 : f32 to vector<64x128xf32>
    %10 = arith.maximumf %8, %9 : vector<64x128xf32>
    %11 = arith.truncf %10 : vector<64x128xf32> to vector<64x128xbf16>
    %c0_8 = arith.constant 0 : index
    %c0_9 = arith.constant 0 : index
    %12 = vector.load %arg5[%c0_8, %c0_9] : memref<64x128xbf16, #tpu.memory_space<vmem>>, vector<64x128xbf16>
    tpu.vector_store %arg5[%c0_8, %c0_9], %11 {strides = array<i32>} : memref<64x128xbf16, #tpu.memory_space<vmem>>, vector<64x128xbf16>,
    return
  }
  func.func @transform_0(%arg0: i32) -> (i32, i32) {
    %c0_i32 = arith.constant 0 : i32
    %c0_i32_0 = arith.constant 0 : i32
    %c0_i32_1 = arith.constant 0 : i32
    return %c0_i32, %c0_i32_0 : i32, i32
  }
  func.func @transform_1(%arg0: i32) -> (i32, i32) {
    %c0_i32 = arith.constant 0 : i32
    %c0_i32_0 = arith.constant 0 : i32
    return %c0_i32, %arg0 : i32, i32
  }
  func.func @transform_2(%arg0: i32) -> (i32, i32) {
    %c0_i32 = arith.constant 0 : i32
    %c0_i32_0 = arith.constant 0 : i32
    %c0_i32_1 = arith.constant 0 : i32
    return %c0_i32, %c0_i32_0 : i32, i32
  }
  func.func @transform_3(%arg0: i32) -> (i32, i32) {
    %c0_i32 = arith.constant 0 : i32
    %c0_i32_0 = arith.constant 0 : i32
    return %c0_i32, %arg0 : i32, i32
  }
  func.func @transform_4(%arg0: i32) -> (i32, i32) {
    %c0_i32 = arith.constant 0 : i32
    %c0_i32_0 = arith.constant 0 : i32
    return %c0_i32, %arg0 : i32, i32
  }
}

module attributes {stable_mosaic.version = 11 : i64} {
  func.func @_conv_kernel(%arg0: i32, %arg1: memref<64x576xbf16, #tpu.memory_space<vmem>>, %arg2: memref<576x128xbf16, #tpu.memory_space<vmem>>, %arg3: memref<64x1xf32, #tpu.memory_space<vmem>>, %arg4: memref<64x128xbf16, #tpu.memory_space<vmem>>) attributes {dimension_semantics = [#tpu.dimension_semantics<parallel>], iteration_bounds = array<i64: 1>, scalar_prefetch = 0 : i64, scratch_operands = 0 : i64, tpu.core_type = #tpu.core_type<tc>, window_params = [{pipeline_mode = #tpu.pipeline_mode<synchronous>, transform_indices = @transform_0, window_bounds = array<i64: 64, 576>}, {transform_indices = @transform_1, window_bounds = array<i64: 576, 128>}, {pipeline_mode = #tpu.pipeline_mode<synchronous>, transform_indices = @transform_2, window_bounds = array<i64: 64, 1>}, {transform_indices = @transform_3, window_bounds = array<i64: 64, 128>}]} {
    %c0 = arith.constant 0 : index
    %c0_0 = arith.constant 0 : index
    %0 = vector.load %arg1[%c0, %c0_0] : memref<64x576xbf16, #tpu.memory_space<vmem>>, vector<64x576xbf16>
    %c0_1 = arith.constant 0 : index
    %c0_2 = arith.constant 0 : index
    %1 = vector.load %arg2[%c0_1, %c0_2] : memref<576x128xbf16, #tpu.memory_space<vmem>>, vector<576x128xbf16>
    %cst = arith.constant dense<0.000000e+00> : vector<64x128xf32>
    %2 = tpu.matmul %0, %1, %cst {dimension_numbers = #tpu.dot_dimension_numbers<[1], [0], [0], [1], [0, 0, 1, 1], [], []>} : vector<64x576xbf16>, vector<576x128xbf16>, vector<64x128xf32> -> vector<64x128xf32>
    %c0_3 = arith.constant 0 : index
    %c0_4 = arith.constant 0 : index
    %3 = vector.load %arg3[%c0_3, %c0_4] : memref<64x1xf32, #tpu.memory_space<vmem>>, vector<64x1xf32>
    %4 = vector.broadcast %3 : vector<64x1xf32> to vector<64x128xf32>
    %5 = arith.addf %2, %4 : vector<64x128xf32>
    %cst_5 = arith.constant 0.000000e+00 : f32
    %6 = vector.broadcast %cst_5 : f32 to vector<64x128xf32>
    %7 = arith.maximumf %5, %6 : vector<64x128xf32>
    %8 = arith.truncf %7 : vector<64x128xf32> to vector<64x128xbf16>
    %c0_6 = arith.constant 0 : index
    %c0_7 = arith.constant 0 : index
    %9 = vector.load %arg4[%c0_6, %c0_7] : memref<64x128xbf16, #tpu.memory_space<vmem>>, vector<64x128xbf16>
    tpu.vector_store %arg4[%c0_6, %c0_7], %8 {strides = array<i32>} : memref<64x128xbf16, #tpu.memory_space<vmem>>, vector<64x128xbf16>,
    return
  }
  func.func @transform_0(%arg0: i32) -> (i32, i32) {
    %c0_i32 = arith.constant 0 : i32
    %c0_i32_0 = arith.constant 0 : i32
    %c0_i32_1 = arith.constant 0 : i32
    return %c0_i32, %c0_i32_0 : i32, i32
  }
  func.func @transform_1(%arg0: i32) -> (i32, i32) {
    %c0_i32 = arith.constant 0 : i32
    %c0_i32_0 = arith.constant 0 : i32
    return %c0_i32, %arg0 : i32, i32
  }
  func.func @transform_2(%arg0: i32) -> (i32, i32) {
    %c0_i32 = arith.constant 0 : i32
    %c0_i32_0 = arith.constant 0 : i32
    %c0_i32_1 = arith.constant 0 : i32
    return %c0_i32, %c0_i32_0 : i32, i32
  }
  func.func @transform_3(%arg0: i32) -> (i32, i32) {
    %c0_i32 = arith.constant 0 : i32
    %c0_i32_0 = arith.constant 0 : i32
    return %c0_i32, %arg0 : i32, i32
  }
}

</mosaic_0001>

<bundles_post_ra>
// kernel: resnet20_forward.19
= control target key start
LH: loop header
LB: loop body
LE: loop exit
PB: predicated region body
PF: predicated region fallthrough
CT: control target
= control target key end

     0   :  { %s804_s12 = smov 0   ;;  %s806_s13 = smov 0   ;;  %s935_s0 = inlined_call_operand.vmem [shape: bf16[16,32], index: 0, kind: input, shape index: {}]   ;;  %s936_s1 = inlined_call_operand.vmem [shape: bf16[32,2048], index: 1, kind: input, shape index: {}]   ;;  %s937_s2 = inlined_call_operand.vmem [shape: f32[16,1], index: 2, kind: input, shape index: {}]   ;;  %s938_s3 = inlined_call_operand.vmem [shape: bf16[16,2048], index: 3, kind: output, shape index: {}]  }
   0x1   :  { %s808_s14 = smov 0  }
   0x2 LB: > { %s678_s15 = sadd.s32 4294967295, %s781_s14   ;;  %s821_s16 = sadd.s32 1, %s781_s14   ;;  %s781_s14 = sphi %s808_s14, %s942_s14   ;;  %s777_s13 = sphi %s806_s13, %s941_s13   ;;  %s773_s12 = sphi %s804_s12, %s940_s12  }
   0x3   : > { %s38_s17 = ssub.s32 %s781_s14, %s821_s16  ;;  %s41_s18 = sadd.s32 1, %s777_s13 }
   0x4   : > { %p39_p0 = scmp.eq.s32.totalorder %s38_s17, 0  ;;  %p48_p1 = scmp.ne.s32.totalorder %s777_s13, %s773_s12 }
   0x5   : > { %p49_p2 = scmp.eq.s32.totalorder %s781_s14, 0  ;;  %p99_p3 = scmp.eq.s32.totalorder %s678_s15, 1 }
   0x6   : > { %s832_s19 = scalar_select %p39_p0, %s777_s13, %s41_s18  }
   0x7   : > { %p50_p4 = por %p49_p2, %p48_p1  ;;  %p834_p5 = por %p99_p3, %p48_p1 }
   0x8   : > { %p681_p6 = scmp.ge.s32.totalorder %s781_s14, 2 }
   0xa   : > { %127 = sbr.rel (%p681_p6) target bundleno = 29 (0x1d), region = 24 }
  0x11   : > { %130 = sbr.rel (!%p50_p4) target bundleno = 29 (0x1d), region = 28  ;;  %s132_s21 = sand.u32 (%p50_p4), 1, %s777_s13  }
  0x12   : > { %s722_s22 = sshll.u32 (%p50_p4), %s781_s14, 5  ;;  %s682_s23 = sshll.u32 (%p50_p4), %s132_s21, 7 }
  0x13   : > { %s844_s26 = scalar_lea.vmem (%p50_p4), %s936_s1, %s722_s22  ;;  %s134_s27 = scalar_lea.vmem (%p50_p4), [#allocation2], %s682_s23 }
  0x14   : > { %v150_v0 = vld [vmem:[%s844_s26] sm:$0xff] (%p50_p4)  ;;  %v152_v1 = vld [vmem:[%s844_s26 + $0x8] sm:$0xff] (%p50_p4)  ;;  %v154_v2 = vld [vmem:[%s844_s26 + $0x10] sm:$0xff] (%p50_p4) }
  0x15   : > { %151 = vst [vmem:[%s134_s27] sm:$0xff] (%p50_p4), %v150_v0  ;;  %153 = vst [vmem:[%s134_s27 + $0x8] sm:$0xff] (%p50_p4), %v152_v1  ;;  %v156_v3 = vld [vmem:[%s844_s26 + $0x18] sm:$0xff] (%p50_p4)  ;;  %v158_v4 = vld [vmem:[%s844_s26 + $0x40] sm:$0xff] (%p50_p4) }
  0x16   : > { %155 = vst [vmem:[%s134_s27 + $0x10] sm:$0xff] (%p50_p4), %v154_v2  ;;  %v160_v5 = vld [vmem:[%s844_s26 + $0x48] sm:$0xff] (%p50_p4)  ;;  %157 = vst [vmem:[%s134_s27 + $0x18] sm:$0xff] (%p50_p4), %v156_v3  ;;  %v162_v6 = vld [vmem:[%s844_s26 + $0x50] sm:$0xff] (%p50_p4) }
  0x17   : > { %159 = vst [vmem:[%s134_s27 + $0x20] sm:$0xff] (%p50_p4), %v158_v4  ;;  %161 = vst [vmem:[%s134_s27 + $0x28] sm:$0xff] (%p50_p4), %v160_v5  ;;  %v164_v7 = vld [vmem:[%s844_s26 + $0x58] sm:$0xff] (%p50_p4)  ;;  %v166_v8 = vld [vmem:[%s844_s26 + $0x80] sm:$0xff] (%p50_p4) }
  0x18   : > { %163 = vst [vmem:[%s134_s27 + $0x30] sm:$0xff] %v162_v6  ;;  %165 = vst [vmem:[%s134_s27 + $0x38] sm:$0xff] %v164_v7  ;;  %v168_v9 = vld [vmem:[%s844_s26 + $0x88] sm:$0xff]  ;;  %v170_v10 = vld [vmem:[%s844_s26 + $0x90] sm:$0xff] }
  0x19   : > { %167 = vst [vmem:[%s134_s27 + $0x40] sm:$0xff] %v166_v8  ;;  %v172_v11 = vld [vmem:[%s844_s26 + $0x98] sm:$0xff]  ;;  %169 = vst [vmem:[%s134_s27 + $0x48] sm:$0xff] %v168_v9  ;;  %v174_v12 = vld [vmem:[%s844_s26 + $0xc0] sm:$0xff] }
  0x1a   : > { %171 = vst [vmem:[%s134_s27 + $0x50] sm:$0xff] %v170_v10  ;;  %173 = vst [vmem:[%s134_s27 + $0x58] sm:$0xff] %v172_v11  ;;  %v176_v13 = vld [vmem:[%s844_s26 + $0xc8] sm:$0xff]  ;;  %v178_v14 = vld [vmem:[%s844_s26 + $0xd0] sm:$0xff] }
  0x1b   : > { %175 = vst [vmem:[%s134_s27 + $0x60] sm:$0xff] %v174_v12  ;;  %177 = vst [vmem:[%s134_s27 + $0x68] sm:$0xff] %v176_v13  ;;  %v180_v15 = vld [vmem:[%s844_s26 + $0xd8] sm:$0xff] }
  0x1c   : > { %179 = vst [vmem:[%s134_s27 + $0x70] sm:$0xff] %v178_v14  ;;  %181 = vst [vmem:[%s134_s27 + $0x78] sm:$0xff] %v180_v15 }
  0x1d PF: > { %p685_p7 = scmp.ge.s32.totalorder %s781_s14, 1  ;;  %p186_p8 = scmp.lt.s32.totalorder %s781_s14, 3 }
  0x1f   : > { %p187_p9 = pnand %p685_p7, %p186_p8 }
  0x20   : > { %s193_s28 = sand.u32 (!%p187_p9), 1, %s773_s12   ;;  %v783_v16 = vmov (!%p187_p9), 0   ;;  %v236_v17 = vld [vmem:[%s937_s2] sm:$0xff] (!%p187_p9)  ;;  %v237_v26 = vld [vmem:[%s937_s2 + $0x8] sm:$0xff] (!%p187_p9)  ;;  %vm333_vm0 = vcmask (!%p187_p9), 261120  }
  0x21   : > { %190 = sbr.rel (%p187_p9) target bundleno = 285 (0x11d), region = 51  ;;  %s686_s29 = sshll.u32 (!%p187_p9), %s193_s28, 7  ;;  %369 = vmatprep.mubr.bf16.mxu0 (!%p187_p9), %v783_v16  ;;  %412 = vmatprep.mubr.bf16.mxu1 (!%p187_p9), %v783_v16  ;;  %v758_v43 = vld [vmem:[%s935_s0] sm:$0xff] (!%p187_p9)  }
  0x22   : > { %757 = vset.pattern.permute.xlu0 (!%p187_p9), %v783_v16  ;;  %s870_s5 = scalar_lea.vmem (!%p187_p9), [#allocation2], %s686_s29  ;;  %s687_s10 = sshll.u32 (!%p187_p9), %s193_s28, 6 }
  0x23   : > { %v220_v18 = vld [vmem:[%s870_s5] sm:$0xff] (!%p187_p9)  ;;  %v221_v20 = vld [vmem:[%s870_s5 + $0x8] sm:$0xff] (!%p187_p9)  ;;  %240 = vperm.xlu0 (!%p187_p9), %757, %v236_v17   ;;  %v222_v32 = vld [vmem:[%s870_s5 + $0x10] sm:$0xff] (!%p187_p9)  ;;  %s900_s11 = scalar_lea.vmem (!%p187_p9), [#allocation3], %s687_s10 }
  0x24   : > { %v224_v19 = vld [vmem:[%s870_s5 + $0x20] sm:$0xff] (!%p187_p9)  ;;  %v225_v22 = vld [vmem:[%s870_s5 + $0x28] sm:$0xff] (!%p187_p9)  ;;  %v226_v34 = vld [vmem:[%s870_s5 + $0x30] sm:$0xff] (!%p187_p9) }
  0x25   : > { %v690_v21 = vcombine.high (!%p187_p9), %v220_v18, %v224_v19  ;;  %v689_v23 = vcombine.low (!%p187_p9), %v220_v18, %v224_v19  ;;  %v228_v24 = vld [vmem:[%s870_s5 + $0x40] sm:$0xff] (!%p187_p9)  ;;  %v692_v27 = vcombine.high (!%p187_p9), %v221_v20, %v225_v22  ;;  %v691_v28 = vcombine.low (!%p187_p9), %v221_v20, %v225_v22  ;;  %v229_v30 = vld [vmem:[%s870_s5 + $0x48] sm:$0xff] (!%p187_p9)  ;;  %v223_v35 = vld [vmem:[%s870_s5 + $0x18] sm:$0xff] (!%p187_p9) }
  0x26   : > { %v232_v25 = vld [vmem:[%s870_s5 + $0x60] sm:$0xff] (!%p187_p9)  ;;  %v233_v31 = vld [vmem:[%s870_s5 + $0x68] sm:$0xff] (!%p187_p9)  ;;  %v227_v36 = vld [vmem:[%s870_s5 + $0x38] sm:$0xff] (!%p187_p9)  ;;  %v694_v39 = vcombine.high (!%p187_p9), %v222_v32, %v226_v34  ;;  %v693_v46 = vcombine.low (!%p187_p9), %v222_v32, %v226_v34 }
  0x27   : > { %v698_v29 = vcombine.high (!%p187_p9), %v228_v24, %v232_v25  ;;  %337 = vmatprep.subr.bf16.mxu0 (!%p187_p9), %v690_v21  ;;  %v700_v33 = vcombine.high (!%p187_p9), %v229_v30, %v233_v31  ;;  %380 = vmatprep.subr.bf16.mxu1 (!%p187_p9), %v692_v27  ;;  %v697_v37 = vcombine.low (!%p187_p9), %v228_v24, %v232_v25  ;;  %v230_v41 = vld [vmem:[%s870_s5 + $0x50] sm:$0xff] (!%p187_p9)  ;;  %v231_v44 = vld [vmem:[%s870_s5 + $0x58] sm:$0xff] (!%p187_p9) }
  0x28   : > { %338 = vmatpush1.bf16.msra.mxu0 %v689_v23  ;;  %381 = vmatpush1.bf16.msra.mxu1 %v691_v28  ;;  %v699_v38 = vcombine.low %v229_v30, %v233_v31  ;;  %v696_v40 = vcombine.high %v223_v35, %v227_v36  ;;  %v234_v42 = vld [vmem:[%s870_s5 + $0x70] sm:$0xff]  ;;  %v235_v45 = vld [vmem:[%s870_s5 + $0x78] sm:$0xff]  ;;  %v695_v47 = vcombine.low %v223_v35, %v227_v36  ;;  %s731_s12 = sshll.u32 (%p834_p5), %s678_s15, 5 }
  0x29   : > { %339 = vmatprep.subr.bf16.mxu0 %v698_v29  ;;  %382 = vmatprep.subr.bf16.mxu1 %v700_v33  ;;  %v702_v48 = vcombine.high %v230_v41, %v234_v42  ;;  %v704_v49 = vcombine.high %v231_v44, %v235_v45  ;;  %v701_v50 = vcombine.low %v230_v41, %v234_v42  ;;  %s590_s21 = scalar_lea.vmem (%p834_p5), %s938_s3, %s731_s12 }
  0x2a   : > { %245 = vperm.xlu0 %757, %v237_v26   ;;  %v703_v51 = vcombine.low %v231_v44, %v235_v45 }
  0x2c   : > { %340 = vmatpush1.bf16.msra.mxu0 %v697_v37  ;;  %383 = vmatpush1.bf16.msra.mxu1 %v699_v38 }
  0x2d   : > { %423 = vmatprep.subr.bf16.mxu0 %v694_v39  ;;  %466 = vmatprep.subr.bf16.mxu1 %v696_v40 }
  0x2f   : > { %705 = vmatmul.mubr.msk.bf16.vlgmr.msra.gmra.mrb[0].mxu0 %vm333_vm0, %v758_v43  ;;  %706 = vmatmul.mubr.msk.bf16.vlgmr.msra.gmra.mrb[0].mxu1 %vm333_vm0, %v758_v43 }
  0x30   : > { %424 = vmatpush1.bf16.msra.mxu0 %v693_v46  ;;  %467 = vmatpush1.bf16.msra.mxu1 %v695_v47 }
  0x31   : > { %425 = vmatprep.subr.bf16.mxu0 %v702_v48  ;;  %468 = vmatprep.subr.bf16.mxu1 %v704_v49 }
  0x32   : > { %455 = vmatprep.mubr.bf16.mxu0 %v783_v16  ;;  %498 = vmatprep.mubr.bf16.mxu1 %v783_v16 }
  0x34   : > { %426 = vmatpush1.bf16.msra.mxu0 %v701_v50  ;;  %469 = vmatpush1.bf16.msra.mxu1 %v703_v51 }
  0x37   : > { %707 = vmatmul.mubr.msk.bf16.vlgmr.msra.gmra.mrb[4].mxu0 %vm333_vm0, %v758_v43  ;;  %708 = vmatmul.mubr.msk.bf16.vlgmr.msra.gmra.mrb[4].mxu1 %vm333_vm0, %v758_v43 }
  0xa2   : > { %v241_v52 = vpop.permute.xlu0 %240 }
  0xa9   : > { %v246_v54 = vpop.permute.xlu0 %245 }
 0x102   : > { %v371_v53 = vpop.f32.mrb[0].mxu0  ;;  %v414_v56 = vpop.f32.mrb[0].mxu1 }
 0x103   : > { %v372_v55 = vadd.f32 %v371_v53, %v241_v52  ;;  %v373_v57 = vpop.f32.mrb[1].mxu0  ;;  %v415_v58 = vadd.f32 %v414_v56, %v241_v52  ;;  %v416_v60 = vpop.f32.mrb[1].mxu1 }
 0x104   : > { %v374_v59 = vadd.f32 %v373_v57, %v241_v52  ;;  %v375_v61 = vpop.f32.mrb[2].mxu0  ;;  %v417_v63 = vadd.f32 %v416_v60, %v241_v52  ;;  %v418_v1 = vpop.f32.mrb[2].mxu1 }
 0x105   : > { %v509_v62 = vmax.f32 %v372_v55, 0.0  ;;  %v376_v0 = vadd.f32 %v375_v61, %v246_v54  ;;  %v377_v2 = vpop.f32.mrb[3].mxu0  ;;  %v511_v3 = vmax.f32 %v415_v58, 0.0  ;;  %v419_v5 = vadd.f32 %v418_v1, %v246_v54  ;;  %v420_v7 = vpop.f32.mrb[3].mxu1 }
 0x106   : > { %v510_v4 = vmax.f32 %v374_v59, 0.0  ;;  %v378_v6 = vadd.f32 %v377_v2, %v246_v54  ;;  %v512_v8 = vmax.f32 %v417_v63, 0.0  ;;  %v421_v10 = vadd.f32 %v420_v7, %v246_v54 }
 0x107   : > { %v517_v9 = vmax.f32 %v376_v0, 0.0  ;;  %v519_v12 = vmax.f32 %v419_v5, 0.0 }
 0x108   : > { %v723_v11 = vpack.c.bf16 %v510_v4, %v509_v62  ;;  %v518_v13 = vmax.f32 %v378_v6, 0.0  ;;  %v724_v14 = vpack.c.bf16 %v512_v8, %v511_v3  ;;  %v520_v15 = vmax.f32 %v421_v10, 0.0 }
 0x10a   : > { %573 = vst [vmem:[%s900_s11] sm:$0xff] %v723_v11  ;;  %v727_v16 = vpack.c.bf16 %v518_v13, %v517_v9  ;;  %v457_v17 = vpop.f32.mrb[4].mxu0  ;;  %574 = vst [vmem:[%s900_s11 + $0x8] sm:$0xff] %v724_v14  ;;  %v728_v18 = vpack.c.bf16 %v520_v15, %v519_v12  ;;  %v500_v20 = vpop.f32.mrb[4].mxu1 }
 0x10b   : > { %v458_v19 = vadd.f32 %v457_v17, %v241_v52  ;;  %v459_v21 = vpop.f32.mrb[5].mxu0  ;;  %v501_v22 = vadd.f32 %v500_v20, %v241_v52  ;;  %v502_v24 = vpop.f32.mrb[5].mxu1 }
 0x10c   : > { %577 = vst [vmem:[%s900_s11 + $0x20] sm:$0xff] %v727_v16  ;;  %v460_v23 = vadd.f32 %v459_v21, %v241_v52  ;;  %v461_v25 = vpop.f32.mrb[6].mxu0  ;;  %578 = vst [vmem:[%s900_s11 + $0x28] sm:$0xff] %v728_v18  ;;  %v503_v27 = vadd.f32 %v502_v24, %v241_v52  ;;  %v504_v29 = vpop.f32.mrb[6].mxu1 }
 0x10d   : > { %v513_v26 = vmax.f32 %v458_v19, 0.0  ;;  %v462_v28 = vadd.f32 %v461_v25, %v246_v54  ;;  %v463_v30 = vpop.f32.mrb[7].mxu0  ;;  %v515_v31 = vmax.f32 %v501_v22, 0.0  ;;  %v505_v33 = vadd.f32 %v504_v29, %v246_v54  ;;  %v506_v35 = vpop.f32.mrb[7].mxu1 }
 0x10e   : > { %v514_v32 = vmax.f32 %v460_v23, 0.0  ;;  %v464_v34 = vadd.f32 %v463_v30, %v246_v54  ;;  %v516_v36 = vmax.f32 %v503_v27, 0.0  ;;  %v507_v38 = vadd.f32 %v506_v35, %v246_v54  ;;  %587 = sbr.rel (!%p834_p5) target bundleno = 285 (0x11d), region = 59 }
 0x10f   : > { %v521_v37 = vmax.f32 %v462_v28, 0.0  ;;  %v523_v40 = vmax.f32 %v505_v33, 0.0 }
 0x110   : > { %v725_v39 = vpack.c.bf16 %v514_v32, %v513_v26  ;;  %v522_v41 = vmax.f32 %v464_v34, 0.0  ;;  %v726_v42 = vpack.c.bf16 %v516_v36, %v515_v31  ;;  %v524_v43 = vmax.f32 %v507_v38, 0.0 }
 0x111   : > { %v603_v46 = vld [vmem:[%s900_s11] sm:$0xff] (%p834_p5)  ;;  %v605_v47 = vld [vmem:[%s900_s11 + $0x8] sm:$0xff] (%p834_p5) }
 0x112   : > { %575 = vst [vmem:[%s900_s11 + $0x10] sm:$0xff] %v725_v39  ;;  %v729_v44 = vpack.c.bf16 %v522_v41, %v521_v37  ;;  %576 = vst [vmem:[%s900_s11 + $0x18] sm:$0xff] %v726_v42  ;;  %v730_v45 = vpack.c.bf16 %v524_v43, %v523_v40 }
 0x113   : > { %v611_v50 = vld [vmem:[%s900_s11 + $0x20] sm:$0xff] (%p834_p5)  ;;  %v613_v51 = vld [vmem:[%s900_s11 + $0x28] sm:$0xff] (%p834_p5)  ;;  %604 = vst [vmem:[%s590_s21] sm:$0xff] (%p834_p5), %v603_v46  ;;  %606 = vst [vmem:[%s590_s21 + $0x8] sm:$0xff] (%p834_p5), %v605_v47 }
 0x114   : > { %579 = vst [vmem:[%s900_s11 + $0x30] sm:$0xff] %v729_v44  ;;  %580 = vst [vmem:[%s900_s11 + $0x38] sm:$0xff] %v730_v45 }
 0x115   : > { %612 = vst [vmem:[%s590_s21 + $0x40] sm:$0xff] %v611_v50  ;;  %614 = vst [vmem:[%s590_s21 + $0x48] sm:$0xff] %v613_v51 }
 0x119   : > { %v607_v48 = vld [vmem:[%s900_s11 + $0x10] sm:$0xff]  ;;  %v609_v49 = vld [vmem:[%s900_s11 + $0x18] sm:$0xff] }
 0x11a   : > { %608 = vst [vmem:[%s590_s21 + $0x10] sm:$0xff] %v607_v48  ;;  %610 = vst [vmem:[%s590_s21 + $0x18] sm:$0xff] %v609_v49 }
 0x11b   : > { %v615_v52 = vld [vmem:[%s900_s11 + $0x30] sm:$0xff]  ;;  %v617_v53 = vld [vmem:[%s900_s11 + $0x38] sm:$0xff] }
 0x11c   : > { %616 = vst [vmem:[%s590_s21 + $0x50] sm:$0xff] %v615_v52  ;;  %618 = vst [vmem:[%s590_s21 + $0x58] sm:$0xff] %v617_v53 }
 0x11d PF: > { %p10_p10 = scmp.ge.s32.totalorder %s821_s16, 4   ;;  %s940_s12 = smov %s777_s13 }
 0x11e   : > { %s941_s13 = smov %s832_s19  ;;  %s942_s14 = smov %s821_s16 }
 0x11f   :  { %12 = sbr.rel (!%p10_p10) target bundleno = 2 (0x2), region = 113 }

// kernel: resnet20_forward.20
= control target key start
LH: loop header
LB: loop body
LE: loop exit
PB: predicated region body
PF: predicated region fallthrough
CT: control target
= control target key end

     0   :  { %s1315_s12 = smov 0   ;;  %s1317_s13 = smov 0   ;;  %s1647_s0 = inlined_call_operand.vmem [shape: bf16[16,144], index: 0, kind: input, shape index: {}]   ;;  %s1648_s1 = inlined_call_operand.vmem [shape: bf16[144,2048], index: 1, kind: input, shape index: {}]   ;;  %s1649_s2 = inlined_call_operand.vmem [shape: f32[16,1], index: 2, kind: input, shape index: {}]   ;;  %s1650_s3 = inlined_call_operand.vmem [shape: bf16[16,2048], index: 3, kind: output, shape index: {}]  }
   0x1   :  { %s1319_s14 = smov 0  }
   0x2 LB: > { %s1130_s15 = sadd.s32 4294967295, %s1292_s14   ;;  %s1332_s16 = sadd.s32 1, %s1292_s14   ;;  %s1292_s14 = sphi %s1319_s14, %s1654_s14   ;;  %s1288_s13 = sphi %s1317_s13, %s1653_s13   ;;  %s1284_s12 = sphi %s1315_s12, %s1652_s12  }
   0x3   : > { %s38_s17 = ssub.s32 %s1292_s14, %s1332_s16  ;;  %s41_s18 = sadd.s32 1, %s1288_s13 }
   0x4   : > { %p39_p0 = scmp.eq.s32.totalorder %s38_s17, 0  ;;  %p48_p1 = scmp.ne.s32.totalorder %s1288_s13, %s1284_s12 }
   0x5   : > { %p49_p2 = scmp.eq.s32.totalorder %s1292_s14, 0  ;;  %p99_p3 = scmp.eq.s32.totalorder %s1130_s15, 1 }
   0x6   : > { %s1343_s19 = scalar_select %p39_p0, %s1288_s13, %s41_s18  }
   0x7   : > { %p50_p4 = por %p49_p2, %p48_p1  ;;  %p1345_p5 = por %p99_p3, %p48_p1 }
   0x8   : > { %p1133_p6 = scmp.ge.s32.totalorder %s1292_s14, 2 }
   0xa   : > { %127 = sbr.rel (%p1133_p6) target bundleno = 58 (0x3a), region = 24 }
  0x11   : > { %130 = sbr.rel (!%p50_p4) target bundleno = 58 (0x3a), region = 28  ;;  %s132_s21 = sand.u32 (%p50_p4), 1, %s1288_s13  }
  0x12   : > { %s1229_s22 = sshll.u32 (%p50_p4), %s1292_s14, 5  ;;  %s1239_s23 = smul.u32 (%p50_p4), 576, %s132_s21 }
  0x13   : > { %s1355_s26 = scalar_lea.vmem (%p50_p4), %s1648_s1, %s1229_s22 }
  0x14   : > { %v150_v0 = vld [vmem:[%s1355_s26] sm:$0xff] (%p50_p4)  ;;  %v152_v1 = vld [vmem:[%s1355_s26 + $0x8] sm:$0xff] (%p50_p4)  ;;  %v154_v2 = vld [vmem:[%s1355_s26 + $0x10] sm:$0xff] (%p50_p4)  ;;  %s1363_s27 = scalar_lea.vmem (%p50_p4), [#allocation2], %s1239_s23 }
  0x15   : > { %v156_v3 = vld [vmem:[%s1355_s26 + $0x18] sm:$0xff] (%p50_p4)  ;;  %v158_v4 = vld [vmem:[%s1355_s26 + $0x40] sm:$0xff] (%p50_p4)  ;;  %v160_v5 = vld [vmem:[%s1355_s26 + $0x48] sm:$0xff] (%p50_p4)  ;;  %151 = vst [vmem:[%s1363_s27] sm:$0xff] (%p50_p4), %v150_v0 }
  0x16   : > { %153 = vst [vmem:[%s1363_s27 + $0x8] sm:$0xff] (%p50_p4), %v152_v1  ;;  %155 = vst [vmem:[%s1363_s27 + $0x10] sm:$0xff] (%p50_p4), %v154_v2  ;;  %v162_v6 = vld [vmem:[%s1355_s26 + $0x50] sm:$0xff] (%p50_p4)  ;;  %v164_v7 = vld [vmem:[%s1355_s26 + $0x58] sm:$0xff] (%p50_p4) }
  0x17   : > { %157 = vst [vmem:[%s1363_s27 + $0x18] sm:$0xff] (%p50_p4), %v156_v3  ;;  %159 = vst [vmem:[%s1363_s27 + $0x20] sm:$0xff] (%p50_p4), %v158_v4  ;;  %v166_v8 = vld [vmem:[%s1355_s26 + $0x80] sm:$0xff] (%p50_p4)  ;;  %v168_v9 = vld [vmem:[%s1355_s26 + $0x88] sm:$0xff] (%p50_p4) }
  0x18   : > { %161 = vst [vmem:[%s1363_s27 + $0x28] sm:$0xff] %v160_v5  ;;  %163 = vst [vmem:[%s1363_s27 + $0x30] sm:$0xff] %v162_v6  ;;  %v170_v10 = vld [vmem:[%s1355_s26 + $0x90] sm:$0xff]  ;;  %v172_v11 = vld [vmem:[%s1355_s26 + $0x98] sm:$0xff] }
  0x19   : > { %165 = vst [vmem:[%s1363_s27 + $0x38] sm:$0xff] %v164_v7  ;;  %167 = vst [vmem:[%s1363_s27 + $0x40] sm:$0xff] %v166_v8  ;;  %v174_v12 = vld [vmem:[%s1355_s26 + $0xc0] sm:$0xff]  ;;  %v176_v13 = vld [vmem:[%s1355_s26 + $0xc8] sm:$0xff] }
  0x1a   : > { %169 = vst [vmem:[%s1363_s27 + $0x48] sm:$0xff] %v168_v9  ;;  %171 = vst [vmem:[%s1363_s27 + $0x50] sm:$0xff] %v170_v10  ;;  %v178_v14 = vld [vmem:[%s1355_s26 + $0xd0] sm:$0xff]  ;;  %v180_v15 = vld [vmem:[%s1355_s26 + $0xd8] sm:$0xff] }
  0x1b   : > { %173 = vst [vmem:[%s1363_s27 + $0x58] sm:$0xff] %v172_v11  ;;  %175 = vst [vmem:[%s1363_s27 + $0x60] sm:$0xff] %v174_v12  ;;  %v182_v16 = vld [vmem:[%s1355_s26 + $0x100] sm:$0xff]  ;;  %v184_v17 = vld [vmem:[%s1355_s26 + $0x108] sm:$0xff] }
  0x1c   : > { %177 = vst [vmem:[%s1363_s27 + $0x68] sm:$0xff] %v176_v13  ;;  %179 = vst [vmem:[%s1363_s27 + $0x70] sm:$0xff] %v178_v14  ;;  %v186_v18 = vld [vmem:[%s1355_s26 + $0x110] sm:$0xff]  ;;  %v188_v19 = vld [vmem:[%s1355_s26 + $0x118] sm:$0xff] }
  0x1d   : > { %181 = vst [vmem:[%s1363_s27 + $0x78] sm:$0xff] %v180_v15  ;;  %183 = vst [vmem:[%s1363_s27 + $0x80] sm:$0xff] %v182_v16  ;;  %v190_v20 = vld [vmem:[%s1355_s26 + $0x140] sm:$0xff]  ;;  %v192_v21 = vld [vmem:[%s1355_s26 + $0x148] sm:$0xff] }
  0x1e   : > { %185 = vst [vmem:[%s1363_s27 + $0x88] sm:$0xff] %v184_v17  ;;  %187 = vst [vmem:[%s1363_s27 + $0x90] sm:$0xff] %v186_v18  ;;  %v194_v22 = vld [vmem:[%s1355_s26 + $0x150] sm:$0xff]  ;;  %v196_v23 = vld [vmem:[%s1355_s26 + $0x158] sm:$0xff] }
  0x1f   : > { %189 = vst [vmem:[%s1363_s27 + $0x98] sm:$0xff] %v188_v19  ;;  %191 = vst [vmem:[%s1363_s27 + $0xa0] sm:$0xff] %v190_v20  ;;  %v198_v24 = vld [vmem:[%s1355_s26 + $0x180] sm:$0xff]  ;;  %v200_v25 = vld [vmem:[%s1355_s26 + $0x188] sm:$0xff] }
  0x20   : > { %193 = vst [vmem:[%s1363_s27 + $0xa8] sm:$0xff] %v192_v21  ;;  %195 = vst [vmem:[%s1363_s27 + $0xb0] sm:$0xff] %v194_v22  ;;  %v202_v26 = vld [vmem:[%s1355_s26 + $0x190] sm:$0xff]  ;;  %v204_v27 = vld [vmem:[%s1355_s26 + $0x198] sm:$0xff] }
  0x21   : > { %197 = vst [vmem:[%s1363_s27 + $0xb8] sm:$0xff] %v196_v23  ;;  %199 = vst [vmem:[%s1363_s27 + $0xc0] sm:$0xff] %v198_v24  ;;  %v206_v28 = vld [vmem:[%s1355_s26 + $0x1c0] sm:$0xff]  ;;  %v208_v29 = vld [vmem:[%s1355_s26 + $0x1c8] sm:$0xff] }
  0x22   : > { %201 = vst [vmem:[%s1363_s27 + $0xc8] sm:$0xff] %v200_v25  ;;  %203 = vst [vmem:[%s1363_s27 + $0xd0] sm:$0xff] %v202_v26  ;;  %v210_v30 = vld [vmem:[%s1355_s26 + $0x1d0] sm:$0xff]  ;;  %v212_v31 = vld [vmem:[%s1355_s26 + $0x1d8] sm:$0xff] }
  0x23   : > { %205 = vst [vmem:[%s1363_s27 + $0xd8] sm:$0xff] %v204_v27  ;;  %207 = vst [vmem:[%s1363_s27 + $0xe0] sm:$0xff] %v206_v28  ;;  %v214_v32 = vld [vmem:[%s1355_s26 + $0x200] sm:$0xff]  ;;  %v216_v33 = vld [vmem:[%s1355_s26 + $0x208] sm:$0xff] }
  0x24   : > { %209 = vst [vmem:[%s1363_s27 + $0xe8] sm:$0xff] %v208_v29  ;;  %211 = vst [vmem:[%s1363_s27 + $0xf0] sm:$0xff] %v210_v30  ;;  %v218_v34 = vld [vmem:[%s1355_s26 + $0x210] sm:$0xff]  ;;  %v220_v35 = vld [vmem:[%s1355_s26 + $0x218] sm:$0xff] }
  0x25   : > { %213 = vst [vmem:[%s1363_s27 + $0xf8] sm:$0xff] %v212_v31  ;;  %215 = vst [vmem:[%s1363_s27 + $0x100] sm:$0xff] %v214_v32  ;;  %v222_v36 = vld [vmem:[%s1355_s26 + $0x240] sm:$0xff]  ;;  %v224_v37 = vld [vmem:[%s1355_s26 + $0x248] sm:$0xff] }
  0x26   : > { %217 = vst [vmem:[%s1363_s27 + $0x108] sm:$0xff] %v216_v33  ;;  %219 = vst [vmem:[%s1363_s27 + $0x110] sm:$0xff] %v218_v34  ;;  %v226_v38 = vld [vmem:[%s1355_s26 + $0x250] sm:$0xff]  ;;  %v228_v39 = vld [vmem:[%s1355_s26 + $0x258] sm:$0xff] }
  0x27   : > { %221 = vst [vmem:[%s1363_s27 + $0x118] sm:$0xff] %v220_v35  ;;  %223 = vst [vmem:[%s1363_s27 + $0x120] sm:$0xff] %v222_v36  ;;  %v230_v40 = vld [vmem:[%s1355_s26 + $0x280] sm:$0xff]  ;;  %v232_v41 = vld [vmem:[%s1355_s26 + $0x288] sm:$0xff] }
  0x28   : > { %225 = vst [vmem:[%s1363_s27 + $0x128] sm:$0xff] %v224_v37  ;;  %227 = vst [vmem:[%s1363_s27 + $0x130] sm:$0xff] %v226_v38  ;;  %v234_v42 = vld [vmem:[%s1355_s26 + $0x290] sm:$0xff]  ;;  %v236_v43 = vld [vmem:[%s1355_s26 + $0x298] sm:$0xff] }
  0x29   : > { %229 = vst [vmem:[%s1363_s27 + $0x138] sm:$0xff] %v228_v39  ;;  %231 = vst [vmem:[%s1363_s27 + $0x140] sm:$0xff] %v230_v40  ;;  %v238_v44 = vld [vmem:[%s1355_s26 + $0x2c0] sm:$0xff]  ;;  %v240_v45 = vld [vmem:[%s1355_s26 + $0x2c8] sm:$0xff] }
  0x2a   : > { %233 = vst [vmem:[%s1363_s27 + $0x148] sm:$0xff] %v232_v41  ;;  %235 = vst [vmem:[%s1363_s27 + $0x150] sm:$0xff] %v234_v42  ;;  %v242_v46 = vld [vmem:[%s1355_s26 + $0x2d0] sm:$0xff]  ;;  %v244_v47 = vld [vmem:[%s1355_s26 + $0x2d8] sm:$0xff] }
  0x2b   : > { %237 = vst [vmem:[%s1363_s27 + $0x158] sm:$0xff] %v236_v43  ;;  %239 = vst [vmem:[%s1363_s27 + $0x160] sm:$0xff] %v238_v44  ;;  %v246_v48 = vld [vmem:[%s1355_s26 + $0x300] sm:$0xff]  ;;  %v248_v49 = vld [vmem:[%s1355_s26 + $0x308] sm:$0xff] }
  0x2c   : > { %241 = vst [vmem:[%s1363_s27 + $0x168] sm:$0xff] %v240_v45  ;;  %243 = vst [vmem:[%s1363_s27 + $0x170] sm:$0xff] %v242_v46  ;;  %v250_v50 = vld [vmem:[%s1355_s26 + $0x310] sm:$0xff]  ;;  %v252_v51 = vld [vmem:[%s1355_s26 + $0x318] sm:$0xff] }
  0x2d   : > { %245 = vst [vmem:[%s1363_s27 + $0x178] sm:$0xff] %v244_v47  ;;  %247 = vst [vmem:[%s1363_s27 + $0x180] sm:$0xff] %v246_v48  ;;  %v254_v52 = vld [vmem:[%s1355_s26 + $0x340] sm:$0xff]  ;;  %v256_v53 = vld [vmem:[%s1355_s26 + $0x348] sm:$0xff] }
  0x2e   : > { %249 = vst [vmem:[%s1363_s27 + $0x188] sm:$0xff] %v248_v49  ;;  %251 = vst [vmem:[%s1363_s27 + $0x190] sm:$0xff] %v250_v50  ;;  %v258_v54 = vld [vmem:[%s1355_s26 + $0x350] sm:$0xff]  ;;  %v260_v55 = vld [vmem:[%s1355_s26 + $0x358] sm:$0xff] }
  0x2f   : > { %253 = vst [vmem:[%s1363_s27 + $0x198] sm:$0xff] %v252_v51  ;;  %255 = vst [vmem:[%s1363_s27 + $0x1a0] sm:$0xff] %v254_v52  ;;  %v262_v56 = vld [vmem:[%s1355_s26 + $0x380] sm:$0xff]  ;;  %v264_v57 = vld [vmem:[%s1355_s26 + $0x388] sm:$0xff] }
  0x30   : > { %257 = vst [vmem:[%s1363_s27 + $0x1a8] sm:$0xff] %v256_v53  ;;  %259 = vst [vmem:[%s1363_s27 + $0x1b0] sm:$0xff] %v258_v54  ;;  %v266_v58 = vld [vmem:[%s1355_s26 + $0x390] sm:$0xff]  ;;  %v268_v59 = vld [vmem:[%s1355_s26 + $0x398] sm:$0xff] }
  0x31   : > { %261 = vst [vmem:[%s1363_s27 + $0x1b8] sm:$0xff] %v260_v55  ;;  %263 = vst [vmem:[%s1363_s27 + $0x1c0] sm:$0xff] %v262_v56  ;;  %v270_v60 = vld [vmem:[%s1355_s26 + $0x3c0] sm:$0xff]  ;;  %v272_v61 = vld [vmem:[%s1355_s26 + $0x3c8] sm:$0xff] }
  0x32   : > { %265 = vst [vmem:[%s1363_s27 + $0x1c8] sm:$0xff] %v264_v57  ;;  %267 = vst [vmem:[%s1363_s27 + $0x1d0] sm:$0xff] %v266_v58  ;;  %v274_v62 = vld [vmem:[%s1355_s26 + $0x3d0] sm:$0xff]  ;;  %v276_v63 = vld [vmem:[%s1355_s26 + $0x3d8] sm:$0xff] }
  0x33   : > { %269 = vst [vmem:[%s1363_s27 + $0x1d8] sm:$0xff] %v268_v59  ;;  %271 = vst [vmem:[%s1363_s27 + $0x1e0] sm:$0xff] %v270_v60  ;;  %v278_v0 = vld [vmem:[%s1355_s26 + $0x400] sm:$0xff]  ;;  %v280_v1 = vld [vmem:[%s1355_s26 + $0x408] sm:$0xff] }
  0x34   : > { %273 = vst [vmem:[%s1363_s27 + $0x1e8] sm:$0xff] %v272_v61  ;;  %275 = vst [vmem:[%s1363_s27 + $0x1f0] sm:$0xff] %v274_v62  ;;  %v282_v2 = vld [vmem:[%s1355_s26 + $0x410] sm:$0xff]  ;;  %v284_v3 = vld [vmem:[%s1355_s26 + $0x418] sm:$0xff] }
  0x35   : > { %277 = vst [vmem:[%s1363_s27 + $0x1f8] sm:$0xff] %v276_v63  ;;  %279 = vst [vmem:[%s1363_s27 + $0x200] sm:$0xff] %v278_v0  ;;  %v286_v4 = vld [vmem:[%s1355_s26 + $0x440] sm:$0xff]  ;;  %v288_v5 = vld [vmem:[%s1355_s26 + $0x448] sm:$0xff] }
  0x36   : > { %281 = vst [vmem:[%s1363_s27 + $0x208] sm:$0xff] %v280_v1  ;;  %283 = vst [vmem:[%s1363_s27 + $0x210] sm:$0xff] %v282_v2  ;;  %v290_v6 = vld [vmem:[%s1355_s26 + $0x450] sm:$0xff]  ;;  %v292_v7 = vld [vmem:[%s1355_s26 + $0x458] sm:$0xff] }
  0x37   : > { %285 = vst [vmem:[%s1363_s27 + $0x218] sm:$0xff] %v284_v3  ;;  %287 = vst [vmem:[%s1363_s27 + $0x220] sm:$0xff] %v286_v4 }
  0x38   : > { %289 = vst [vmem:[%s1363_s27 + $0x228] sm:$0xff] %v288_v5  ;;  %291 = vst [vmem:[%s1363_s27 + $0x230] sm:$0xff] %v290_v6 }
  0x39   : > { %293 = vst [vmem:[%s1363_s27 + $0x238] sm:$0xff] %v292_v7 }
  0x3a PF: > { %p1136_p7 = scmp.ge.s32.totalorder %s1292_s14, 1  ;;  %p298_p8 = scmp.lt.s32.totalorder %s1292_s14, 3 }
  0x3c   : > { %p299_p9 = pnand %p1136_p7, %p298_p8 }
  0x3d   : > { %s305_s28 = sand.u32 (!%p299_p9), 1, %s1284_s12   ;;  %v1509_v8 = vld [vmem:[%s1647_s0 + $0x4] ss:$8 sps:$4 sm:$0xff] (!%p299_p9)   ;;  %vm785_vm0 = vcmask (!%p299_p9), 130048   ;;  %v1294_v10 = vmov (!%p299_p9), 0  }
  0x3e   : > { %302 = sbr.rel (%p299_p9) target bundleno = 372 (0x174), region = 51  ;;  %v404_v9 = vld [vmem:[%s1649_s2] sm:$0xff] (!%p299_p9)  ;;  %1212 = vmatprep.mubr.msk.bf16.mxu0 (!%p299_p9), %vm785_vm0, %v1509_v8  ;;  %1213 = vmatprep.mubr.msk.bf16.mxu1 (!%p299_p9), %vm785_vm0, %v1509_v8  ;;  %v405_v30 = vld [vmem:[%s1649_s2 + $0x8] sm:$0xff] (!%p299_p9)  ;;  %s1137_s17 = sshll.u32 (!%p299_p9), %s305_s28, 6 }
  0x3f   : > { %s1240_s4 = smul.u32 (!%p299_p9), 576, %s305_s28  ;;  %1266 = vset.pattern.permute.xlu0 (!%p299_p9), %v1294_v10  ;;  %s1612_s12 = scalar_lea.vmem (!%p299_p9), [#allocation3], %s1137_s17 }
  0x40   : > { %408 = vperm.xlu0 (!%p299_p9), %1266, %v404_v9  }
  0x41   : > { %s1520_s7 = scalar_lea.vmem (!%p299_p9), [#allocation2], %s1240_s4 }
  0x42   : > { %v332_v11 = vld [vmem:[%s1520_s7] sm:$0xff] (!%p299_p9)  ;;  %v333_v13 = vld [vmem:[%s1520_s7 + $0x8] sm:$0xff] (!%p299_p9) }
  0x43   : > { %v336_v12 = vld [vmem:[%s1520_s7 + $0x20] sm:$0xff] (!%p299_p9)  ;;  %v337_v15 = vld [vmem:[%s1520_s7 + $0x28] sm:$0xff] (!%p299_p9) }
  0x44   : > { %v1141_v14 = vcombine.high (!%p299_p9), %v332_v11, %v336_v12  ;;  %v1140_v16 = vcombine.low (!%p299_p9), %v332_v11, %v336_v12  ;;  %v340_v17 = vld [vmem:[%s1520_s7 + $0x40] sm:$0xff] (!%p299_p9)  ;;  %v1143_v19 = vcombine.high (!%p299_p9), %v333_v13, %v337_v15  ;;  %v1142_v20 = vcombine.low (!%p299_p9), %v333_v13, %v337_v15  ;;  %v341_v22 = vld [vmem:[%s1520_s7 + $0x48] sm:$0xff] (!%p299_p9)  ;;  %413 = vperm.xlu0 (!%p299_p9), %1266, %v405_v30   ;;  %v343_v30 = vld [vmem:[%s1520_s7 + $0x58] sm:$0xff] (!%p299_p9) }
  0x45   : > { %v344_v18 = vld [vmem:[%s1520_s7 + $0x60] sm:$0xff]  ;;  %v345_v23 = vld [vmem:[%s1520_s7 + $0x68] sm:$0xff]  ;;  %s1238_s18 = sshll.u32 (%p1345_p5), %s1130_s15, 5 }
  0x46   : > { %v1149_v21 = vcombine.high %v340_v17, %v344_v18  ;;  %v348_v24 = vld [vmem:[%s1520_s7 + $0x80] sm:$0xff]  ;;  %789 = vmatprep.subr.bf16.mxu0 %v1141_v14  ;;  %v1151_v25 = vcombine.high %v341_v22, %v345_v23  ;;  %v349_v27 = vld [vmem:[%s1520_s7 + $0x88] sm:$0xff]  ;;  %832 = vmatprep.subr.bf16.mxu1 %v1143_v19  ;;  %v1148_v29 = vcombine.low %v340_v17, %v344_v18  ;;  %v334_v19 = vld [vmem:[%s1520_s7 + $0x10] sm:$0xff]  ;;  %s1042_s23 = scalar_lea.vmem (%p1345_p5), %s1650_s3, %s1238_s18 }
  0x47   : > { %v352_v26 = vld [vmem:[%s1520_s7 + $0xa0] sm:$0xff]  ;;  %v353_v28 = vld [vmem:[%s1520_s7 + $0xa8] sm:$0xff]  ;;  %790 = vmatpush1.bf16.msra.mxu0 %v1140_v16  ;;  %833 = vmatpush1.bf16.msra.mxu1 %v1142_v20  ;;  %v1150_v31 = vcombine.low %v341_v22, %v345_v23  ;;  %v338_v20 = vld [vmem:[%s1520_s7 + $0x30] sm:$0xff] }
  0x48   : > { %791 = vmatprep.subr.bf16.mxu0 %v1149_v21  ;;  %v1157_v32 = vcombine.high %v348_v24, %v352_v26  ;;  %834 = vmatprep.subr.bf16.mxu1 %v1151_v25  ;;  %v1159_v33 = vcombine.high %v349_v27, %v353_v28  ;;  %v356_v34 = vld [vmem:[%s1520_s7 + $0xc0] sm:$0xff]  ;;  %v357_v36 = vld [vmem:[%s1520_s7 + $0xc8] sm:$0xff]  ;;  %v1156_v38 = vcombine.low %v348_v24, %v352_v26  ;;  %v335_v21 = vld [vmem:[%s1520_s7 + $0x18] sm:$0xff] }
  0x49   : > { %v360_v35 = vld [vmem:[%s1520_s7 + $0xe0] sm:$0xff]  ;;  %v361_v37 = vld [vmem:[%s1520_s7 + $0xe8] sm:$0xff]  ;;  %v1158_v39 = vcombine.low %v349_v27, %v353_v28  ;;  %v339_v22 = vld [vmem:[%s1520_s7 + $0x38] sm:$0xff]  ;;  %v1145_v25 = vcombine.high %v334_v19, %v338_v20 }
  0x4a   : > { %v1165_v40 = vcombine.high %v356_v34, %v360_v35  ;;  %v1167_v41 = vcombine.high %v357_v36, %v361_v37  ;;  %v364_v42 = vld [vmem:[%s1520_s7 + $0x100] sm:$0xff]  ;;  %v365_v44 = vld [vmem:[%s1520_s7 + $0x108] sm:$0xff]  ;;  %v1164_v46 = vcombine.low %v356_v34, %v360_v35  ;;  %v1166_v47 = vcombine.low %v357_v36, %v361_v37  ;;  %v342_v27 = vld [vmem:[%s1520_s7 + $0x50] sm:$0xff] }
  0x4b   : > { %792 = vmatpush1.bf16.msra.mxu0 %v1148_v29  ;;  %835 = vmatpush1.bf16.msra.mxu1 %v1150_v31  ;;  %v368_v43 = vld [vmem:[%s1520_s7 + $0x120] sm:$0xff]  ;;  %v369_v45 = vld [vmem:[%s1520_s7 + $0x128] sm:$0xff]  ;;  %v1147_v26 = vcombine.high %v335_v21, %v339_v22  ;;  %v346_v28 = vld [vmem:[%s1520_s7 + $0x70] sm:$0xff] }
  0x4c   : > { %793 = vmatprep.subr.bf16.mxu0 %v1157_v32  ;;  %836 = vmatprep.subr.bf16.mxu1 %v1159_v33  ;;  %v1173_v48 = vcombine.high %v364_v42, %v368_v43  ;;  %v1175_v49 = vcombine.high %v365_v44, %v369_v45  ;;  %v372_v50 = vld [vmem:[%s1520_s7 + $0x140] sm:$0xff]  ;;  %v373_v52 = vld [vmem:[%s1520_s7 + $0x148] sm:$0xff]  ;;  %v1172_v54 = vcombine.low %v364_v42, %v368_v43  ;;  %v347_v31 = vld [vmem:[%s1520_s7 + $0x78] sm:$0xff] }
  0x4d   : > { %v376_v51 = vld [vmem:[%s1520_s7 + $0x160] sm:$0xff]  ;;  %v377_v53 = vld [vmem:[%s1520_s7 + $0x168] sm:$0xff]  ;;  %v1174_v55 = vcombine.low %v365_v44, %v369_v45  ;;  %v1144_v32 = vcombine.low %v334_v19, %v338_v20  ;;  %v1146_v33 = vcombine.low %v335_v21, %v339_v22  ;;  %v1153_v34 = vcombine.high %v342_v27, %v346_v28  ;;  %v350_v36 = vld [vmem:[%s1520_s7 + $0x90] sm:$0xff] }
  0x4e   : > { %v1181_v56 = vcombine.high %v372_v50, %v376_v51  ;;  %v1183_v57 = vcombine.high %v373_v52, %v377_v53  ;;  %v380_v58 = vld [vmem:[%s1520_s7 + $0x180] sm:$0xff]  ;;  %v381_v60 = vld [vmem:[%s1520_s7 + $0x188] sm:$0xff]  ;;  %v1180_v62 = vcombine.low %v372_v50, %v376_v51  ;;  %v1182_v63 = vcombine.low %v373_v52, %v377_v53  ;;  %v354_v37 = vld [vmem:[%s1520_s7 + $0xb0] sm:$0xff] }
  0x4f   : > { %794 = vmatpush1.bf16.msra.mxu0 %v1156_v38  ;;  %837 = vmatpush1.bf16.msra.mxu1 %v1158_v39  ;;  %v384_v59 = vld [vmem:[%s1520_s7 + $0x1a0] sm:$0xff]  ;;  %v385_v61 = vld [vmem:[%s1520_s7 + $0x1a8] sm:$0xff]  ;;  %v1155_v35 = vcombine.high %v343_v30, %v347_v31  ;;  %v351_v38 = vld [vmem:[%s1520_s7 + $0x98] sm:$0xff]  ;;  %v1161_v42 = vcombine.high %v350_v36, %v354_v37 }
  0x50   : > { %795 = vmatprep.subr.bf16.mxu0 %v1165_v40  ;;  %838 = vmatprep.subr.bf16.mxu1 %v1167_v41  ;;  %v1189_v0 = vcombine.high %v380_v58, %v384_v59  ;;  %v1191_v1 = vcombine.high %v381_v60, %v385_v61  ;;  %v388_v2 = vld [vmem:[%s1520_s7 + $0x1c0] sm:$0xff]  ;;  %v389_v4 = vld [vmem:[%s1520_s7 + $0x1c8] sm:$0xff]  ;;  %v1188_v6 = vcombine.low %v380_v58, %v384_v59  ;;  %v355_v39 = vld [vmem:[%s1520_s7 + $0xb8] sm:$0xff] }
  0x51   : > { %v392_v3 = vld [vmem:[%s1520_s7 + $0x1e0] sm:$0xff]  ;;  %v393_v5 = vld [vmem:[%s1520_s7 + $0x1e8] sm:$0xff]  ;;  %v1190_v7 = vcombine.low %v381_v60, %v385_v61  ;;  %v1152_v40 = vcombine.low %v342_v27, %v346_v28  ;;  %v1154_v41 = vcombine.low %v343_v30, %v347_v31  ;;  %v1163_v43 = vcombine.high %v351_v38, %v355_v39  ;;  %v358_v44 = vld [vmem:[%s1520_s7 + $0xd0] sm:$0xff] }
  0x52   : > { %v1197_v9 = vcombine.high %v388_v2, %v392_v3  ;;  %v1199_v10 = vcombine.high %v389_v4, %v393_v5  ;;  %v396_v11 = vld [vmem:[%s1520_s7 + $0x200] sm:$0xff]  ;;  %v397_v13 = vld [vmem:[%s1520_s7 + $0x208] sm:$0xff]  ;;  %v1196_v15 = vcombine.low %v388_v2, %v392_v3  ;;  %v1198_v16 = vcombine.low %v389_v4, %v393_v5  ;;  %v362_v45 = vld [vmem:[%s1520_s7 + $0xf0] sm:$0xff] }
  0x53   : > { %796 = vmatpush1.bf16.msra.mxu0 %v1164_v46  ;;  %839 = vmatpush1.bf16.msra.mxu1 %v1166_v47  ;;  %v400_v12 = vld [vmem:[%s1520_s7 + $0x220] sm:$0xff]  ;;  %v401_v14 = vld [vmem:[%s1520_s7 + $0x228] sm:$0xff]  ;;  %v359_v46 = vld [vmem:[%s1520_s7 + $0xd8] sm:$0xff]  ;;  %v1169_v50 = vcombine.high %v358_v44, %v362_v45 }
  0x54   : > { %797 = vmatprep.subr.bf16.mxu0 %v1173_v48  ;;  %840 = vmatprep.subr.bf16.mxu1 %v1175_v49  ;;  %v1205_v17 = vcombine.high %v396_v11, %v400_v12  ;;  %v1207_v18 = vcombine.high %v397_v13, %v401_v14  ;;  %v1204_v23 = vcombine.low %v396_v11, %v400_v12  ;;  %v1570_v29 = vld [vmem:[%s1647_s0] ss:$8 sps:$4 sm:$0xff]   ;;  %v363_v47 = vld [vmem:[%s1520_s7 + $0xf8] sm:$0xff]  ;;  %v366_v52 = vld [vmem:[%s1520_s7 + $0x110] sm:$0xff] }
  0x55   : > { %v1206_v24 = vcombine.low %v397_v13, %v401_v14  ;;  %v1160_v48 = vcombine.low %v350_v36, %v354_v37  ;;  %v1162_v49 = vcombine.low %v351_v38, %v355_v39  ;;  %v1171_v51 = vcombine.high %v359_v46, %v363_v47  ;;  %v370_v53 = vld [vmem:[%s1520_s7 + $0x130] sm:$0xff]  ;;  %v375_v61 = vld [vmem:[%s1520_s7 + $0x158] sm:$0xff] }
  0x56   : > { %v374_v59 = vld [vmem:[%s1520_s7 + $0x150] sm:$0xff]  ;;  %v383_v5 = vld [vmem:[%s1520_s7 + $0x198] sm:$0xff] }
  0x57   : > { %798 = vmatpush1.bf16.msra.mxu0 %v1172_v54  ;;  %841 = vmatpush1.bf16.msra.mxu1 %v1174_v55  ;;  %v367_v54 = vld [vmem:[%s1520_s7 + $0x118] sm:$0xff]  ;;  %v378_v60 = vld [vmem:[%s1520_s7 + $0x170] sm:$0xff] }
  0x58   : > { %799 = vmatprep.subr.bf16.mxu0 %v1181_v56  ;;  %842 = vmatprep.subr.bf16.mxu1 %v1183_v57  ;;  %v371_v55 = vld [vmem:[%s1520_s7 + $0x138] sm:$0xff]  ;;  %v1168_v56 = vcombine.low %v358_v44, %v362_v45  ;;  %v1177_v57 = vcombine.high %v366_v52, %v370_v53  ;;  %v382_v3 = vld [vmem:[%s1520_s7 + $0x190] sm:$0xff] }
  0x59   : > { %v1179_v58 = vcombine.high %v367_v54, %v371_v55  ;;  %v386_v4 = vld [vmem:[%s1520_s7 + $0x1b0] sm:$0xff]  ;;  %v391_v14 = vld [vmem:[%s1520_s7 + $0x1d8] sm:$0xff] }
  0x5a   : > { %v390_v12 = vld [vmem:[%s1520_s7 + $0x1d0] sm:$0xff]  ;;  %v399_v22 = vld [vmem:[%s1520_s7 + $0x218] sm:$0xff] }
  0x5b   : > { %800 = vmatpush1.bf16.msra.mxu0 %v1180_v62  ;;  %843 = vmatpush1.bf16.msra.mxu1 %v1182_v63  ;;  %v379_v62 = vld [vmem:[%s1520_s7 + $0x178] sm:$0xff]  ;;  %v1176_v63 = vcombine.low %v366_v52, %v370_v53  ;;  %v394_v13 = vld [vmem:[%s1520_s7 + $0x1f0] sm:$0xff] }
  0x5c   : > { %801 = vmatprep.subr.bf16.mxu0 %v1189_v0  ;;  %844 = vmatprep.subr.bf16.mxu1 %v1191_v1  ;;  %v1178_v0 = vcombine.low %v367_v54, %v371_v55  ;;  %v1185_v1 = vcombine.high %v374_v59, %v378_v60  ;;  %v1187_v2 = vcombine.high %v375_v61, %v379_v62  ;;  %v398_v20 = vld [vmem:[%s1520_s7 + $0x210] sm:$0xff] }
  0x5d   : > { %v402_v21 = vld [vmem:[%s1520_s7 + $0x230] sm:$0xff] }
  0x5e   : > { %v1208_v28 = vcombine.low %v398_v20, %v402_v21 }
  0x5f   : > { %802 = vmatpush1.bf16.msra.mxu0 %v1188_v6  ;;  %845 = vmatpush1.bf16.msra.mxu1 %v1190_v7  ;;  %v387_v6 = vld [vmem:[%s1520_s7 + $0x1b8] sm:$0xff]  ;;  %v1184_v7 = vcombine.low %v374_v59, %v378_v60 }
  0x60   : > { %803 = vmatprep.subr.bf16.mxu0 %v1197_v9  ;;  %846 = vmatprep.subr.bf16.mxu1 %v1199_v10  ;;  %v1186_v9 = vcombine.low %v375_v61, %v379_v62  ;;  %v1193_v10 = vcombine.high %v382_v3, %v386_v4  ;;  %v1195_v11 = vcombine.high %v383_v5, %v387_v6 }
  0x63   : > { %804 = vmatpush1.bf16.msra.mxu0 %v1196_v15  ;;  %847 = vmatpush1.bf16.msra.mxu1 %v1198_v16  ;;  %v395_v15 = vld [vmem:[%s1520_s7 + $0x1f8] sm:$0xff]  ;;  %v1192_v16 = vcombine.low %v382_v3, %v386_v4 }
  0x64   : > { %805 = vmatprep.subr.bf16.mxu0 %v1205_v17  ;;  %848 = vmatprep.subr.bf16.mxu1 %v1207_v18  ;;  %v1194_v17 = vcombine.low %v383_v5, %v387_v6  ;;  %v1201_v18 = vcombine.high %v390_v12, %v394_v13  ;;  %v1203_v19 = vcombine.high %v391_v14, %v395_v15 }
  0x67   : > { %806 = vmatpush1.bf16.msra.mxu0 %v1204_v23  ;;  %849 = vmatpush1.bf16.msra.mxu1 %v1206_v24  ;;  %v403_v23 = vld [vmem:[%s1520_s7 + $0x238] sm:$0xff]  ;;  %v1200_v24 = vcombine.low %v390_v12, %v394_v13 }
  0x68   : > { %875 = vmatprep.subr.bf16.mxu0 %v1145_v25  ;;  %918 = vmatprep.subr.bf16.mxu1 %v1147_v26  ;;  %v1202_v25 = vcombine.low %v391_v14, %v395_v15  ;;  %v1209_v26 = vcombine.high %v398_v20, %v402_v21  ;;  %v1211_v27 = vcombine.high %v399_v22, %v403_v23 }
  0x69   : > { %v1210_v30 = vcombine.low %v399_v22, %v403_v23 }
  0x6a   : > { %822 = vmatmul.mubr.bf16.vlgmr.msra.gmra.mrb[0].mxu0 %v1570_v29  ;;  %865 = vmatmul.mubr.bf16.vlgmr.msra.gmra.mrb[0].mxu1 %v1570_v29 }
  0x6b   : > { %876 = vmatpush1.bf16.msra.mxu0 %v1144_v32  ;;  %919 = vmatpush1.bf16.msra.mxu1 %v1146_v33 }
  0x6c   : > { %877 = vmatprep.subr.bf16.mxu0 %v1153_v34  ;;  %920 = vmatprep.subr.bf16.mxu1 %v1155_v35 }
  0x6d   : > { %1214 = vmatprep.mubr.msk.bf16.mxu0 %vm785_vm0, %v1509_v8  ;;  %1215 = vmatprep.mubr.msk.bf16.mxu1 %vm785_vm0, %v1509_v8  ;;  %v1170_v8 = vcombine.low %v359_v46, %v363_v47 }
  0x6f   : > { %878 = vmatpush1.bf16.msra.mxu0 %v1152_v40  ;;  %921 = vmatpush1.bf16.msra.mxu1 %v1154_v41 }
  0x70   : > { %879 = vmatprep.subr.bf16.mxu0 %v1161_v42  ;;  %922 = vmatprep.subr.bf16.mxu1 %v1163_v43 }
  0x73   : > { %880 = vmatpush1.bf16.msra.mxu0 %v1160_v48  ;;  %923 = vmatpush1.bf16.msra.mxu1 %v1162_v49 }
  0x74   : > { %881 = vmatprep.subr.bf16.mxu0 %v1169_v50  ;;  %924 = vmatprep.subr.bf16.mxu1 %v1171_v51 }
  0x77   : > { %882 = vmatpush1.bf16.msra.mxu0 %v1168_v56  ;;  %925 = vmatpush1.bf16.msra.mxu1 %v1170_v8 }
  0x78   : > { %883 = vmatprep.subr.bf16.mxu0 %v1177_v57  ;;  %926 = vmatprep.subr.bf16.mxu1 %v1179_v58 }
  0x7b   : > { %884 = vmatpush1.bf16.msra.mxu0 %v1176_v63  ;;  %927 = vmatpush1.bf16.msra.mxu1 %v1178_v0 }
  0x7c   : > { %885 = vmatprep.subr.bf16.mxu0 %v1185_v1  ;;  %928 = vmatprep.subr.bf16.mxu1 %v1187_v2 }
  0x7f   : > { %886 = vmatpush1.bf16.msra.mxu0 %v1184_v7  ;;  %929 = vmatpush1.bf16.msra.mxu1 %v1186_v9 }
  0x80   : > { %887 = vmatprep.subr.bf16.mxu0 %v1193_v10  ;;  %930 = vmatprep.subr.bf16.mxu1 %v1195_v11 }
  0x83   : > { %888 = vmatpush1.bf16.msra.mxu0 %v1192_v16  ;;  %931 = vmatpush1.bf16.msra.mxu1 %v1194_v17 }
  0x84   : > { %889 = vmatprep.subr.bf16.mxu0 %v1201_v18  ;;  %932 = vmatprep.subr.bf16.mxu1 %v1203_v19 }
  0x87   : > { %890 = vmatpush1.bf16.msra.mxu0 %v1200_v24  ;;  %933 = vmatpush1.bf16.msra.mxu1 %v1202_v25 }
  0x88   : > { %891 = vmatprep.subr.bf16.mxu0 %v1209_v26  ;;  %934 = vmatprep.subr.bf16.mxu1 %v1211_v27 }
  0x8b   : > { %892 = vmatpush1.bf16.msra.mxu0 %v1208_v28  ;;  %935 = vmatpush1.bf16.msra.mxu1 %v1210_v30 }
  0x8e   : > { %908 = vmatmul.mubr.bf16.vlgmr.msra.gmra.mrb[4].mxu0 %v1570_v29  ;;  %951 = vmatmul.mubr.bf16.vlgmr.msra.gmra.mrb[4].mxu1 %v1570_v29 }
  0xbf   : > { %v409_v31 = vpop.permute.xlu0 %408 }
  0xc3   : > { %v414_v33 = vpop.permute.xlu0 %413 }
 0x13d   : > { %v823_v32 = vpop.f32.mrb[0].mxu0  ;;  %v866_v35 = vpop.f32.mrb[0].mxu1 }
 0x13e   : > { %v824_v34 = vadd.f32 %v823_v32, %v409_v31  ;;  %v825_v36 = vpop.f32.mrb[1].mxu0  ;;  %v867_v37 = vadd.f32 %v866_v35, %v409_v31  ;;  %v868_v39 = vpop.f32.mrb[1].mxu1 }
 0x13f   : > { %v826_v38 = vadd.f32 %v825_v36, %v409_v31  ;;  %v827_v40 = vpop.f32.mrb[2].mxu0  ;;  %v869_v42 = vadd.f32 %v868_v39, %v409_v31  ;;  %v870_v44 = vpop.f32.mrb[2].mxu1 }
 0x140   : > { %v961_v41 = vmax.f32 %v824_v34, 0.0  ;;  %v828_v43 = vadd.f32 %v827_v40, %v414_v33  ;;  %v829_v45 = vpop.f32.mrb[3].mxu0  ;;  %v963_v46 = vmax.f32 %v867_v37, 0.0  ;;  %v871_v29 = vadd.f32 %v870_v44, %v414_v33  ;;  %v872_v49 = vpop.f32.mrb[3].mxu1 }
 0x141   : > { %v962_v47 = vmax.f32 %v826_v38, 0.0  ;;  %v830_v48 = vadd.f32 %v829_v45, %v414_v33  ;;  %v964_v50 = vmax.f32 %v869_v42, 0.0  ;;  %v873_v52 = vadd.f32 %v872_v49, %v414_v33 }
 0x142   : > { %v969_v51 = vmax.f32 %v828_v43, 0.0  ;;  %v971_v54 = vmax.f32 %v871_v29, 0.0 }
 0x143   : > { %v1230_v53 = vpack.c.bf16 %v962_v47, %v961_v41  ;;  %v970_v55 = vmax.f32 %v830_v48, 0.0  ;;  %v1231_v56 = vpack.c.bf16 %v964_v50, %v963_v46  ;;  %v972_v8 = vmax.f32 %v873_v52, 0.0 }
 0x145   : > { %1025 = vst [vmem:[%s1612_s12] sm:$0xff] %v1230_v53  ;;  %v1234_v57 = vpack.c.bf16 %v970_v55, %v969_v51  ;;  %1026 = vst [vmem:[%s1612_s12 + $0x8] sm:$0xff] %v1231_v56  ;;  %v1235_v58 = vpack.c.bf16 %v972_v8, %v971_v54 }
 0x147   : > { %1029 = vst [vmem:[%s1612_s12 + $0x20] sm:$0xff] %v1234_v57  ;;  %1030 = vst [vmem:[%s1612_s12 + $0x28] sm:$0xff] %v1235_v58 }
 0x14c   : > { %v1055_v24 = vld [vmem:[%s1612_s12] sm:$0xff] (%p1345_p5)  ;;  %v1057_v25 = vld [vmem:[%s1612_s12 + $0x8] sm:$0xff] (%p1345_p5) }
 0x14d   : > { %1056 = vst [vmem:[%s1042_s23] sm:$0xff] (%p1345_p5), %v1055_v24  ;;  %1058 = vst [vmem:[%s1042_s23 + $0x8] sm:$0xff] (%p1345_p5), %v1057_v25 }
 0x14e   : > { %v1063_v28 = vld [vmem:[%s1612_s12 + $0x20] sm:$0xff] (%p1345_p5)  ;;  %v1065_v30 = vld [vmem:[%s1612_s12 + $0x28] sm:$0xff] (%p1345_p5) }
 0x14f   : > { %1064 = vst [vmem:[%s1042_s23 + $0x40] sm:$0xff] (%p1345_p5), %v1063_v28  ;;  %1066 = vst [vmem:[%s1042_s23 + $0x48] sm:$0xff] (%p1345_p5), %v1065_v30 }
 0x161   : > { %v909_v59 = vpop.f32.mrb[4].mxu0  ;;  %v952_v61 = vpop.f32.mrb[4].mxu1 }
 0x162   : > { %v910_v60 = vadd.f32 %v909_v59, %v409_v31  ;;  %v911_v62 = vpop.f32.mrb[5].mxu0  ;;  %v953_v63 = vadd.f32 %v952_v61, %v409_v31  ;;  %v954_v1 = vpop.f32.mrb[5].mxu1 }
 0x163   : > { %v912_v0 = vadd.f32 %v911_v62, %v409_v31  ;;  %v913_v2 = vpop.f32.mrb[6].mxu0  ;;  %v955_v4 = vadd.f32 %v954_v1, %v409_v31  ;;  %v956_v6 = vpop.f32.mrb[6].mxu1 }
 0x164   : > { %v965_v3 = vmax.f32 %v910_v60, 0.0  ;;  %v914_v5 = vadd.f32 %v913_v2, %v414_v33  ;;  %v915_v7 = vpop.f32.mrb[7].mxu0  ;;  %v967_v9 = vmax.f32 %v953_v63, 0.0  ;;  %v957_v11 = vadd.f32 %v956_v6, %v414_v33  ;;  %v958_v13 = vpop.f32.mrb[7].mxu1 }
 0x165   : > { %v966_v10 = vmax.f32 %v912_v0, 0.0  ;;  %v916_v12 = vadd.f32 %v915_v7, %v414_v33  ;;  %v968_v14 = vmax.f32 %v955_v4, 0.0  ;;  %v959_v16 = vadd.f32 %v958_v13, %v414_v33  ;;  %1039 = sbr.rel (!%p1345_p5) target bundleno = 372 (0x174), region = 59 }
 0x166   : > { %v973_v15 = vmax.f32 %v914_v5, 0.0  ;;  %v975_v18 = vmax.f32 %v957_v11, 0.0 }
 0x167   : > { %v1232_v17 = vpack.c.bf16 %v966_v10, %v965_v3  ;;  %v974_v19 = vmax.f32 %v916_v12, 0.0  ;;  %v1233_v20 = vpack.c.bf16 %v968_v14, %v967_v9  ;;  %v976_v21 = vmax.f32 %v959_v16, 0.0 }
 0x169   : > { %1027 = vst [vmem:[%s1612_s12 + $0x10] sm:$0xff] %v1232_v17  ;;  %v1236_v22 = vpack.c.bf16 %v974_v19, %v973_v15  ;;  %1028 = vst [vmem:[%s1612_s12 + $0x18] sm:$0xff] %v1233_v20  ;;  %v1237_v23 = vpack.c.bf16 %v976_v21, %v975_v18 }
 0x16b   : > { %1031 = vst [vmem:[%s1612_s12 + $0x30] sm:$0xff] %v1236_v22  ;;  %1032 = vst [vmem:[%s1612_s12 + $0x38] sm:$0xff] %v1237_v23 }
 0x170   : > { %v1059_v26 = vld [vmem:[%s1612_s12 + $0x10] sm:$0xff]  ;;  %v1061_v27 = vld [vmem:[%s1612_s12 + $0x18] sm:$0xff] }
 0x171   : > { %1060 = vst [vmem:[%s1042_s23 + $0x10] sm:$0xff] %v1059_v26  ;;  %1062 = vst [vmem:[%s1042_s23 + $0x18] sm:$0xff] %v1061_v27 }
 0x172   : > { %v1067_v31 = vld [vmem:[%s1612_s12 + $0x30] sm:$0xff]  ;;  %v1069_v32 = vld [vmem:[%s1612_s12 + $0x38] sm:$0xff] }
 0x173   : > { %1068 = vst [vmem:[%s1042_s23 + $0x50] sm:$0xff] %v1067_v31  ;;  %1070 = vst [vmem:[%s1042_s23 + $0x58] sm:$0xff] %v1069_v32 }
 0x174 PF: > { %p10_p10 = scmp.ge.s32.totalorder %s1332_s16, 4   ;;  %s1652_s12 = smov %s1288_s13 }
 0x175   : > { %s1653_s13 = smov %s1343_s19  ;;  %s1654_s14 = smov %s1332_s16 }
 0x176   :  { %12 = sbr.rel (!%p10_p10) target bundleno = 2 (0x2), region = 113 }

// kernel: resnet20_forward.21
= control target key start
LH: loop header
LB: loop body
LE: loop exit
PB: predicated region body
PF: predicated region fallthrough
CT: control target
= control target key end

     0   :  { %s1465_s15 = smov 0   ;;  %s1467_s16 = smov 0   ;;  %s1844_s0 = inlined_call_operand.vmem [shape: bf16[16,144], index: 0, kind: input, shape index: {}]   ;;  %s1845_s1 = inlined_call_operand.vmem [shape: bf16[144,2048], index: 1, kind: input, shape index: {}]   ;;  %s1846_s2 = inlined_call_operand.vmem [shape: f32[16,1], index: 2, kind: input, shape index: {}]   ;;  %s1847_s3 = inlined_call_operand.vmem [shape: bf16[16,2048], index: 3, kind: input, shape index: {}]   ;;  %s1848_s4 = inlined_call_operand.vmem [shape: bf16[16,2048], index: 4, kind: output, shape index: {}]  }
   0x1   :  { %s1469_s17 = smov 0  }
   0x2 LB: > { %s1270_s18 = sadd.s32 4294967295, %s1437_s17   ;;  %s1482_s19 = sadd.s32 1, %s1437_s17   ;;  %s1437_s17 = sphi %s1469_s17, %s1853_s17   ;;  %s1433_s16 = sphi %s1467_s16, %s1852_s16   ;;  %s1429_s15 = sphi %s1465_s15, %s1851_s15  }
   0x3   : > { %s39_s20 = ssub.s32 %s1437_s17, %s1482_s19  ;;  %s42_s21 = sadd.s32 1, %s1433_s16 }
   0x4   : > { %p40_p0 = scmp.eq.s32.totalorder %s39_s20, 0  ;;  %p49_p1 = scmp.ne.s32.totalorder %s1433_s16, %s1429_s15 }
   0x5   : > { %p50_p2 = scmp.eq.s32.totalorder %s1437_s17, 0  ;;  %p126_p3 = scmp.eq.s32.totalorder %s1270_s18, 1 }
   0x6   : > { %s1493_s22 = scalar_select %p40_p0, %s1433_s16, %s42_s21  }
   0x7   : > { %p1495_p4 = por %p50_p2, %p49_p1  ;;  %p1499_p5 = por %p126_p3, %p49_p1 }
   0x8   : > { %p1273_p6 = scmp.ge.s32.totalorder %s1437_s17, 2 }
   0xa   : > { %154 = sbr.rel (%p1273_p6) target bundleno = 66 (0x42), region = 24 }
  0x11   : > { %157 = sbr.rel (!%p1495_p4) target bundleno = 58 (0x3a), region = 28  ;;  %s159_s25 = sand.u32 (%p1495_p4), 1, %s1433_s16  }
  0x12   : > { %s1373_s26 = sshll.u32 (%p1495_p4), %s1437_s17, 5  ;;  %s1384_s27 = smul.u32 (%p1495_p4), 576, %s159_s25 }
  0x13   : > { %s1511_s30 = scalar_lea.vmem (%p1495_p4), %s1845_s1, %s1373_s26 }
  0x14   : > { %v177_v0 = vld [vmem:[%s1511_s30] sm:$0xff] (%p1495_p4)  ;;  %v179_v1 = vld [vmem:[%s1511_s30 + $0x8] sm:$0xff] (%p1495_p4)  ;;  %v181_v2 = vld [vmem:[%s1511_s30 + $0x10] sm:$0xff] (%p1495_p4)  ;;  %s1519_s5 = scalar_lea.vmem (%p1495_p4), [#allocation2], %s1384_s27 }
  0x15   : > { %v183_v3 = vld [vmem:[%s1511_s30 + $0x18] sm:$0xff] (%p1495_p4)  ;;  %v185_v4 = vld [vmem:[%s1511_s30 + $0x40] sm:$0xff] (%p1495_p4)  ;;  %v187_v5 = vld [vmem:[%s1511_s30 + $0x48] sm:$0xff] (%p1495_p4)  ;;  %178 = vst [vmem:[%s1519_s5] sm:$0xff] (%p1495_p4), %v177_v0 }
  0x16   : > { %180 = vst [vmem:[%s1519_s5 + $0x8] sm:$0xff] (%p1495_p4), %v179_v1  ;;  %182 = vst [vmem:[%s1519_s5 + $0x10] sm:$0xff] (%p1495_p4), %v181_v2  ;;  %v189_v6 = vld [vmem:[%s1511_s30 + $0x50] sm:$0xff] (%p1495_p4)  ;;  %v191_v7 = vld [vmem:[%s1511_s30 + $0x58] sm:$0xff] (%p1495_p4) }
  0x17   : > { %184 = vst [vmem:[%s1519_s5 + $0x18] sm:$0xff] (%p1495_p4), %v183_v3  ;;  %186 = vst [vmem:[%s1519_s5 + $0x20] sm:$0xff] (%p1495_p4), %v185_v4  ;;  %v193_v8 = vld [vmem:[%s1511_s30 + $0x80] sm:$0xff] (%p1495_p4)  ;;  %v195_v9 = vld [vmem:[%s1511_s30 + $0x88] sm:$0xff] (%p1495_p4) }
  0x18   : > { %188 = vst [vmem:[%s1519_s5 + $0x28] sm:$0xff] %v187_v5  ;;  %190 = vst [vmem:[%s1519_s5 + $0x30] sm:$0xff] %v189_v6  ;;  %v197_v10 = vld [vmem:[%s1511_s30 + $0x90] sm:$0xff]  ;;  %v199_v11 = vld [vmem:[%s1511_s30 + $0x98] sm:$0xff] }
  0x19   : > { %192 = vst [vmem:[%s1519_s5 + $0x38] sm:$0xff] %v191_v7  ;;  %194 = vst [vmem:[%s1519_s5 + $0x40] sm:$0xff] %v193_v8  ;;  %v201_v12 = vld [vmem:[%s1511_s30 + $0xc0] sm:$0xff]  ;;  %v203_v13 = vld [vmem:[%s1511_s30 + $0xc8] sm:$0xff] }
  0x1a   : > { %196 = vst [vmem:[%s1519_s5 + $0x48] sm:$0xff] %v195_v9  ;;  %198 = vst [vmem:[%s1519_s5 + $0x50] sm:$0xff] %v197_v10  ;;  %v205_v14 = vld [vmem:[%s1511_s30 + $0xd0] sm:$0xff]  ;;  %v207_v15 = vld [vmem:[%s1511_s30 + $0xd8] sm:$0xff] }
  0x1b   : > { %200 = vst [vmem:[%s1519_s5 + $0x58] sm:$0xff] %v199_v11  ;;  %202 = vst [vmem:[%s1519_s5 + $0x60] sm:$0xff] %v201_v12  ;;  %v209_v16 = vld [vmem:[%s1511_s30 + $0x100] sm:$0xff]  ;;  %v211_v17 = vld [vmem:[%s1511_s30 + $0x108] sm:$0xff] }
  0x1c   : > { %204 = vst [vmem:[%s1519_s5 + $0x68] sm:$0xff] %v203_v13  ;;  %206 = vst [vmem:[%s1519_s5 + $0x70] sm:$0xff] %v205_v14  ;;  %v213_v18 = vld [vmem:[%s1511_s30 + $0x110] sm:$0xff]  ;;  %v215_v19 = vld [vmem:[%s1511_s30 + $0x118] sm:$0xff] }
  0x1d   : > { %208 = vst [vmem:[%s1519_s5 + $0x78] sm:$0xff] %v207_v15  ;;  %210 = vst [vmem:[%s1519_s5 + $0x80] sm:$0xff] %v209_v16  ;;  %v217_v20 = vld [vmem:[%s1511_s30 + $0x140] sm:$0xff]  ;;  %v219_v21 = vld [vmem:[%s1511_s30 + $0x148] sm:$0xff] }
  0x1e   : > { %212 = vst [vmem:[%s1519_s5 + $0x88] sm:$0xff] %v211_v17  ;;  %214 = vst [vmem:[%s1519_s5 + $0x90] sm:$0xff] %v213_v18  ;;  %v221_v22 = vld [vmem:[%s1511_s30 + $0x150] sm:$0xff]  ;;  %v223_v23 = vld [vmem:[%s1511_s30 + $0x158] sm:$0xff] }
  0x1f   : > { %216 = vst [vmem:[%s1519_s5 + $0x98] sm:$0xff] %v215_v19  ;;  %218 = vst [vmem:[%s1519_s5 + $0xa0] sm:$0xff] %v217_v20  ;;  %v225_v24 = vld [vmem:[%s1511_s30 + $0x180] sm:$0xff]  ;;  %v227_v25 = vld [vmem:[%s1511_s30 + $0x188] sm:$0xff] }
  0x20   : > { %220 = vst [vmem:[%s1519_s5 + $0xa8] sm:$0xff] %v219_v21  ;;  %222 = vst [vmem:[%s1519_s5 + $0xb0] sm:$0xff] %v221_v22  ;;  %v229_v26 = vld [vmem:[%s1511_s30 + $0x190] sm:$0xff]  ;;  %v231_v27 = vld [vmem:[%s1511_s30 + $0x198] sm:$0xff] }
  0x21   : > { %224 = vst [vmem:[%s1519_s5 + $0xb8] sm:$0xff] %v223_v23  ;;  %226 = vst [vmem:[%s1519_s5 + $0xc0] sm:$0xff] %v225_v24  ;;  %v233_v28 = vld [vmem:[%s1511_s30 + $0x1c0] sm:$0xff]  ;;  %v235_v29 = vld [vmem:[%s1511_s30 + $0x1c8] sm:$0xff] }
  0x22   : > { %228 = vst [vmem:[%s1519_s5 + $0xc8] sm:$0xff] %v227_v25  ;;  %230 = vst [vmem:[%s1519_s5 + $0xd0] sm:$0xff] %v229_v26  ;;  %v237_v30 = vld [vmem:[%s1511_s30 + $0x1d0] sm:$0xff]  ;;  %v239_v31 = vld [vmem:[%s1511_s30 + $0x1d8] sm:$0xff] }
  0x23   : > { %232 = vst [vmem:[%s1519_s5 + $0xd8] sm:$0xff] %v231_v27  ;;  %234 = vst [vmem:[%s1519_s5 + $0xe0] sm:$0xff] %v233_v28  ;;  %v241_v32 = vld [vmem:[%s1511_s30 + $0x200] sm:$0xff]  ;;  %v243_v33 = vld [vmem:[%s1511_s30 + $0x208] sm:$0xff] }
  0x24   : > { %236 = vst [vmem:[%s1519_s5 + $0xe8] sm:$0xff] %v235_v29  ;;  %238 = vst [vmem:[%s1519_s5 + $0xf0] sm:$0xff] %v237_v30  ;;  %v245_v34 = vld [vmem:[%s1511_s30 + $0x210] sm:$0xff]  ;;  %v247_v35 = vld [vmem:[%s1511_s30 + $0x218] sm:$0xff] }
  0x25   : > { %240 = vst [vmem:[%s1519_s5 + $0xf8] sm:$0xff] %v239_v31  ;;  %242 = vst [vmem:[%s1519_s5 + $0x100] sm:$0xff] %v241_v32  ;;  %v249_v36 = vld [vmem:[%s1511_s30 + $0x240] sm:$0xff]  ;;  %v251_v37 = vld [vmem:[%s1511_s30 + $0x248] sm:$0xff] }
  0x26   : > { %244 = vst [vmem:[%s1519_s5 + $0x108] sm:$0xff] %v243_v33  ;;  %246 = vst [vmem:[%s1519_s5 + $0x110] sm:$0xff] %v245_v34  ;;  %v253_v38 = vld [vmem:[%s1511_s30 + $0x250] sm:$0xff]  ;;  %v255_v39 = vld [vmem:[%s1511_s30 + $0x258] sm:$0xff] }
  0x27   : > { %248 = vst [vmem:[%s1519_s5 + $0x118] sm:$0xff] %v247_v35  ;;  %250 = vst [vmem:[%s1519_s5 + $0x120] sm:$0xff] %v249_v36  ;;  %v257_v40 = vld [vmem:[%s1511_s30 + $0x280] sm:$0xff]  ;;  %v259_v41 = vld [vmem:[%s1511_s30 + $0x288] sm:$0xff] }
  0x28   : > { %252 = vst [vmem:[%s1519_s5 + $0x128] sm:$0xff] %v251_v37  ;;  %254 = vst [vmem:[%s1519_s5 + $0x130] sm:$0xff] %v253_v38  ;;  %v261_v42 = vld [vmem:[%s1511_s30 + $0x290] sm:$0xff]  ;;  %v263_v43 = vld [vmem:[%s1511_s30 + $0x298] sm:$0xff] }
  0x29   : > { %256 = vst [vmem:[%s1519_s5 + $0x138] sm:$0xff] %v255_v39  ;;  %258 = vst [vmem:[%s1519_s5 + $0x140] sm:$0xff] %v257_v40  ;;  %v265_v44 = vld [vmem:[%s1511_s30 + $0x2c0] sm:$0xff]  ;;  %v267_v45 = vld [vmem:[%s1511_s30 + $0x2c8] sm:$0xff] }
  0x2a   : > { %260 = vst [vmem:[%s1519_s5 + $0x148] sm:$0xff] %v259_v41  ;;  %262 = vst [vmem:[%s1519_s5 + $0x150] sm:$0xff] %v261_v42  ;;  %v269_v46 = vld [vmem:[%s1511_s30 + $0x2d0] sm:$0xff]  ;;  %v271_v47 = vld [vmem:[%s1511_s30 + $0x2d8] sm:$0xff] }
  0x2b   : > { %264 = vst [vmem:[%s1519_s5 + $0x158] sm:$0xff] %v263_v43  ;;  %266 = vst [vmem:[%s1519_s5 + $0x160] sm:$0xff] %v265_v44  ;;  %v273_v48 = vld [vmem:[%s1511_s30 + $0x300] sm:$0xff]  ;;  %v275_v49 = vld [vmem:[%s1511_s30 + $0x308] sm:$0xff] }
  0x2c   : > { %268 = vst [vmem:[%s1519_s5 + $0x168] sm:$0xff] %v267_v45  ;;  %270 = vst [vmem:[%s1519_s5 + $0x170] sm:$0xff] %v269_v46  ;;  %v277_v50 = vld [vmem:[%s1511_s30 + $0x310] sm:$0xff]  ;;  %v279_v51 = vld [vmem:[%s1511_s30 + $0x318] sm:$0xff] }
  0x2d   : > { %272 = vst [vmem:[%s1519_s5 + $0x178] sm:$0xff] %v271_v47  ;;  %274 = vst [vmem:[%s1519_s5 + $0x180] sm:$0xff] %v273_v48  ;;  %v281_v52 = vld [vmem:[%s1511_s30 + $0x340] sm:$0xff]  ;;  %v283_v53 = vld [vmem:[%s1511_s30 + $0x348] sm:$0xff] }
  0x2e   : > { %276 = vst [vmem:[%s1519_s5 + $0x188] sm:$0xff] %v275_v49  ;;  %278 = vst [vmem:[%s1519_s5 + $0x190] sm:$0xff] %v277_v50  ;;  %v285_v54 = vld [vmem:[%s1511_s30 + $0x350] sm:$0xff]  ;;  %v287_v55 = vld [vmem:[%s1511_s30 + $0x358] sm:$0xff] }
  0x2f   : > { %280 = vst [vmem:[%s1519_s5 + $0x198] sm:$0xff] %v279_v51  ;;  %282 = vst [vmem:[%s1519_s5 + $0x1a0] sm:$0xff] %v281_v52  ;;  %v289_v56 = vld [vmem:[%s1511_s30 + $0x380] sm:$0xff]  ;;  %v291_v57 = vld [vmem:[%s1511_s30 + $0x388] sm:$0xff] }
  0x30   : > { %284 = vst [vmem:[%s1519_s5 + $0x1a8] sm:$0xff] %v283_v53  ;;  %286 = vst [vmem:[%s1519_s5 + $0x1b0] sm:$0xff] %v285_v54  ;;  %v293_v58 = vld [vmem:[%s1511_s30 + $0x390] sm:$0xff]  ;;  %v295_v59 = vld [vmem:[%s1511_s30 + $0x398] sm:$0xff] }
  0x31   : > { %288 = vst [vmem:[%s1519_s5 + $0x1b8] sm:$0xff] %v287_v55  ;;  %290 = vst [vmem:[%s1519_s5 + $0x1c0] sm:$0xff] %v289_v56  ;;  %v297_v60 = vld [vmem:[%s1511_s30 + $0x3c0] sm:$0xff]  ;;  %v299_v61 = vld [vmem:[%s1511_s30 + $0x3c8] sm:$0xff] }
  0x32   : > { %292 = vst [vmem:[%s1519_s5 + $0x1c8] sm:$0xff] %v291_v57  ;;  %294 = vst [vmem:[%s1519_s5 + $0x1d0] sm:$0xff] %v293_v58  ;;  %v301_v62 = vld [vmem:[%s1511_s30 + $0x3d0] sm:$0xff]  ;;  %v303_v63 = vld [vmem:[%s1511_s30 + $0x3d8] sm:$0xff] }
  0x33   : > { %296 = vst [vmem:[%s1519_s5 + $0x1d8] sm:$0xff] %v295_v59  ;;  %298 = vst [vmem:[%s1519_s5 + $0x1e0] sm:$0xff] %v297_v60  ;;  %v305_v0 = vld [vmem:[%s1511_s30 + $0x400] sm:$0xff]  ;;  %v307_v1 = vld [vmem:[%s1511_s30 + $0x408] sm:$0xff] }
  0x34   : > { %300 = vst [vmem:[%s1519_s5 + $0x1e8] sm:$0xff] %v299_v61  ;;  %302 = vst [vmem:[%s1519_s5 + $0x1f0] sm:$0xff] %v301_v62  ;;  %v309_v2 = vld [vmem:[%s1511_s30 + $0x410] sm:$0xff]  ;;  %v311_v3 = vld [vmem:[%s1511_s30 + $0x418] sm:$0xff] }
  0x35   : > { %304 = vst [vmem:[%s1519_s5 + $0x1f8] sm:$0xff] %v303_v63  ;;  %306 = vst [vmem:[%s1519_s5 + $0x200] sm:$0xff] %v305_v0  ;;  %v313_v4 = vld [vmem:[%s1511_s30 + $0x440] sm:$0xff]  ;;  %v315_v5 = vld [vmem:[%s1511_s30 + $0x448] sm:$0xff] }
  0x36   : > { %308 = vst [vmem:[%s1519_s5 + $0x208] sm:$0xff] %v307_v1  ;;  %310 = vst [vmem:[%s1519_s5 + $0x210] sm:$0xff] %v309_v2  ;;  %v317_v6 = vld [vmem:[%s1511_s30 + $0x450] sm:$0xff]  ;;  %v319_v7 = vld [vmem:[%s1511_s30 + $0x458] sm:$0xff] }
  0x37   : > { %312 = vst [vmem:[%s1519_s5 + $0x218] sm:$0xff] %v311_v3  ;;  %314 = vst [vmem:[%s1519_s5 + $0x220] sm:$0xff] %v313_v4 }
  0x38   : > { %316 = vst [vmem:[%s1519_s5 + $0x228] sm:$0xff] %v315_v5  ;;  %318 = vst [vmem:[%s1519_s5 + $0x230] sm:$0xff] %v317_v6 }
  0x39   : > { %320 = vst [vmem:[%s1519_s5 + $0x238] sm:$0xff] %v319_v7 }
  0x3a PF: > { %326 = sbr.rel (!%p1495_p4) target bundleno = 66 (0x42), region = 51  ;;  %s328_s6 = sand.u32 (%p1495_p4), 1, %s1433_s16  }
  0x3b   : > { %s1374_s7 = sshll.u32 (%p1495_p4), %s1437_s17, 5  ;;  %s1276_s8 = sshll.u32 (%p1495_p4), %s328_s6, 6 }
  0x3c   : > { %s333_s11 = scalar_lea.vmem (%p1495_p4), %s1847_s3, %s1374_s7  ;;  %s330_s12 = scalar_lea.vmem (%p1495_p4), [#allocation3], %s1276_s8 }
  0x3d   : > { %v346_v8 = vld [vmem:[%s333_s11] sm:$0xff] (%p1495_p4)  ;;  %v348_v9 = vld [vmem:[%s333_s11 + $0x8] sm:$0xff] (%p1495_p4)  ;;  %v350_v10 = vld [vmem:[%s333_s11 + $0x10] sm:$0xff] (%p1495_p4) }
  0x3e   : > { %347 = vst [vmem:[%s330_s12] sm:$0xff] (%p1495_p4), %v346_v8  ;;  %349 = vst [vmem:[%s330_s12 + $0x8] sm:$0xff] (%p1495_p4), %v348_v9  ;;  %v352_v11 = vld [vmem:[%s333_s11 + $0x18] sm:$0xff] (%p1495_p4)  ;;  %v354_v12 = vld [vmem:[%s333_s11 + $0x40] sm:$0xff] (%p1495_p4) }
  0x3f   : > { %351 = vst [vmem:[%s330_s12 + $0x10] sm:$0xff] (%p1495_p4), %v350_v10  ;;  %v356_v13 = vld [vmem:[%s333_s11 + $0x48] sm:$0xff] (%p1495_p4)  ;;  %353 = vst [vmem:[%s330_s12 + $0x18] sm:$0xff] (%p1495_p4), %v352_v11  ;;  %v358_v14 = vld [vmem:[%s333_s11 + $0x50] sm:$0xff] (%p1495_p4) }
  0x40   : > { %355 = vst [vmem:[%s330_s12 + $0x20] sm:$0xff] (%p1495_p4), %v354_v12  ;;  %357 = vst [vmem:[%s330_s12 + $0x28] sm:$0xff] (%p1495_p4), %v356_v13  ;;  %v360_v15 = vld [vmem:[%s333_s11 + $0x58] sm:$0xff] (%p1495_p4) }
  0x41   : > { %359 = vst [vmem:[%s330_s12 + $0x30] sm:$0xff] %v358_v14  ;;  %361 = vst [vmem:[%s330_s12 + $0x38] sm:$0xff] %v360_v15 }
  0x42 PF: > { %p1279_p7 = scmp.ge.s32.totalorder %s1437_s17, 1  ;;  %p366_p8 = scmp.lt.s32.totalorder %s1437_s17, 3 }
  0x44   : > { %p367_p9 = pnand %p1279_p7, %p366_p8 }
  0x45   : > { %s373_s13 = sand.u32 (!%p367_p9), 1, %s1429_s15   ;;  %v1672_v16 = vld [vmem:[%s1844_s0 + $0x4] ss:$8 sps:$4 sm:$0xff] (!%p367_p9)   ;;  %vm867_vm0 = vcmask (!%p367_p9), 130048   ;;  %v1439_v18 = vmov (!%p367_p9), 0  }
  0x46   : > { %370 = sbr.rel (%p367_p9) target bundleno = 382 (0x17e), region = 74  ;;  %v486_v17 = vld [vmem:[%s1846_s2] sm:$0xff] (!%p367_p9)  ;;  %1356 = vmatprep.mubr.msk.bf16.mxu0 (!%p367_p9), %vm867_vm0, %v1672_v16  ;;  %1357 = vmatprep.mubr.msk.bf16.mxu1 (!%p367_p9), %vm867_vm0, %v1672_v16  ;;  %v487_v38 = vld [vmem:[%s1846_s2 + $0x8] sm:$0xff] (!%p367_p9)  ;;  %s1775_s5 = sshll.u32 (!%p367_p9), %s373_s13, 6 }
  0x47   : > { %s1385_s21 = smul.u32 (!%p367_p9), 576, %s373_s13  ;;  %1411 = vset.pattern.permute.xlu0 (!%p367_p9), %v1439_v18  ;;  %s1780_s6 = scalar_lea.vmem (!%p367_p9), [#allocation3], %s1775_s5 }
  0x48   : > { %490 = vperm.xlu0 (!%p367_p9), %1411, %v486_v17   ;;  %s1797_s15 = scalar_lea.vmem (!%p367_p9), [#allocation4], %s1775_s5 }
  0x49   : > { %s1683_s26 = scalar_lea.vmem (!%p367_p9), [#allocation2], %s1385_s21 }
  0x4a   : > { %v414_v19 = vld [vmem:[%s1683_s26] sm:$0xff] (!%p367_p9)  ;;  %v415_v21 = vld [vmem:[%s1683_s26 + $0x8] sm:$0xff] (!%p367_p9) }
  0x4b   : > { %v418_v20 = vld [vmem:[%s1683_s26 + $0x20] sm:$0xff] (!%p367_p9)  ;;  %v419_v23 = vld [vmem:[%s1683_s26 + $0x28] sm:$0xff] (!%p367_p9) }
  0x4c   : > { %v1285_v22 = vcombine.high (!%p367_p9), %v414_v19, %v418_v20  ;;  %v1284_v24 = vcombine.low (!%p367_p9), %v414_v19, %v418_v20  ;;  %v422_v25 = vld [vmem:[%s1683_s26 + $0x40] sm:$0xff] (!%p367_p9)  ;;  %v1287_v27 = vcombine.high (!%p367_p9), %v415_v21, %v419_v23  ;;  %v1286_v28 = vcombine.low (!%p367_p9), %v415_v21, %v419_v23  ;;  %v423_v30 = vld [vmem:[%s1683_s26 + $0x48] sm:$0xff] (!%p367_p9)  ;;  %495 = vperm.xlu0 (!%p367_p9), %1411, %v487_v38   ;;  %v425_v38 = vld [vmem:[%s1683_s26 + $0x58] sm:$0xff] (!%p367_p9) }
  0x4d   : > { %v426_v26 = vld [vmem:[%s1683_s26 + $0x60] sm:$0xff]  ;;  %v427_v31 = vld [vmem:[%s1683_s26 + $0x68] sm:$0xff]  ;;  %s1383_s7 = sshll.u32 (%p1499_p5), %s1270_s18, 5 }
  0x4e   : > { %v1293_v29 = vcombine.high %v422_v25, %v426_v26  ;;  %v430_v32 = vld [vmem:[%s1683_s26 + $0x80] sm:$0xff]  ;;  %871 = vmatprep.subr.bf16.mxu0 %v1285_v22  ;;  %v1295_v33 = vcombine.high %v423_v30, %v427_v31  ;;  %v431_v35 = vld [vmem:[%s1683_s26 + $0x88] sm:$0xff]  ;;  %914 = vmatprep.subr.bf16.mxu1 %v1287_v27  ;;  %v1292_v37 = vcombine.low %v422_v25, %v426_v26  ;;  %v416_v27 = vld [vmem:[%s1683_s26 + $0x10] sm:$0xff]  ;;  %s1164_s10 = scalar_lea.vmem (%p1499_p5), %s1848_s4, %s1383_s7 }
  0x4f   : > { %v434_v34 = vld [vmem:[%s1683_s26 + $0xa0] sm:$0xff]  ;;  %v435_v36 = vld [vmem:[%s1683_s26 + $0xa8] sm:$0xff]  ;;  %872 = vmatpush1.bf16.msra.mxu0 %v1284_v24  ;;  %915 = vmatpush1.bf16.msra.mxu1 %v1286_v28  ;;  %v1294_v39 = vcombine.low %v423_v30, %v427_v31  ;;  %v420_v28 = vld [vmem:[%s1683_s26 + $0x30] sm:$0xff] }
  0x50   : > { %873 = vmatprep.subr.bf16.mxu0 %v1293_v29  ;;  %v1301_v40 = vcombine.high %v430_v32, %v434_v34  ;;  %916 = vmatprep.subr.bf16.mxu1 %v1295_v33  ;;  %v1303_v41 = vcombine.high %v431_v35, %v435_v36  ;;  %v438_v42 = vld [vmem:[%s1683_s26 + $0xc0] sm:$0xff]  ;;  %v439_v44 = vld [vmem:[%s1683_s26 + $0xc8] sm:$0xff]  ;;  %v1300_v46 = vcombine.low %v430_v32, %v434_v34  ;;  %v417_v29 = vld [vmem:[%s1683_s26 + $0x18] sm:$0xff] }
  0x51   : > { %v442_v43 = vld [vmem:[%s1683_s26 + $0xe0] sm:$0xff]  ;;  %v443_v45 = vld [vmem:[%s1683_s26 + $0xe8] sm:$0xff]  ;;  %v1302_v47 = vcombine.low %v431_v35, %v435_v36  ;;  %v421_v30 = vld [vmem:[%s1683_s26 + $0x38] sm:$0xff]  ;;  %v1289_v33 = vcombine.high %v416_v27, %v420_v28 }
  0x52   : > { %v1309_v48 = vcombine.high %v438_v42, %v442_v43  ;;  %v1311_v49 = vcombine.high %v439_v44, %v443_v45  ;;  %v446_v50 = vld [vmem:[%s1683_s26 + $0x100] sm:$0xff]  ;;  %v447_v52 = vld [vmem:[%s1683_s26 + $0x108] sm:$0xff]  ;;  %v1308_v54 = vcombine.low %v438_v42, %v442_v43  ;;  %v1310_v55 = vcombine.low %v439_v44, %v443_v45  ;;  %v424_v35 = vld [vmem:[%s1683_s26 + $0x50] sm:$0xff] }
  0x53   : > { %874 = vmatpush1.bf16.msra.mxu0 %v1292_v37  ;;  %917 = vmatpush1.bf16.msra.mxu1 %v1294_v39  ;;  %v450_v51 = vld [vmem:[%s1683_s26 + $0x120] sm:$0xff]  ;;  %v451_v53 = vld [vmem:[%s1683_s26 + $0x128] sm:$0xff]  ;;  %v1291_v34 = vcombine.high %v417_v29, %v421_v30  ;;  %v428_v36 = vld [vmem:[%s1683_s26 + $0x70] sm:$0xff] }
  0x54   : > { %875 = vmatprep.subr.bf16.mxu0 %v1301_v40  ;;  %918 = vmatprep.subr.bf16.mxu1 %v1303_v41  ;;  %v1317_v56 = vcombine.high %v446_v50, %v450_v51  ;;  %v1319_v57 = vcombine.high %v447_v52, %v451_v53  ;;  %v454_v58 = vld [vmem:[%s1683_s26 + $0x140] sm:$0xff]  ;;  %v455_v60 = vld [vmem:[%s1683_s26 + $0x148] sm:$0xff]  ;;  %v1316_v62 = vcombine.low %v446_v50, %v450_v51  ;;  %v429_v39 = vld [vmem:[%s1683_s26 + $0x78] sm:$0xff] }
  0x55   : > { %v458_v59 = vld [vmem:[%s1683_s26 + $0x160] sm:$0xff]  ;;  %v459_v61 = vld [vmem:[%s1683_s26 + $0x168] sm:$0xff]  ;;  %v1318_v63 = vcombine.low %v447_v52, %v451_v53  ;;  %v1288_v40 = vcombine.low %v416_v27, %v420_v28  ;;  %v1290_v41 = vcombine.low %v417_v29, %v421_v30  ;;  %v1297_v42 = vcombine.high %v424_v35, %v428_v36  ;;  %v432_v44 = vld [vmem:[%s1683_s26 + $0x90] sm:$0xff] }
  0x56   : > { %v1325_v0 = vcombine.high %v454_v58, %v458_v59  ;;  %v1327_v1 = vcombine.high %v455_v60, %v459_v61  ;;  %v462_v2 = vld [vmem:[%s1683_s26 + $0x180] sm:$0xff]  ;;  %v463_v4 = vld [vmem:[%s1683_s26 + $0x188] sm:$0xff]  ;;  %v1324_v6 = vcombine.low %v454_v58, %v458_v59  ;;  %v1326_v7 = vcombine.low %v455_v60, %v459_v61  ;;  %v436_v45 = vld [vmem:[%s1683_s26 + $0xb0] sm:$0xff] }
  0x57   : > { %876 = vmatpush1.bf16.msra.mxu0 %v1300_v46  ;;  %919 = vmatpush1.bf16.msra.mxu1 %v1302_v47  ;;  %v466_v3 = vld [vmem:[%s1683_s26 + $0x1a0] sm:$0xff]  ;;  %v467_v5 = vld [vmem:[%s1683_s26 + $0x1a8] sm:$0xff]  ;;  %v1299_v43 = vcombine.high %v425_v38, %v429_v39  ;;  %v433_v46 = vld [vmem:[%s1683_s26 + $0x98] sm:$0xff]  ;;  %v1305_v50 = vcombine.high %v432_v44, %v436_v45 }
  0x58   : > { %877 = vmatprep.subr.bf16.mxu0 %v1309_v48  ;;  %920 = vmatprep.subr.bf16.mxu1 %v1311_v49  ;;  %v1333_v8 = vcombine.high %v462_v2, %v466_v3  ;;  %v1335_v9 = vcombine.high %v463_v4, %v467_v5  ;;  %v470_v10 = vld [vmem:[%s1683_s26 + $0x1c0] sm:$0xff]  ;;  %v471_v12 = vld [vmem:[%s1683_s26 + $0x1c8] sm:$0xff]  ;;  %v1332_v14 = vcombine.low %v462_v2, %v466_v3  ;;  %v437_v47 = vld [vmem:[%s1683_s26 + $0xb8] sm:$0xff] }
  0x59   : > { %v474_v11 = vld [vmem:[%s1683_s26 + $0x1e0] sm:$0xff]  ;;  %v475_v13 = vld [vmem:[%s1683_s26 + $0x1e8] sm:$0xff]  ;;  %v1334_v15 = vcombine.low %v463_v4, %v467_v5  ;;  %v1296_v48 = vcombine.low %v424_v35, %v428_v36  ;;  %v1298_v49 = vcombine.low %v425_v38, %v429_v39  ;;  %v1307_v51 = vcombine.high %v433_v46, %v437_v47  ;;  %v440_v52 = vld [vmem:[%s1683_s26 + $0xd0] sm:$0xff] }
  0x5a   : > { %v1341_v17 = vcombine.high %v470_v10, %v474_v11  ;;  %v1343_v18 = vcombine.high %v471_v12, %v475_v13  ;;  %v478_v19 = vld [vmem:[%s1683_s26 + $0x200] sm:$0xff]  ;;  %v479_v21 = vld [vmem:[%s1683_s26 + $0x208] sm:$0xff]  ;;  %v1340_v23 = vcombine.low %v470_v10, %v474_v11  ;;  %v1342_v24 = vcombine.low %v471_v12, %v475_v13  ;;  %v444_v53 = vld [vmem:[%s1683_s26 + $0xf0] sm:$0xff] }
  0x5b   : > { %878 = vmatpush1.bf16.msra.mxu0 %v1308_v54  ;;  %921 = vmatpush1.bf16.msra.mxu1 %v1310_v55  ;;  %v482_v20 = vld [vmem:[%s1683_s26 + $0x220] sm:$0xff]  ;;  %v483_v22 = vld [vmem:[%s1683_s26 + $0x228] sm:$0xff]  ;;  %v441_v54 = vld [vmem:[%s1683_s26 + $0xd8] sm:$0xff]  ;;  %v1313_v58 = vcombine.high %v440_v52, %v444_v53 }
  0x5c   : > { %879 = vmatprep.subr.bf16.mxu0 %v1317_v56  ;;  %922 = vmatprep.subr.bf16.mxu1 %v1319_v57  ;;  %v1349_v25 = vcombine.high %v478_v19, %v482_v20  ;;  %v1351_v26 = vcombine.high %v479_v21, %v483_v22  ;;  %v1348_v31 = vcombine.low %v478_v19, %v482_v20  ;;  %v1733_v37 = vld [vmem:[%s1844_s0] ss:$8 sps:$4 sm:$0xff]   ;;  %v445_v55 = vld [vmem:[%s1683_s26 + $0xf8] sm:$0xff]  ;;  %v448_v60 = vld [vmem:[%s1683_s26 + $0x110] sm:$0xff] }
  0x5d   : > { %v1350_v32 = vcombine.low %v479_v21, %v483_v22  ;;  %v1304_v56 = vcombine.low %v432_v44, %v436_v45  ;;  %v1306_v57 = vcombine.low %v433_v46, %v437_v47  ;;  %v1315_v59 = vcombine.high %v441_v54, %v445_v55  ;;  %v452_v61 = vld [vmem:[%s1683_s26 + $0x130] sm:$0xff]  ;;  %v457_v5 = vld [vmem:[%s1683_s26 + $0x158] sm:$0xff]  ;;  %v1048_v44 = vld [vmem:[%s1780_s6 + $0x28] sm:$0xff] }
  0x5e   : > { %v456_v3 = vld [vmem:[%s1683_s26 + $0x150] sm:$0xff]  ;;  %v465_v13 = vld [vmem:[%s1683_s26 + $0x198] sm:$0xff] }
  0x5f   : > { %880 = vmatpush1.bf16.msra.mxu0 %v1316_v62  ;;  %923 = vmatpush1.bf16.msra.mxu1 %v1318_v63  ;;  %v449_v62 = vld [vmem:[%s1683_s26 + $0x118] sm:$0xff]  ;;  %v460_v4 = vld [vmem:[%s1683_s26 + $0x170] sm:$0xff] }
  0x60   : > { %881 = vmatprep.subr.bf16.mxu0 %v1325_v0  ;;  %924 = vmatprep.subr.bf16.mxu1 %v1327_v1  ;;  %v453_v63 = vld [vmem:[%s1683_s26 + $0x138] sm:$0xff]  ;;  %v1312_v0 = vcombine.low %v440_v52, %v444_v53  ;;  %v1321_v1 = vcombine.high %v448_v60, %v452_v61  ;;  %v464_v11 = vld [vmem:[%s1683_s26 + $0x190] sm:$0xff] }
  0x61   : > { %v1323_v2 = vcombine.high %v449_v62, %v453_v63  ;;  %v468_v12 = vld [vmem:[%s1683_s26 + $0x1b0] sm:$0xff]  ;;  %v473_v22 = vld [vmem:[%s1683_s26 + $0x1d8] sm:$0xff] }
  0x62   : > { %v472_v20 = vld [vmem:[%s1683_s26 + $0x1d0] sm:$0xff]  ;;  %v481_v30 = vld [vmem:[%s1683_s26 + $0x218] sm:$0xff] }
  0x63   : > { %882 = vmatpush1.bf16.msra.mxu0 %v1324_v6  ;;  %925 = vmatpush1.bf16.msra.mxu1 %v1326_v7  ;;  %v461_v6 = vld [vmem:[%s1683_s26 + $0x178] sm:$0xff]  ;;  %v1320_v7 = vcombine.low %v448_v60, %v452_v61  ;;  %v476_v21 = vld [vmem:[%s1683_s26 + $0x1f0] sm:$0xff] }
  0x64   : > { %883 = vmatprep.subr.bf16.mxu0 %v1333_v8  ;;  %926 = vmatprep.subr.bf16.mxu1 %v1335_v9  ;;  %v1322_v8 = vcombine.low %v449_v62, %v453_v63  ;;  %v1329_v9 = vcombine.high %v456_v3, %v460_v4  ;;  %v1331_v10 = vcombine.high %v457_v5, %v461_v6  ;;  %v480_v28 = vld [vmem:[%s1683_s26 + $0x210] sm:$0xff] }
  0x65   : > { %v484_v29 = vld [vmem:[%s1683_s26 + $0x230] sm:$0xff] }
  0x66   : > { %v1352_v36 = vcombine.low %v480_v28, %v484_v29 }
  0x67   : > { %884 = vmatpush1.bf16.msra.mxu0 %v1332_v14  ;;  %927 = vmatpush1.bf16.msra.mxu1 %v1334_v15  ;;  %v469_v14 = vld [vmem:[%s1683_s26 + $0x1b8] sm:$0xff]  ;;  %v1328_v15 = vcombine.low %v456_v3, %v460_v4 }
  0x68   : > { %885 = vmatprep.subr.bf16.mxu0 %v1341_v17  ;;  %928 = vmatprep.subr.bf16.mxu1 %v1343_v18  ;;  %v1330_v17 = vcombine.low %v457_v5, %v461_v6  ;;  %v1337_v18 = vcombine.high %v464_v11, %v468_v12  ;;  %v1339_v19 = vcombine.high %v465_v13, %v469_v14 }
  0x6b   : > { %886 = vmatpush1.bf16.msra.mxu0 %v1340_v23  ;;  %929 = vmatpush1.bf16.msra.mxu1 %v1342_v24  ;;  %v477_v23 = vld [vmem:[%s1683_s26 + $0x1f8] sm:$0xff]  ;;  %v1336_v24 = vcombine.low %v464_v11, %v468_v12 }
  0x6c   : > { %887 = vmatprep.subr.bf16.mxu0 %v1349_v25  ;;  %930 = vmatprep.subr.bf16.mxu1 %v1351_v26  ;;  %v1338_v25 = vcombine.low %v465_v13, %v469_v14  ;;  %v1345_v26 = vcombine.high %v472_v20, %v476_v21  ;;  %v1347_v27 = vcombine.high %v473_v22, %v477_v23 }
  0x6f   : > { %888 = vmatpush1.bf16.msra.mxu0 %v1348_v31  ;;  %931 = vmatpush1.bf16.msra.mxu1 %v1350_v32  ;;  %v485_v31 = vld [vmem:[%s1683_s26 + $0x238] sm:$0xff]  ;;  %v1344_v32 = vcombine.low %v472_v20, %v476_v21 }
  0x70   : > { %957 = vmatprep.subr.bf16.mxu0 %v1289_v33  ;;  %1000 = vmatprep.subr.bf16.mxu1 %v1291_v34  ;;  %v1346_v33 = vcombine.low %v473_v22, %v477_v23  ;;  %v1353_v34 = vcombine.high %v480_v28, %v484_v29  ;;  %v1355_v35 = vcombine.high %v481_v30, %v485_v31  ;;  %v1050_v28 = vld [vmem:[%s1780_s6 + $0x38] sm:$0xff] }
  0x71   : > { %v1354_v38 = vcombine.low %v481_v30, %v485_v31 }
  0x72   : > { %904 = vmatmul.mubr.bf16.vlgmr.msra.gmra.mrb[0].mxu0 %v1733_v37  ;;  %947 = vmatmul.mubr.bf16.vlgmr.msra.gmra.mrb[0].mxu1 %v1733_v37 }
  0x73   : > { %958 = vmatpush1.bf16.msra.mxu0 %v1288_v40  ;;  %1001 = vmatpush1.bf16.msra.mxu1 %v1290_v41  ;;  %v1043_v40 = vld [vmem:[%s1780_s6] sm:$0xff]  ;;  %v1044_v41 = vld [vmem:[%s1780_s6 + $0x8] sm:$0xff] }
  0x74   : > { %959 = vmatprep.subr.bf16.mxu0 %v1297_v42  ;;  %1002 = vmatprep.subr.bf16.mxu1 %v1299_v43  ;;  %v1047_v42 = vld [vmem:[%s1780_s6 + $0x20] sm:$0xff]  ;;  %v1051_v43 = vunpack.c.l.bf16 %v1043_v40  ;;  %v1053_v46 = vunpack.c.l.bf16 %v1044_v41 }
  0x75   : > { %1358 = vmatprep.mubr.msk.bf16.mxu0 %vm867_vm0, %v1672_v16  ;;  %1359 = vmatprep.mubr.msk.bf16.mxu1 %vm867_vm0, %v1672_v16  ;;  %v1314_v16 = vcombine.low %v441_v54, %v445_v55  ;;  %v1059_v52 = vunpack.c.l.bf16 %v1047_v42 }
  0x77   : > { %960 = vmatpush1.bf16.msra.mxu0 %v1296_v48  ;;  %1003 = vmatpush1.bf16.msra.mxu1 %v1298_v49 }
  0x78   : > { %961 = vmatprep.subr.bf16.mxu0 %v1305_v50  ;;  %1004 = vmatprep.subr.bf16.mxu1 %v1307_v51  ;;  %v1054_v51 = vunpack.c.h.bf16 %v1044_v41 }
  0x7b   : > { %962 = vmatpush1.bf16.msra.mxu0 %v1304_v56  ;;  %1005 = vmatpush1.bf16.msra.mxu1 %v1306_v57  ;;  %v1061_v57 = vunpack.c.l.bf16 %v1048_v44 }
  0x7c   : > { %963 = vmatprep.subr.bf16.mxu0 %v1313_v58  ;;  %1006 = vmatprep.subr.bf16.mxu1 %v1315_v59  ;;  %v1060_v58 = vunpack.c.h.bf16 %v1047_v42 }
  0x7f   : > { %964 = vmatpush1.bf16.msra.mxu0 %v1312_v0  ;;  %1007 = vmatpush1.bf16.msra.mxu1 %v1314_v16  ;;  %v1062_v0 = vunpack.c.h.bf16 %v1048_v44 }
  0x80   : > { %965 = vmatprep.subr.bf16.mxu0 %v1321_v1  ;;  %1008 = vmatprep.subr.bf16.mxu1 %v1323_v2 }
  0x83   : > { %966 = vmatpush1.bf16.msra.mxu0 %v1320_v7  ;;  %1009 = vmatpush1.bf16.msra.mxu1 %v1322_v8 }
  0x84   : > { %967 = vmatprep.subr.bf16.mxu0 %v1329_v9  ;;  %1010 = vmatprep.subr.bf16.mxu1 %v1331_v10 }
  0x87   : > { %968 = vmatpush1.bf16.msra.mxu0 %v1328_v15  ;;  %1011 = vmatpush1.bf16.msra.mxu1 %v1330_v17 }
  0x88   : > { %969 = vmatprep.subr.bf16.mxu0 %v1337_v18  ;;  %1012 = vmatprep.subr.bf16.mxu1 %v1339_v19 }
  0x8b   : > { %970 = vmatpush1.bf16.msra.mxu0 %v1336_v24  ;;  %1013 = vmatpush1.bf16.msra.mxu1 %v1338_v25  ;;  %v1045_v24 = vld [vmem:[%s1780_s6 + $0x10] sm:$0xff]  ;;  %v1046_v25 = vld [vmem:[%s1780_s6 + $0x18] sm:$0xff] }
  0x8c   : > { %971 = vmatprep.subr.bf16.mxu0 %v1345_v26  ;;  %1014 = vmatprep.subr.bf16.mxu1 %v1347_v27  ;;  %v1049_v26 = vld [vmem:[%s1780_s6 + $0x30] sm:$0xff]  ;;  %v1055_v27 = vunpack.c.l.bf16 %v1045_v24  ;;  %v1057_v30 = vunpack.c.l.bf16 %v1046_v25  ;;  %v1056_v31 = vunpack.c.h.bf16 %v1045_v24 }
  0x8d   : > { %v1064_v44 = vunpack.c.h.bf16 %v1049_v26 }
  0x8f   : > { %972 = vmatpush1.bf16.msra.mxu0 %v1344_v32  ;;  %1015 = vmatpush1.bf16.msra.mxu1 %v1346_v33 }
  0x90   : > { %973 = vmatprep.subr.bf16.mxu0 %v1353_v34  ;;  %1016 = vmatprep.subr.bf16.mxu1 %v1355_v35  ;;  %v1058_v35 = vunpack.c.h.bf16 %v1046_v25 }
  0x93   : > { %974 = vmatpush1.bf16.msra.mxu0 %v1352_v36  ;;  %1017 = vmatpush1.bf16.msra.mxu1 %v1354_v38  ;;  %v1063_v36 = vunpack.c.l.bf16 %v1049_v26 }
  0x96   : > { %990 = vmatmul.mubr.bf16.vlgmr.msra.gmra.mrb[4].mxu0 %v1733_v37  ;;  %1033 = vmatmul.mubr.bf16.vlgmr.msra.gmra.mrb[4].mxu1 %v1733_v37  ;;  %v1052_v37 = vunpack.c.h.bf16 %v1043_v40 }
  0xc7   : > { %v1777_v39 = vpop.permute.xlu0 %490 }
  0xcb   : > { %v1786_v47 = vpop.permute.xlu0 %495 }
 0x145   : > { %v905_v45 = vpop.f32.mrb[0].mxu0  ;;  %v948_v49 = vpop.f32.mrb[0].mxu1 }
 0x146   : > { %v906_v48 = vadd.f32 %v905_v45, %v1777_v39  ;;  %v907_v50 = vpop.f32.mrb[1].mxu0  ;;  %v949_v53 = vadd.f32 %v948_v49, %v1777_v39  ;;  %v950_v55 = vpop.f32.mrb[1].mxu1 }
 0x147   : > { %v908_v54 = vadd.f32 %v907_v50, %v1777_v39  ;;  %v909_v56 = vpop.f32.mrb[2].mxu0  ;;  %v951_v60 = vadd.f32 %v950_v55, %v1777_v39  ;;  %v952_v62 = vpop.f32.mrb[2].mxu1  ;;  %v1066_v50 = vunpack.c.h.bf16 %v1050_v28 }
 0x148   : > { %v1067_v59 = vadd.f32 %v1051_v43, %v906_v48  ;;  %v910_v61 = vadd.f32 %v909_v56, %v1786_v47  ;;  %v911_v63 = vpop.f32.mrb[3].mxu0  ;;  %v1069_v16 = vadd.f32 %v1053_v46, %v949_v53  ;;  %v953_v2 = vadd.f32 %v952_v62, %v1786_v47  ;;  %v954_v4 = vpop.f32.mrb[3].mxu1 }
 0x149   : > { %v1068_v1 = vadd.f32 %v1052_v37, %v908_v54  ;;  %v912_v3 = vadd.f32 %v911_v63, %v1786_v47  ;;  %v1070_v6 = vadd.f32 %v1054_v51, %v951_v60  ;;  %v955_v8 = vadd.f32 %v954_v4, %v1786_v47 }
 0x14a   : > { %v1083_v5 = vmax.f32 %v1067_v59, 0.0  ;;  %v1075_v7 = vadd.f32 %v1059_v52, %v910_v61  ;;  %v1085_v9 = vmax.f32 %v1069_v16, 0.0  ;;  %v1077_v11 = vadd.f32 %v1061_v57, %v953_v2 }
 0x14b   : > { %v1084_v10 = vmax.f32 %v1068_v1, 0.0  ;;  %v1076_v12 = vadd.f32 %v1060_v58, %v912_v3  ;;  %v1086_v13 = vmax.f32 %v1070_v6, 0.0  ;;  %v1078_v15 = vadd.f32 %v1062_v0, %v955_v8 }
 0x14c   : > { %v1091_v14 = vmax.f32 %v1075_v7, 0.0  ;;  %v1093_v18 = vmax.f32 %v1077_v11, 0.0  ;;  %v1065_v43 = vunpack.c.l.bf16 %v1050_v28 }
 0x14d   : > { %v1375_v17 = vpack.c.bf16 %v1084_v10, %v1083_v5  ;;  %v1092_v19 = vmax.f32 %v1076_v12, 0.0  ;;  %v1376_v20 = vpack.c.bf16 %v1086_v13, %v1085_v9  ;;  %v1094_v21 = vmax.f32 %v1078_v15, 0.0 }
 0x14f   : > { %1147 = vst [vmem:[%s1797_s15] sm:$0xff] %v1375_v17  ;;  %v1379_v22 = vpack.c.bf16 %v1092_v19, %v1091_v14  ;;  %1148 = vst [vmem:[%s1797_s15 + $0x8] sm:$0xff] %v1376_v20  ;;  %v1380_v23 = vpack.c.bf16 %v1094_v21, %v1093_v18 }
 0x151   : > { %1151 = vst [vmem:[%s1797_s15 + $0x20] sm:$0xff] %v1379_v22  ;;  %1152 = vst [vmem:[%s1797_s15 + $0x28] sm:$0xff] %v1380_v23 }
 0x156   : > { %v1179_v8 = vld [vmem:[%s1797_s15 + $0x8] sm:$0xff] (%p1499_p5) }
 0x157   : > { %1180 = vst [vmem:[%s1164_s10 + $0x8] sm:$0xff] (%p1499_p5), %v1179_v8 }
 0x158   : > { %v1185_v11 = vld [vmem:[%s1797_s15 + $0x20] sm:$0xff] (%p1499_p5)  ;;  %v1187_v12 = vld [vmem:[%s1797_s15 + $0x28] sm:$0xff] (%p1499_p5) }
 0x159   : > { %1186 = vst [vmem:[%s1164_s10 + $0x40] sm:$0xff] (%p1499_p5), %v1185_v11  ;;  %1188 = vst [vmem:[%s1164_s10 + $0x48] sm:$0xff] (%p1499_p5), %v1187_v12 }
 0x169   : > { %v991_v29 = vpop.f32.mrb[4].mxu0  ;;  %v1034_v33 = vpop.f32.mrb[4].mxu1 }
 0x16a   : > { %v992_v32 = vadd.f32 %v991_v29, %v1777_v39  ;;  %v993_v34 = vpop.f32.mrb[5].mxu0  ;;  %v1035_v38 = vadd.f32 %v1034_v33, %v1777_v39  ;;  %v1036_v41 = vpop.f32.mrb[5].mxu1 }
 0x16b   : > { %v994_v40 = vadd.f32 %v993_v34, %v1777_v39  ;;  %v995_v42 = vpop.f32.mrb[6].mxu0  ;;  %v1037_v46 = vadd.f32 %v1036_v41, %v1777_v39  ;;  %v1038_v48 = vpop.f32.mrb[6].mxu1 }
 0x16c   : > { %v1071_v45 = vadd.f32 %v1055_v27, %v992_v32  ;;  %v996_v37 = vadd.f32 %v995_v42, %v1786_v47  ;;  %v997_v49 = vpop.f32.mrb[7].mxu0  ;;  %v1073_v51 = vadd.f32 %v1057_v30, %v1035_v38  ;;  %v1039_v53 = vadd.f32 %v1038_v48, %v1786_v47  ;;  %v1040_v55 = vpop.f32.mrb[7].mxu1 }
 0x16d   : > { %v1072_v52 = vadd.f32 %v1056_v31, %v994_v40  ;;  %v998_v54 = vadd.f32 %v997_v49, %v1786_v47  ;;  %v1074_v57 = vadd.f32 %v1058_v35, %v1037_v46  ;;  %v1041_v59 = vadd.f32 %v1040_v55, %v1786_v47  ;;  %v1177_v47 = vld [vmem:[%s1797_s15] sm:$0xff] (%p1499_p5) }
 0x16e   : > { %v1087_v56 = vmax.f32 %v1071_v45, 0.0  ;;  %v1079_v58 = vadd.f32 %v1063_v36, %v996_v37  ;;  %v1089_v39 = vmax.f32 %v1073_v51, 0.0  ;;  %v1081_v61 = vadd.f32 %v1065_v43, %v1039_v53  ;;  %1178 = vst [vmem:[%s1164_s10] sm:$0xff] (%p1499_p5), %v1177_v47 }
 0x16f   : > { %v1088_v60 = vmax.f32 %v1072_v52, 0.0  ;;  %v1080_v62 = vadd.f32 %v1064_v44, %v998_v54  ;;  %v1090_v63 = vmax.f32 %v1074_v57, 0.0  ;;  %v1082_v16 = vadd.f32 %v1066_v50, %v1041_v59  ;;  %1161 = sbr.rel (!%p1499_p5) target bundleno = 382 (0x17e), region = 86 }
 0x170   : > { %v1095_v0 = vmax.f32 %v1079_v58, 0.0  ;;  %v1097_v2 = vmax.f32 %v1081_v61, 0.0 }
 0x171   : > { %v1377_v1 = vpack.c.bf16 %v1088_v60, %v1087_v56  ;;  %v1096_v3 = vmax.f32 %v1080_v62, 0.0  ;;  %v1378_v4 = vpack.c.bf16 %v1090_v63, %v1089_v39  ;;  %v1098_v5 = vmax.f32 %v1082_v16, 0.0 }
 0x173   : > { %1149 = vst [vmem:[%s1797_s15 + $0x10] sm:$0xff] %v1377_v1  ;;  %v1381_v6 = vpack.c.bf16 %v1096_v3, %v1095_v0  ;;  %1150 = vst [vmem:[%s1797_s15 + $0x18] sm:$0xff] %v1378_v4  ;;  %v1382_v7 = vpack.c.bf16 %v1098_v5, %v1097_v2 }
 0x175   : > { %1153 = vst [vmem:[%s1797_s15 + $0x30] sm:$0xff] %v1381_v6  ;;  %1154 = vst [vmem:[%s1797_s15 + $0x38] sm:$0xff] %v1382_v7 }
 0x17a   : > { %v1181_v9 = vld [vmem:[%s1797_s15 + $0x10] sm:$0xff]  ;;  %v1183_v10 = vld [vmem:[%s1797_s15 + $0x18] sm:$0xff] }
 0x17b   : > { %1182 = vst [vmem:[%s1164_s10 + $0x10] sm:$0xff] %v1181_v9  ;;  %1184 = vst [vmem:[%s1164_s10 + $0x18] sm:$0xff] %v1183_v10 }
 0x17c   : > { %v1189_v13 = vld [vmem:[%s1797_s15 + $0x30] sm:$0xff]  ;;  %v1191_v14 = vld [vmem:[%s1797_s15 + $0x38] sm:$0xff] }
 0x17d   : > { %1190 = vst [vmem:[%s1164_s10 + $0x50] sm:$0xff] %v1189_v13  ;;  %1192 = vst [vmem:[%s1164_s10 + $0x58] sm:$0xff] %v1191_v14 }
 0x17e PF: > { %p11_p10 = scmp.ge.s32.totalorder %s1482_s19, 4   ;;  %s1851_s15 = smov %s1433_s16 }
 0x17f   : > { %s1852_s16 = smov %s1493_s22  ;;  %s1853_s17 = smov %s1482_s19 }
 0x180   :  { %13 = sbr.rel (!%p11_p10) target bundleno = 2 (0x2), region = 148 }

// kernel: resnet20_forward.26
= control target key start
LH: loop header
LB: loop body
LE: loop exit
PB: predicated region body
PF: predicated region fallthrough
CT: control target
= control target key end

     0   :  { %v859_v1 = vmov 0   ;;  %vm285_vm0 = vcmask 130048   ;;  %s1115_s2 = inlined_call_operand.vmem [shape: bf16[144,512], index: 2, kind: input, shape index: {}]   ;;  %s1116_s0 = inlined_call_operand.vmem [shape: bf16[32,144], index: 0, kind: input, shape index: {}]   ;;  %s1117_s1 = inlined_call_operand.vmem [shape: bf16[32,16], index: 1, kind: input, shape index: {}]   ;;  %s1118_s3 = inlined_call_operand.vmem [shape: f32[32,1], index: 3, kind: input, shape index: {}]   ;;  %s1119_s4 = inlined_call_operand.vmem [shape: f32[32,1], index: 4, kind: input, shape index: {}]   ;;  %s1120_s5 = inlined_call_operand.vmem [shape: bf16[32,512], index: 5, kind: output, shape index: {0}]   ;;  %s1121_s6 = inlined_call_operand.vmem [shape: bf16[32,512], index: 6, kind: output, shape index: {1}]  }
   0x1   :  { %v797_v0 = vld [vmem:[%s1115_s2 + $0x4] ss:$16 sps:$4 sm:$0xff]   ;;  %795 = vset.pattern.permute.xlu0 %v859_v1  ;;  %796 = vset.pattern.permute.xlu1 %v859_v1  ;;  %v799_v2 = vld [vmem:[%s1115_s2 + $0xc] ss:$16 sps:$4 sm:$0xff]   ;;  %v801_v3 = vld [vmem:[%s1115_s2] ss:$16 sps:$4 sm:$0xff]  }
   0x2   :  { %292 = vmatprep.subr.bf16.mxu0 %v797_v0  ;;  %v802_v4 = vld [vmem:[%s1115_s2 + $0x8] ss:$16 sps:$4 sm:$0xff]   ;;  %345 = vmatprep.subr.bf16.mxu1 %v799_v2  ;;  %v803_v5 = vld [vmem:[%s1115_s2 + $0x24] ss:$16 sps:$4 sm:$0xff]   ;;  %v805_v6 = vld [vmem:[%s1115_s2 + $0x2c] ss:$16 sps:$4 sm:$0xff]  }
   0x3   :  { %293 = vmatpush1.bf16.msra.mxu0 %v801_v3  ;;  %346 = vmatpush1.bf16.msra.mxu1 %v802_v4  ;;  %v807_v7 = vld [vmem:[%s1115_s2 + $0x20] ss:$16 sps:$4 sm:$0xff]   ;;  %v808_v8 = vld [vmem:[%s1115_s2 + $0x28] ss:$16 sps:$4 sm:$0xff]   ;;  %v809_v9 = vld [vmem:[%s1115_s2 + $0x44] ss:$16 sps:$4 sm:$0xff]  }
   0x4   :  { %294 = vmatprep.subr.bf16.mxu0 %v803_v5  ;;  %347 = vmatprep.subr.bf16.mxu1 %v805_v6  ;;  %v811_v10 = vld [vmem:[%s1115_s2 + $0x4c] ss:$16 sps:$4 sm:$0xff]   ;;  %v813_v11 = vld [vmem:[%s1115_s2 + $0x40] ss:$16 sps:$4 sm:$0xff]   ;;  %v814_v12 = vld [vmem:[%s1115_s2 + $0x48] ss:$16 sps:$4 sm:$0xff]  }
   0x5   :  { %v815_v13 = vld [vmem:[%s1115_s2 + $0x64] ss:$16 sps:$4 sm:$0xff]   ;;  %v817_v14 = vld [vmem:[%s1115_s2 + $0x6c] ss:$16 sps:$4 sm:$0xff]   ;;  %v819_v15 = vld [vmem:[%s1115_s2 + $0x60] ss:$16 sps:$4 sm:$0xff]  }
   0x6   :  { %v820_v16 = vld [vmem:[%s1115_s2 + $0x68] ss:$16 sps:$4 sm:$0xff]   ;;  %v821_v17 = vld [vmem:[%s1115_s2 + $0x84] ss:$16 sps:$4 sm:$0xff]   ;;  %v823_v18 = vld [vmem:[%s1115_s2 + $0x8c] ss:$16 sps:$4 sm:$0xff]  }
   0x7   :  { %295 = vmatpush1.bf16.msra.mxu0 %v807_v7  ;;  %348 = vmatpush1.bf16.msra.mxu1 %v808_v8  ;;  %v954_v19 = vld [vmem:[%s1115_s2 + $0x80] ss:$16 sps:$4 sm:$0xff]   ;;  %v959_v20 = vld [vmem:[%s1115_s2 + $0x88] ss:$16 sps:$4 sm:$0xff]   ;;  %v827_v21 = vld [vmem:[%s1115_s2 + $0xa4] ss:$16 sps:$4 sm:$0xff]  }
   0x8   :  { %296 = vmatprep.subr.bf16.mxu0 %v809_v9  ;;  %349 = vmatprep.subr.bf16.mxu1 %v811_v10  ;;  %v829_v22 = vld [vmem:[%s1115_s2 + $0xac] ss:$16 sps:$4 sm:$0xff]   ;;  %v831_v23 = vld [vmem:[%s1115_s2 + $0xa0] ss:$16 sps:$4 sm:$0xff]   ;;  %v832_v24 = vld [vmem:[%s1115_s2 + $0xa8] ss:$16 sps:$4 sm:$0xff]  }
   0x9   :  { %v833_v25 = vld [vmem:[%s1115_s2 + $0xc4] ss:$16 sps:$4 sm:$0xff]   ;;  %v835_v26 = vld [vmem:[%s1115_s2 + $0xcc] ss:$16 sps:$4 sm:$0xff]   ;;  %v837_v27 = vld [vmem:[%s1115_s2 + $0xc0] ss:$16 sps:$4 sm:$0xff]  }
   0xa   :  { %v838_v28 = vld [vmem:[%s1115_s2 + $0xc8] ss:$16 sps:$4 sm:$0xff]   ;;  %v839_v29 = vld [vmem:[%s1115_s2 + $0xe4] ss:$16 sps:$4 sm:$0xff]   ;;  %v841_v30 = vld [vmem:[%s1115_s2 + $0xec] ss:$16 sps:$4 sm:$0xff]  }
   0xb   :  { %297 = vmatpush1.bf16.msra.mxu0 %v813_v11  ;;  %350 = vmatpush1.bf16.msra.mxu1 %v814_v12  ;;  %v853_v31 = vld [vmem:[%s1116_s0 + $0x4] ss:$8 sps:$4 sm:$0xff]   ;;  %v843_v32 = vld [vmem:[%s1115_s2 + $0xe0] ss:$16 sps:$4 sm:$0xff]   ;;  %v844_v33 = vld [vmem:[%s1115_s2 + $0xe8] ss:$16 sps:$4 sm:$0xff]  }
   0xc   :  { %298 = vmatprep.subr.bf16.mxu0 %v815_v13  ;;  %351 = vmatprep.subr.bf16.mxu1 %v817_v14  ;;  %v63_v34 = vld [vmem:[%s1118_s3] sm:$0xff]  ;;  %v847_v36 = vld [vmem:[%s1115_s2 + $0x10c] ss:$16 sps:$4 sm:$0xff]   ;;  %v65_v37 = vld [vmem:[%s1118_s3 + $0x10] sm:$0xff] }
   0xd   :  { %748 = vmatprep.mubr.msk.bf16.mxu0 %vm285_vm0, %v853_v31  ;;  %750 = vmatprep.mubr.msk.bf16.mxu1 %vm285_vm0, %v853_v31  ;;  %v845_v35 = vld [vmem:[%s1115_s2 + $0x104] ss:$16 sps:$4 sm:$0xff]   ;;  %v64_v38 = vld [vmem:[%s1118_s3 + $0x8] sm:$0xff]  ;;  %v66_v39 = vld [vmem:[%s1118_s3 + $0x18] sm:$0xff] }
   0xe   :  { %69 = vperm.xlu0 %795, %v63_v34   ;;  %79 = vperm.xlu1 %796, %v65_v37   ;;  %v849_v40 = vld [vmem:[%s1115_s2 + $0x100] ss:$16 sps:$4 sm:$0xff]   ;;  %v850_v41 = vld [vmem:[%s1115_s2 + $0x108] ss:$16 sps:$4 sm:$0xff]   ;;  %v854_v45 = vld [vmem:[%s1116_s0 + $0x14] ss:$8 sps:$4 sm:$0xff]  }
   0xf   :  { %299 = vmatpush1.bf16.msra.mxu0 %v819_v15  ;;  %352 = vmatpush1.bf16.msra.mxu1 %v820_v16  ;;  %v851_v42 = vld [vmem:[%s1116_s0] ss:$8 sps:$4 sm:$0xff]   ;;  %v481_v46 = vld [vmem:[%s1119_s4 + $0x18] sm:$0xff]  ;;  %v480_v47 = vld [vmem:[%s1119_s4 + $0x10] sm:$0xff] }
  0x10   :  { %300 = vmatprep.subr.bf16.mxu0 %v821_v17  ;;  %353 = vmatprep.subr.bf16.mxu1 %v823_v18  ;;  %v479_v43 = vld [vmem:[%s1119_s4 + $0x8] sm:$0xff]  ;;  %v478_v44 = vld [vmem:[%s1119_s4] sm:$0xff]  ;;  %v856_v48 = vld [vmem:[%s1116_s0 + $0x10] ss:$8 sps:$4 sm:$0xff]  }
  0x11   :  { %v857_v49 = vld [vmem:[%s1117_s1] sm:$0xff]   ;;  %v858_v50 = vld [vmem:[%s1117_s1 + $0x8] sm:$0xff]  }
  0x12   :  { %74 = vperm.xlu0 %795, %v64_v38   ;;  %84 = vperm.xlu1 %796, %v66_v39  }
  0x13   :  { %301 = vmatpush1.bf16.msra.mxu0 %v954_v19  ;;  %354 = vmatpush1.bf16.msra.mxu1 %v959_v20 }
  0x14   :  { %302 = vmatprep.subr.bf16.mxu0 %v827_v21  ;;  %355 = vmatprep.subr.bf16.mxu1 %v829_v22 }
  0x16   :  { %489 = vperm.xlu1 %796, %v479_v43   ;;  %484 = vperm.xlu0 %795, %v478_v44  }
  0x17   :  { %303 = vmatpush1.bf16.msra.mxu0 %v831_v23  ;;  %356 = vmatpush1.bf16.msra.mxu1 %v832_v24 }
  0x18   :  { %304 = vmatprep.subr.bf16.mxu0 %v833_v25  ;;  %357 = vmatprep.subr.bf16.mxu1 %v835_v26 }
  0x1a   :  { %499 = vperm.xlu1 %796, %v481_v46   ;;  %494 = vperm.xlu0 %795, %v480_v47  }
  0x1b   :  { %305 = vmatpush1.bf16.msra.mxu0 %v837_v27  ;;  %358 = vmatpush1.bf16.msra.mxu1 %v838_v28 }
  0x1c   :  { %306 = vmatprep.subr.bf16.mxu0 %v839_v29  ;;  %359 = vmatprep.subr.bf16.mxu1 %v841_v30 }
  0x1f   :  { %307 = vmatpush1.bf16.msra.mxu0 %v843_v32  ;;  %360 = vmatpush1.bf16.msra.mxu1 %v844_v33 }
  0x20   :  { %308 = vmatprep.subr.bf16.mxu0 %v845_v35  ;;  %361 = vmatprep.subr.bf16.mxu1 %v847_v36 }
  0x23   :  { %309 = vmatpush1.bf16.msra.mxu0 %v849_v40  ;;  %362 = vmatpush1.bf16.msra.mxu1 %v850_v41 }
  0x24   :  { %538 = vmatprep.subr.bf16.mxu0 %v821_v17  ;;  %591 = vmatprep.subr.bf16.mxu1 %v823_v18 }
  0x26   :  { %325 = vmatmul.mubr.bf16.vlgmr.msra.gmra.mrb[0].mxu0 %v851_v42  ;;  %378 = vmatmul.mubr.bf16.vlgmr.msra.gmra.mrb[0].mxu1 %v851_v42 }
  0x27   :  { %539 = vmatpush1.bf16.msra.mxu0 %v954_v19  ;;  %592 = vmatpush1.bf16.msra.mxu1 %v959_v20 }
  0x28   :  { %749 = vmatprep.mubr.msk.bf16.mxu0 %vm285_vm0, %v854_v45  ;;  %751 = vmatprep.mubr.msk.bf16.mxu1 %vm285_vm0, %v854_v45 }
  0x2e   :  { %335 = vmatmul.mubr.bf16.gmra.mrb[4].mxu0 %v856_v48  ;;  %388 = vmatmul.mubr.bf16.gmra.mrb[4].mxu1 %v856_v48 }
  0x2f   :  { %570 = vmatprep.mubr.bf16.mxu0 %v859_v1  ;;  %623 = vmatprep.mubr.bf16.mxu1 %v859_v1 }
  0x36   :  { %766 = vmatmul.mubr.msk.bf16.vlgmr.msra.gmra.mrb[8].mxu0 %vm285_vm0, %v857_v49  ;;  %768 = vmatmul.mubr.msk.bf16.vlgmr.msra.gmra.mrb[8].mxu1 %vm285_vm0, %v857_v49 }
  0x37   :  { %580 = vmatprep.mubr.bf16.mxu0 %v859_v1  ;;  %633 = vmatprep.mubr.bf16.mxu1 %v859_v1 }
  0x3e   :  { %767 = vmatmul.mubr.msk.bf16.gmra.mrb[12].mxu0 %vm285_vm0, %v858_v50  ;;  %769 = vmatmul.mubr.msk.bf16.gmra.mrb[12].mxu1 %vm285_vm0, %v858_v50 }
  0x8d   :  { %v70_v51 = vpop.permute.xlu0 %69  ;;  %v80_v53 = vpop.permute.xlu1 %79 }
  0x91   :  { %v75_v52 = vpop.permute.xlu0 %74  ;;  %v85_v16 = vpop.permute.xlu1 %84 }
  0x95   :  { %v490_v45 = vpop.permute.xlu1 %489  ;;  %v485_v46 = vpop.permute.xlu0 %484 }
  0xf9   :  { %v326_v54 = vpop.f32.mrb[0].mxu0  ;;  %v379_v55 = vpop.f32.mrb[0].mxu1 }
  0xfa   :  { %v327_v56 = vadd.f32 %v326_v54, %v70_v51  ;;  %v380_v57 = vadd.f32 %v379_v55, %v70_v51  ;;  %v328_v58 = vpop.f32.mrb[1].mxu0  ;;  %v381_v59 = vpop.f32.mrb[1].mxu1 }
  0xfb   :  { %v329_v60 = vadd.f32 %v328_v58, %v70_v51  ;;  %v382_v61 = vadd.f32 %v381_v59, %v70_v51  ;;  %v330_v62 = vpop.f32.mrb[2].mxu0  ;;  %v383_v63 = vpop.f32.mrb[2].mxu1 }
  0xfc   :  { %v398_v0 = vmax.f32 %v327_v56, 0.0  ;;  %v400_v1 = vmax.f32 %v380_v57, 0.0  ;;  %v331_v2 = vadd.f32 %v330_v62, %v75_v52  ;;  %v384_v3 = vadd.f32 %v383_v63, %v75_v52  ;;  %v332_v4 = vpop.f32.mrb[3].mxu0  ;;  %v385_v5 = vpop.f32.mrb[3].mxu1 }
  0xfd   :  { %v399_v6 = vmax.f32 %v329_v60, 0.0  ;;  %v401_v7 = vmax.f32 %v382_v61, 0.0  ;;  %v333_v8 = vadd.f32 %v332_v4, %v75_v52  ;;  %v386_v9 = vadd.f32 %v385_v5, %v75_v52  ;;  %v500_v5 = vpop.permute.xlu1 %499 }
  0xfe   :  { %v402_v10 = vmax.f32 %v331_v2, 0.0  ;;  %v404_v11 = vmax.f32 %v384_v3, 0.0 }
  0xff   :  { %v778_v12 = vpack.c.bf16 %v399_v6, %v398_v0  ;;  %v779_v13 = vpack.c.bf16 %v401_v7, %v400_v1  ;;  %v403_v14 = vmax.f32 %v333_v8, 0.0  ;;  %v405_v15 = vmax.f32 %v386_v9, 0.0  ;;  %v495_v6 = vpop.permute.xlu0 %494 }
 0x101   :  { %462 = vst [vmem:[%s1120_s5] sm:$0xff] %v778_v12  ;;  %463 = vst [vmem:[%s1120_s5 + $0x8] sm:$0xff] %v779_v13  ;;  %v780_v17 = vpack.c.bf16 %v403_v14, %v402_v10  ;;  %v781_v18 = vpack.c.bf16 %v405_v15, %v404_v11  ;;  %v336_v19 = vpop.f32.mrb[4].mxu0  ;;  %v389_v20 = vpop.f32.mrb[4].mxu1 }
 0x102   :  { %v337_v21 = vadd.f32 %v336_v19, %v80_v53  ;;  %v390_v22 = vadd.f32 %v389_v20, %v80_v53  ;;  %v338_v23 = vpop.f32.mrb[5].mxu0  ;;  %v391_v24 = vpop.f32.mrb[5].mxu1 }
 0x103   :  { %464 = vst [vmem:[%s1120_s5 + $0x10] sm:$0xff] %v780_v17  ;;  %465 = vst [vmem:[%s1120_s5 + $0x18] sm:$0xff] %v781_v18  ;;  %v339_v25 = vadd.f32 %v338_v23, %v80_v53  ;;  %v392_v26 = vadd.f32 %v391_v24, %v80_v53  ;;  %v340_v27 = vpop.f32.mrb[6].mxu0  ;;  %v393_v28 = vpop.f32.mrb[6].mxu1 }
 0x104   :  { %v406_v29 = vmax.f32 %v337_v21, 0.0  ;;  %v408_v30 = vmax.f32 %v390_v22, 0.0  ;;  %v341_v31 = vadd.f32 %v340_v27, %v85_v16  ;;  %v394_v32 = vadd.f32 %v393_v28, %v85_v16  ;;  %v342_v33 = vpop.f32.mrb[7].mxu0  ;;  %v395_v34 = vpop.f32.mrb[7].mxu1 }
 0x105   :  { %v407_v35 = vmax.f32 %v339_v25, 0.0  ;;  %v409_v36 = vmax.f32 %v392_v26, 0.0  ;;  %v343_v37 = vadd.f32 %v342_v33, %v85_v16  ;;  %v396_v38 = vadd.f32 %v395_v34, %v85_v16 }
 0x106   :  { %v410_v39 = vmax.f32 %v341_v31, 0.0  ;;  %v412_v40 = vmax.f32 %v394_v32, 0.0 }
 0x107   :  { %v782_v41 = vpack.c.bf16 %v407_v35, %v406_v29  ;;  %v783_v42 = vpack.c.bf16 %v409_v36, %v408_v30  ;;  %v411_v43 = vmax.f32 %v343_v37, 0.0  ;;  %v413_v44 = vmax.f32 %v396_v38, 0.0 }
 0x109   :  { %466 = vst [vmem:[%s1120_s5 + $0x20] sm:$0xff] %v782_v41  ;;  %467 = vst [vmem:[%s1120_s5 + $0x28] sm:$0xff] %v783_v42  ;;  %v784_v47 = vpack.c.bf16 %v411_v43, %v410_v39  ;;  %v785_v48 = vpack.c.bf16 %v413_v44, %v412_v40  ;;  %v572_v49 = vpop.f32.mrb[8].mxu0  ;;  %v625_v50 = vpop.f32.mrb[8].mxu1 }
 0x10a   :  { %v573_v51 = vadd.f32 %v572_v49, %v485_v46  ;;  %v626_v52 = vadd.f32 %v625_v50, %v485_v46  ;;  %v574_v53 = vpop.f32.mrb[9].mxu0  ;;  %v627_v54 = vpop.f32.mrb[9].mxu1 }
 0x10b   :  { %468 = vst [vmem:[%s1120_s5 + $0x30] sm:$0xff] %v784_v47  ;;  %469 = vst [vmem:[%s1120_s5 + $0x38] sm:$0xff] %v785_v48  ;;  %v575_v55 = vadd.f32 %v574_v53, %v485_v46  ;;  %v628_v56 = vadd.f32 %v627_v54, %v485_v46  ;;  %v576_v57 = vpop.f32.mrb[10].mxu0  ;;  %v629_v58 = vpop.f32.mrb[10].mxu1 }
 0x10c   :  { %v577_v59 = vadd.f32 %v576_v57, %v490_v45  ;;  %v630_v60 = vadd.f32 %v629_v58, %v490_v45  ;;  %v578_v61 = vpop.f32.mrb[11].mxu0  ;;  %v631_v62 = vpop.f32.mrb[11].mxu1 }
 0x10d   :  { %v786_v63 = vpack.c.bf16 %v575_v55, %v573_v51  ;;  %v787_v0 = vpack.c.bf16 %v628_v56, %v626_v52  ;;  %v579_v1 = vadd.f32 %v578_v61, %v490_v45  ;;  %v632_v2 = vadd.f32 %v631_v62, %v490_v45 }
 0x10f   :  { %692 = vst [vmem:[%s1121_s6] sm:$0xff] %v786_v63  ;;  %693 = vst [vmem:[%s1121_s6 + $0x8] sm:$0xff] %v787_v0  ;;  %v788_v3 = vpack.c.bf16 %v579_v1, %v577_v59  ;;  %v789_v4 = vpack.c.bf16 %v632_v2, %v630_v60 }
 0x111   :  { %694 = vst [vmem:[%s1121_s6 + $0x10] sm:$0xff] %v788_v3  ;;  %695 = vst [vmem:[%s1121_s6 + $0x18] sm:$0xff] %v789_v4  ;;  %v582_v7 = vpop.f32.mrb[12].mxu0  ;;  %v635_v8 = vpop.f32.mrb[12].mxu1 }
 0x112   :  { %v583_v9 = vadd.f32 %v582_v7, %v495_v6  ;;  %v636_v10 = vadd.f32 %v635_v8, %v495_v6  ;;  %v584_v11 = vpop.f32.mrb[13].mxu0  ;;  %v637_v12 = vpop.f32.mrb[13].mxu1 }
 0x113   :  { %v585_v13 = vadd.f32 %v584_v11, %v495_v6  ;;  %v638_v14 = vadd.f32 %v637_v12, %v495_v6  ;;  %v586_v15 = vpop.f32.mrb[14].mxu0  ;;  %v639_v16 = vpop.f32.mrb[14].mxu1 }
 0x114   :  { %v587_v17 = vadd.f32 %v586_v15, %v500_v5  ;;  %v640_v18 = vadd.f32 %v639_v16, %v500_v5  ;;  %v588_v19 = vpop.f32.mrb[15].mxu0  ;;  %v641_v20 = vpop.f32.mrb[15].mxu1 }
 0x115   :  { %v790_v21 = vpack.c.bf16 %v585_v13, %v583_v9  ;;  %v791_v22 = vpack.c.bf16 %v638_v14, %v636_v10  ;;  %v589_v23 = vadd.f32 %v588_v19, %v500_v5  ;;  %v642_v24 = vadd.f32 %v641_v20, %v500_v5 }
 0x117   :  { %696 = vst [vmem:[%s1121_s6 + $0x20] sm:$0xff] %v790_v21  ;;  %697 = vst [vmem:[%s1121_s6 + $0x28] sm:$0xff] %v791_v22  ;;  %v792_v25 = vpack.c.bf16 %v589_v23, %v587_v17  ;;  %v793_v26 = vpack.c.bf16 %v642_v24, %v640_v18 }
 0x119   :  { %698 = vst [vmem:[%s1121_s6 + $0x30] sm:$0xff] %v792_v25  ;;  %699 = vst [vmem:[%s1121_s6 + $0x38] sm:$0xff] %v793_v26 }

// kernel: resnet20_forward.28
= control target key start
LH: loop header
LB: loop body
LE: loop exit
PB: predicated region body
PF: predicated region fallthrough
CT: control target
= control target key end

     0   :  { %v1053_v1 = vmov 0   ;;  %vm509_vm0 = vcmask 261120   ;;  %s1350_s1 = inlined_call_operand.vmem [shape: bf16[288,512], index: 1, kind: input, shape index: {}]   ;;  %s1351_s0 = inlined_call_operand.vmem [shape: bf16[32,288], index: 0, kind: input, shape index: {}]   ;;  %s1352_s2 = inlined_call_operand.vmem [shape: f32[32,1], index: 2, kind: input, shape index: {}]   ;;  %s1353_s3 = inlined_call_operand.vmem [shape: bf16[32,512], index: 3, kind: output, shape index: {}]  }
   0x1   :  { %v937_v0 = vld [vmem:[%s1350_s1 + $0x4] ss:$16 sps:$4 sm:$0xff]   ;;  %935 = vset.pattern.permute.xlu0 %v1053_v1  ;;  %936 = vset.pattern.permute.xlu1 %v1053_v1  ;;  %v939_v2 = vld [vmem:[%s1350_s1 + $0xc] ss:$16 sps:$4 sm:$0xff]   ;;  %v941_v3 = vld [vmem:[%s1350_s1] ss:$16 sps:$4 sm:$0xff]  }
   0x2   :  { %516 = vmatprep.subr.bf16.mxu0 %v937_v0  ;;  %v942_v4 = vld [vmem:[%s1350_s1 + $0x8] ss:$16 sps:$4 sm:$0xff]   ;;  %622 = vmatprep.subr.bf16.mxu1 %v939_v2  ;;  %v943_v5 = vld [vmem:[%s1350_s1 + $0x24] ss:$16 sps:$4 sm:$0xff]   ;;  %v945_v6 = vld [vmem:[%s1350_s1 + $0x2c] ss:$16 sps:$4 sm:$0xff]  }
   0x3   :  { %517 = vmatpush1.bf16.msra.mxu0 %v941_v3  ;;  %623 = vmatpush1.bf16.msra.mxu1 %v942_v4  ;;  %v947_v7 = vld [vmem:[%s1350_s1 + $0x20] ss:$16 sps:$4 sm:$0xff]   ;;  %v948_v8 = vld [vmem:[%s1350_s1 + $0x28] ss:$16 sps:$4 sm:$0xff]   ;;  %v949_v9 = vld [vmem:[%s1350_s1 + $0x44] ss:$16 sps:$4 sm:$0xff]  }
   0x4   :  { %518 = vmatprep.subr.bf16.mxu0 %v943_v5  ;;  %624 = vmatprep.subr.bf16.mxu1 %v945_v6  ;;  %v951_v10 = vld [vmem:[%s1350_s1 + $0x4c] ss:$16 sps:$4 sm:$0xff]   ;;  %v953_v11 = vld [vmem:[%s1350_s1 + $0x40] ss:$16 sps:$4 sm:$0xff]   ;;  %v954_v12 = vld [vmem:[%s1350_s1 + $0x48] ss:$16 sps:$4 sm:$0xff]  }
   0x5   :  { %v955_v13 = vld [vmem:[%s1350_s1 + $0x64] ss:$16 sps:$4 sm:$0xff]   ;;  %v957_v14 = vld [vmem:[%s1350_s1 + $0x6c] ss:$16 sps:$4 sm:$0xff]   ;;  %v959_v15 = vld [vmem:[%s1350_s1 + $0x60] ss:$16 sps:$4 sm:$0xff]  }
   0x6   :  { %v960_v16 = vld [vmem:[%s1350_s1 + $0x68] ss:$16 sps:$4 sm:$0xff]   ;;  %v961_v17 = vld [vmem:[%s1350_s1 + $0x84] ss:$16 sps:$4 sm:$0xff]   ;;  %v963_v18 = vld [vmem:[%s1350_s1 + $0x8c] ss:$16 sps:$4 sm:$0xff]  }
   0x7   :  { %519 = vmatpush1.bf16.msra.mxu0 %v947_v7  ;;  %625 = vmatpush1.bf16.msra.mxu1 %v948_v8  ;;  %v965_v19 = vld [vmem:[%s1350_s1 + $0x80] ss:$16 sps:$4 sm:$0xff]   ;;  %v966_v20 = vld [vmem:[%s1350_s1 + $0x88] ss:$16 sps:$4 sm:$0xff]   ;;  %v967_v21 = vld [vmem:[%s1350_s1 + $0xa4] ss:$16 sps:$4 sm:$0xff]  }
   0x8   :  { %520 = vmatprep.subr.bf16.mxu0 %v949_v9  ;;  %626 = vmatprep.subr.bf16.mxu1 %v951_v10  ;;  %v969_v22 = vld [vmem:[%s1350_s1 + $0xac] ss:$16 sps:$4 sm:$0xff]   ;;  %v971_v23 = vld [vmem:[%s1350_s1 + $0xa0] ss:$16 sps:$4 sm:$0xff]   ;;  %v972_v24 = vld [vmem:[%s1350_s1 + $0xa8] ss:$16 sps:$4 sm:$0xff]  }
   0x9   :  { %v973_v25 = vld [vmem:[%s1350_s1 + $0xc4] ss:$16 sps:$4 sm:$0xff]   ;;  %v975_v26 = vld [vmem:[%s1350_s1 + $0xcc] ss:$16 sps:$4 sm:$0xff]   ;;  %v977_v27 = vld [vmem:[%s1350_s1 + $0xc0] ss:$16 sps:$4 sm:$0xff]  }
   0xa   :  { %v978_v28 = vld [vmem:[%s1350_s1 + $0xc8] ss:$16 sps:$4 sm:$0xff]   ;;  %v979_v29 = vld [vmem:[%s1350_s1 + $0xe4] ss:$16 sps:$4 sm:$0xff]   ;;  %v981_v30 = vld [vmem:[%s1350_s1 + $0xec] ss:$16 sps:$4 sm:$0xff]  }
   0xb   :  { %521 = vmatpush1.bf16.msra.mxu0 %v953_v11  ;;  %627 = vmatpush1.bf16.msra.mxu1 %v954_v12  ;;  %v983_v31 = vld [vmem:[%s1350_s1 + $0xe0] ss:$16 sps:$4 sm:$0xff]   ;;  %v984_v32 = vld [vmem:[%s1350_s1 + $0xe8] ss:$16 sps:$4 sm:$0xff]   ;;  %v985_v33 = vld [vmem:[%s1350_s1 + $0x104] ss:$16 sps:$4 sm:$0xff]  }
   0xc   :  { %522 = vmatprep.subr.bf16.mxu0 %v955_v13  ;;  %628 = vmatprep.subr.bf16.mxu1 %v957_v14  ;;  %v987_v34 = vld [vmem:[%s1350_s1 + $0x10c] ss:$16 sps:$4 sm:$0xff]   ;;  %v989_v35 = vld [vmem:[%s1350_s1 + $0x100] ss:$16 sps:$4 sm:$0xff]   ;;  %v990_v36 = vld [vmem:[%s1350_s1 + $0x108] ss:$16 sps:$4 sm:$0xff]  }
   0xd   :  { %v991_v37 = vld [vmem:[%s1350_s1 + $0x124] ss:$16 sps:$4 sm:$0xff]   ;;  %v993_v38 = vld [vmem:[%s1350_s1 + $0x12c] ss:$16 sps:$4 sm:$0xff]   ;;  %v995_v39 = vld [vmem:[%s1350_s1 + $0x120] ss:$16 sps:$4 sm:$0xff]  }
   0xe   :  { %v996_v40 = vld [vmem:[%s1350_s1 + $0x128] ss:$16 sps:$4 sm:$0xff]   ;;  %v997_v41 = vld [vmem:[%s1350_s1 + $0x144] ss:$16 sps:$4 sm:$0xff]   ;;  %v999_v42 = vld [vmem:[%s1350_s1 + $0x14c] ss:$16 sps:$4 sm:$0xff]  }
   0xf   :  { %523 = vmatpush1.bf16.msra.mxu0 %v959_v15  ;;  %629 = vmatpush1.bf16.msra.mxu1 %v960_v16  ;;  %v1001_v43 = vld [vmem:[%s1350_s1 + $0x140] ss:$16 sps:$4 sm:$0xff]   ;;  %v1002_v44 = vld [vmem:[%s1350_s1 + $0x148] ss:$16 sps:$4 sm:$0xff]   ;;  %v1003_v45 = vld [vmem:[%s1350_s1 + $0x164] ss:$16 sps:$4 sm:$0xff]  }
  0x10   :  { %524 = vmatprep.subr.bf16.mxu0 %v961_v17  ;;  %630 = vmatprep.subr.bf16.mxu1 %v963_v18  ;;  %v1005_v46 = vld [vmem:[%s1350_s1 + $0x16c] ss:$16 sps:$4 sm:$0xff]   ;;  %v1007_v47 = vld [vmem:[%s1350_s1 + $0x160] ss:$16 sps:$4 sm:$0xff]   ;;  %v1008_v48 = vld [vmem:[%s1350_s1 + $0x168] ss:$16 sps:$4 sm:$0xff]  }
  0x11   :  { %v1035_v49 = vld [vmem:[%s1351_s0 + $0x4] ss:$12 sps:$4 sm:$0xff]   ;;  %v1011_v51 = vld [vmem:[%s1350_s1 + $0x18c] ss:$16 sps:$4 sm:$0xff]   ;;  %v1014_v53 = vld [vmem:[%s1350_s1 + $0x188] ss:$16 sps:$4 sm:$0xff]  }
  0x12   :  { %v1009_v50 = vld [vmem:[%s1350_s1 + $0x184] ss:$16 sps:$4 sm:$0xff]   ;;  %548 = vmatprep.mubr.bf16.mxu0 %v1035_v49  ;;  %654 = vmatprep.mubr.bf16.mxu1 %v1035_v49  ;;  %v1013_v52 = vld [vmem:[%s1350_s1 + $0x180] ss:$16 sps:$4 sm:$0xff]   ;;  %v1017_v55 = vld [vmem:[%s1350_s1 + $0x1ac] ss:$16 sps:$4 sm:$0xff]  }
  0x13   :  { %525 = vmatpush1.bf16.msra.mxu0 %v965_v19  ;;  %631 = vmatpush1.bf16.msra.mxu1 %v966_v20  ;;  %v1015_v54 = vld [vmem:[%s1350_s1 + $0x1a4] ss:$16 sps:$4 sm:$0xff]   ;;  %v1019_v56 = vld [vmem:[%s1350_s1 + $0x1a0] ss:$16 sps:$4 sm:$0xff]   ;;  %v1020_v57 = vld [vmem:[%s1350_s1 + $0x1a8] ss:$16 sps:$4 sm:$0xff]  }
  0x14   :  { %526 = vmatprep.subr.bf16.mxu0 %v967_v21  ;;  %632 = vmatprep.subr.bf16.mxu1 %v969_v22  ;;  %v95_v58 = vld [vmem:[%s1352_s2] sm:$0xff]  ;;  %v1023_v60 = vld [vmem:[%s1350_s1 + $0x1cc] ss:$16 sps:$4 sm:$0xff]   ;;  %v97_v61 = vld [vmem:[%s1352_s2 + $0x10] sm:$0xff] }
  0x15   :  { %v1021_v59 = vld [vmem:[%s1350_s1 + $0x1c4] ss:$16 sps:$4 sm:$0xff]   ;;  %101 = vperm.xlu0 %935, %v95_v58   ;;  %111 = vperm.xlu1 %936, %v97_v61   ;;  %v96_v62 = vld [vmem:[%s1352_s2 + $0x8] sm:$0xff]  ;;  %v98_v63 = vld [vmem:[%s1352_s2 + $0x18] sm:$0xff] }
  0x16   :  { %v1025_v0 = vld [vmem:[%s1350_s1 + $0x1c0] ss:$16 sps:$4 sm:$0xff]   ;;  %v1026_v2 = vld [vmem:[%s1350_s1 + $0x1c8] ss:$16 sps:$4 sm:$0xff]   ;;  %v1027_v3 = vld [vmem:[%s1350_s1 + $0x1e4] ss:$16 sps:$4 sm:$0xff]  }
  0x17   :  { %527 = vmatpush1.bf16.msra.mxu0 %v971_v23  ;;  %633 = vmatpush1.bf16.msra.mxu1 %v972_v24  ;;  %v1029_v4 = vld [vmem:[%s1350_s1 + $0x1ec] ss:$16 sps:$4 sm:$0xff]   ;;  %v1031_v5 = vld [vmem:[%s1350_s1 + $0x1e0] ss:$16 sps:$4 sm:$0xff]   ;;  %v1032_v6 = vld [vmem:[%s1350_s1 + $0x1e8] ss:$16 sps:$4 sm:$0xff]  }
  0x18   :  { %528 = vmatprep.subr.bf16.mxu0 %v973_v25  ;;  %634 = vmatprep.subr.bf16.mxu1 %v975_v26  ;;  %v1038_v7 = vld [vmem:[%s1350_s1 + $0x204] ss:$16 sps:$4 sm:$0xff]   ;;  %v1041_v8 = vld [vmem:[%s1350_s1 + $0x20c] ss:$16 sps:$4 sm:$0xff]   ;;  %v1036_v10 = vld [vmem:[%s1350_s1 + $0x200] ss:$16 sps:$4 sm:$0xff]  }
  0x19   :  { %106 = vperm.xlu0 %935, %v96_v62   ;;  %116 = vperm.xlu1 %936, %v98_v63   ;;  %v1033_v9 = vld [vmem:[%s1351_s0] ss:$12 sps:$4 sm:$0xff]   ;;  %v1039_v11 = vld [vmem:[%s1350_s1 + $0x208] ss:$16 sps:$4 sm:$0xff]   ;;  %v1047_v13 = vld [vmem:[%s1350_s1 + $0x224] ss:$16 sps:$4 sm:$0xff]  }
  0x1a   :  { %v1042_v12 = vld [vmem:[%s1351_s0 + $0x1c] ss:$12 sps:$4 sm:$0xff]   ;;  %v1045_v15 = vld [vmem:[%s1350_s1 + $0x220] ss:$16 sps:$4 sm:$0xff]   ;;  %v1044_v17 = vld [vmem:[%s1351_s0 + $0x18] ss:$12 sps:$4 sm:$0xff]  }
  0x1b   :  { %529 = vmatpush1.bf16.msra.mxu0 %v977_v27  ;;  %635 = vmatpush1.bf16.msra.mxu1 %v978_v28  ;;  %v1050_v14 = vld [vmem:[%s1350_s1 + $0x22c] ss:$16 sps:$4 sm:$0xff]   ;;  %v1048_v16 = vld [vmem:[%s1350_s1 + $0x228] ss:$16 sps:$4 sm:$0xff]  }
  0x1c   :  { %530 = vmatprep.subr.bf16.mxu0 %v979_v29  ;;  %636 = vmatprep.subr.bf16.mxu1 %v981_v30  ;;  %v1051_v18 = vld [vmem:[%s1351_s0 + $0x8] ss:$12 sps:$4 sm:$0xff]   ;;  %v1052_v19 = vld [vmem:[%s1351_s0 + $0x20] ss:$12 sps:$4 sm:$0xff]  }
  0x1f   :  { %531 = vmatpush1.bf16.msra.mxu0 %v983_v31  ;;  %637 = vmatpush1.bf16.msra.mxu1 %v984_v32 }
  0x20   :  { %532 = vmatprep.subr.bf16.mxu0 %v985_v33  ;;  %638 = vmatprep.subr.bf16.mxu1 %v987_v34 }
  0x23   :  { %533 = vmatpush1.bf16.msra.mxu0 %v989_v35  ;;  %639 = vmatpush1.bf16.msra.mxu1 %v990_v36 }
  0x24   :  { %534 = vmatprep.subr.bf16.mxu0 %v991_v37  ;;  %640 = vmatprep.subr.bf16.mxu1 %v993_v38 }
  0x27   :  { %535 = vmatpush1.bf16.msra.mxu0 %v995_v39  ;;  %641 = vmatpush1.bf16.msra.mxu1 %v996_v40 }
  0x28   :  { %536 = vmatprep.subr.bf16.mxu0 %v997_v41  ;;  %642 = vmatprep.subr.bf16.mxu1 %v999_v42 }
  0x2b   :  { %537 = vmatpush1.bf16.msra.mxu0 %v1001_v43  ;;  %643 = vmatpush1.bf16.msra.mxu1 %v1002_v44 }
  0x2c   :  { %538 = vmatprep.subr.bf16.mxu0 %v1003_v45  ;;  %644 = vmatprep.subr.bf16.mxu1 %v1005_v46 }
  0x2f   :  { %539 = vmatpush1.bf16.msra.mxu0 %v1007_v47  ;;  %645 = vmatpush1.bf16.msra.mxu1 %v1008_v48 }
  0x30   :  { %540 = vmatprep.subr.bf16.mxu0 %v1009_v50  ;;  %646 = vmatprep.subr.bf16.mxu1 %v1011_v51 }
  0x33   :  { %541 = vmatpush1.bf16.msra.mxu0 %v1013_v52  ;;  %647 = vmatpush1.bf16.msra.mxu1 %v1014_v53 }
  0x34   :  { %542 = vmatprep.subr.bf16.mxu0 %v1015_v54  ;;  %648 = vmatprep.subr.bf16.mxu1 %v1017_v55 }
  0x37   :  { %543 = vmatpush1.bf16.msra.mxu0 %v1019_v56  ;;  %649 = vmatpush1.bf16.msra.mxu1 %v1020_v57 }
  0x38   :  { %544 = vmatprep.subr.bf16.mxu0 %v1021_v59  ;;  %650 = vmatprep.subr.bf16.mxu1 %v1023_v60 }
  0x3b   :  { %545 = vmatpush1.bf16.msra.mxu0 %v1025_v0  ;;  %651 = vmatpush1.bf16.msra.mxu1 %v1026_v2 }
  0x3c   :  { %546 = vmatprep.subr.bf16.mxu0 %v1027_v3  ;;  %652 = vmatprep.subr.bf16.mxu1 %v1029_v4 }
  0x3f   :  { %547 = vmatpush1.bf16.msra.mxu0 %v1031_v5  ;;  %653 = vmatpush1.bf16.msra.mxu1 %v1032_v6 }
  0x40   :  { %569 = vmatprep.subr.bf16.mxu0 %v1038_v7  ;;  %675 = vmatprep.subr.bf16.mxu1 %v1041_v8 }
  0x42   :  { %549 = vmatmul.mubr.bf16.vlgmr.msra.gmra.mrb[0].mxu0 %v1033_v9  ;;  %655 = vmatmul.mubr.bf16.vlgmr.msra.gmra.mrb[0].mxu1 %v1033_v9 }
  0x43   :  { %570 = vmatpush1.bf16.msra.mxu0 %v1036_v10  ;;  %676 = vmatpush1.bf16.msra.mxu1 %v1039_v11 }
  0x44   :  { %558 = vmatprep.mubr.bf16.mxu0 %v1042_v12  ;;  %664 = vmatprep.mubr.bf16.mxu1 %v1042_v12 }
  0x45   :  { %571 = vmatprep.subr.bf16.mxu0 %v1047_v13  ;;  %677 = vmatprep.subr.bf16.mxu1 %v1050_v14 }
  0x47   :  { %572 = vmatpush1.bf16.msra.mxu0 %v1045_v15  ;;  %678 = vmatpush1.bf16.msra.mxu1 %v1048_v16 }
  0x4a   :  { %559 = vmatmul.mubr.bf16.gmra.mrb[4].mxu0 %v1044_v17  ;;  %665 = vmatmul.mubr.bf16.gmra.mrb[4].mxu1 %v1044_v17 }
  0x4b   :  { %601 = vmatprep.mubr.bf16.mxu0 %v1053_v1  ;;  %707 = vmatprep.mubr.bf16.mxu1 %v1053_v1 }
  0x52   :  { %882 = vmatmul.mubr.msk.bf16.vlgmr.msra.gmra.mrb[0].mxu0 %vm509_vm0, %v1051_v18  ;;  %884 = vmatmul.mubr.msk.bf16.vlgmr.msra.gmra.mrb[0].mxu1 %vm509_vm0, %v1051_v18 }
  0x53   :  { %611 = vmatprep.mubr.bf16.mxu0 %v1053_v1  ;;  %717 = vmatprep.mubr.bf16.mxu1 %v1053_v1 }
  0x5a   :  { %883 = vmatmul.mubr.msk.bf16.gmra.mrb[4].mxu0 %vm509_vm0, %v1052_v19  ;;  %885 = vmatmul.mubr.msk.bf16.gmra.mrb[4].mxu1 %vm509_vm0, %v1052_v19 }
  0x94   :  { %v102_v20 = vpop.permute.xlu0 %101  ;;  %v112_v22 = vpop.permute.xlu1 %111 }
  0x98   :  { %v107_v21 = vpop.permute.xlu0 %106  ;;  %v117_v48 = vpop.permute.xlu1 %116 }
 0x125   :  { %v603_v23 = vpop.f32.mrb[0].mxu0  ;;  %v709_v24 = vpop.f32.mrb[0].mxu1 }
 0x126   :  { %v902_v25 = vadd.f32 %v603_v23, %v102_v20  ;;  %v910_v26 = vadd.f32 %v709_v24, %v102_v20  ;;  %v605_v27 = vpop.f32.mrb[1].mxu0  ;;  %v711_v28 = vpop.f32.mrb[1].mxu1 }
 0x127   :  { %v903_v29 = vadd.f32 %v605_v27, %v102_v20  ;;  %v911_v30 = vadd.f32 %v711_v28, %v102_v20  ;;  %v607_v31 = vpop.f32.mrb[2].mxu0  ;;  %v713_v32 = vpop.f32.mrb[2].mxu1 }
 0x128   :  { %v728_v1 = vmax.f32 %v902_v25, 0.0  ;;  %v730_v33 = vmax.f32 %v910_v26, 0.0  ;;  %v904_v34 = vadd.f32 %v607_v31, %v107_v21  ;;  %v912_v35 = vadd.f32 %v713_v32, %v107_v21  ;;  %v609_v36 = vpop.f32.mrb[3].mxu0  ;;  %v715_v37 = vpop.f32.mrb[3].mxu1 }
 0x129   :  { %v729_v38 = vmax.f32 %v903_v29, 0.0  ;;  %v731_v39 = vmax.f32 %v911_v30, 0.0  ;;  %v905_v40 = vadd.f32 %v609_v36, %v107_v21  ;;  %v913_v41 = vadd.f32 %v715_v37, %v107_v21 }
 0x12a   :  { %v732_v42 = vmax.f32 %v904_v34, 0.0  ;;  %v734_v43 = vmax.f32 %v912_v35, 0.0 }
 0x12b   :  { %v894_v44 = vpack.c.bf16 %v729_v38, %v728_v1  ;;  %v895_v45 = vpack.c.bf16 %v731_v39, %v730_v33  ;;  %v733_v46 = vmax.f32 %v905_v40, 0.0  ;;  %v735_v47 = vmax.f32 %v913_v41, 0.0 }
 0x12d   :  { %792 = vst [vmem:[%s1353_s3] sm:$0xff] %v894_v44  ;;  %793 = vst [vmem:[%s1353_s3 + $0x8] sm:$0xff] %v895_v45  ;;  %v896_v49 = vpack.c.bf16 %v733_v46, %v732_v42  ;;  %v897_v50 = vpack.c.bf16 %v735_v47, %v734_v43  ;;  %v613_v51 = vpop.f32.mrb[4].mxu0  ;;  %v719_v52 = vpop.f32.mrb[4].mxu1 }
 0x12e   :  { %v906_v53 = vadd.f32 %v613_v51, %v112_v22  ;;  %v914_v54 = vadd.f32 %v719_v52, %v112_v22  ;;  %v615_v55 = vpop.f32.mrb[5].mxu0  ;;  %v721_v56 = vpop.f32.mrb[5].mxu1 }
 0x12f   :  { %794 = vst [vmem:[%s1353_s3 + $0x10] sm:$0xff] %v896_v49  ;;  %795 = vst [vmem:[%s1353_s3 + $0x18] sm:$0xff] %v897_v50  ;;  %v907_v57 = vadd.f32 %v615_v55, %v112_v22  ;;  %v915_v58 = vadd.f32 %v721_v56, %v112_v22  ;;  %v617_v59 = vpop.f32.mrb[6].mxu0  ;;  %v723_v60 = vpop.f32.mrb[6].mxu1 }
 0x130   :  { %v736_v61 = vmax.f32 %v906_v53, 0.0  ;;  %v738_v62 = vmax.f32 %v914_v54, 0.0  ;;  %v908_v63 = vadd.f32 %v617_v59, %v117_v48  ;;  %v916_v0 = vadd.f32 %v723_v60, %v117_v48  ;;  %v619_v2 = vpop.f32.mrb[7].mxu0  ;;  %v725_v3 = vpop.f32.mrb[7].mxu1 }
 0x131   :  { %v737_v4 = vmax.f32 %v907_v57, 0.0  ;;  %v739_v5 = vmax.f32 %v915_v58, 0.0  ;;  %v909_v6 = vadd.f32 %v619_v2, %v117_v48  ;;  %v917_v7 = vadd.f32 %v725_v3, %v117_v48 }
 0x132   :  { %v740_v8 = vmax.f32 %v908_v63, 0.0  ;;  %v742_v9 = vmax.f32 %v916_v0, 0.0 }
 0x133   :  { %v898_v10 = vpack.c.bf16 %v737_v4, %v736_v61  ;;  %v899_v11 = vpack.c.bf16 %v739_v5, %v738_v62  ;;  %v741_v12 = vmax.f32 %v909_v6, 0.0  ;;  %v743_v13 = vmax.f32 %v917_v7, 0.0 }
 0x135   :  { %796 = vst [vmem:[%s1353_s3 + $0x20] sm:$0xff] %v898_v10  ;;  %797 = vst [vmem:[%s1353_s3 + $0x28] sm:$0xff] %v899_v11  ;;  %v900_v14 = vpack.c.bf16 %v741_v12, %v740_v8  ;;  %v901_v15 = vpack.c.bf16 %v743_v13, %v742_v9 }
 0x137   :  { %798 = vst [vmem:[%s1353_s3 + $0x30] sm:$0xff] %v900_v14  ;;  %799 = vst [vmem:[%s1353_s3 + $0x38] sm:$0xff] %v901_v15 }

// kernel: resnet20_forward.27
= control target key start
LH: loop header
LB: loop body
LE: loop exit
PB: predicated region body
PF: predicated region fallthrough
CT: control target
= control target key end

     0   :  { %v1096_v1 = vmov 0   ;;  %vm512_vm0 = vcmask 261120   ;;  %s1430_s1 = inlined_call_operand.vmem [shape: bf16[288,512], index: 1, kind: input, shape index: {}]   ;;  %s1431_s0 = inlined_call_operand.vmem [shape: bf16[32,288], index: 0, kind: input, shape index: {}]   ;;  %s1432_s2 = inlined_call_operand.vmem [shape: f32[32,1], index: 2, kind: input, shape index: {}]   ;;  %s1433_s3 = inlined_call_operand.vmem [shape: bf16[32,512], index: 3, kind: input, shape index: {}]   ;;  %s1434_s4 = inlined_call_operand.vmem [shape: bf16[32,512], index: 4, kind: output, shape index: {}]  }
   0x1   :  { %v980_v0 = vld [vmem:[%s1430_s1 + $0x4] ss:$16 sps:$4 sm:$0xff]   ;;  %978 = vset.pattern.permute.xlu0 %v1096_v1  ;;  %979 = vset.pattern.permute.xlu1 %v1096_v1  ;;  %v982_v2 = vld [vmem:[%s1430_s1 + $0xc] ss:$16 sps:$4 sm:$0xff]   ;;  %v984_v3 = vld [vmem:[%s1430_s1] ss:$16 sps:$4 sm:$0xff]  }
   0x2   :  { %519 = vmatprep.subr.bf16.mxu0 %v980_v0  ;;  %v985_v4 = vld [vmem:[%s1430_s1 + $0x8] ss:$16 sps:$4 sm:$0xff]   ;;  %625 = vmatprep.subr.bf16.mxu1 %v982_v2  ;;  %v986_v5 = vld [vmem:[%s1430_s1 + $0x24] ss:$16 sps:$4 sm:$0xff]   ;;  %v988_v6 = vld [vmem:[%s1430_s1 + $0x2c] ss:$16 sps:$4 sm:$0xff]  }
   0x3   :  { %520 = vmatpush1.bf16.msra.mxu0 %v984_v3  ;;  %626 = vmatpush1.bf16.msra.mxu1 %v985_v4  ;;  %v990_v7 = vld [vmem:[%s1430_s1 + $0x20] ss:$16 sps:$4 sm:$0xff]   ;;  %v991_v8 = vld [vmem:[%s1430_s1 + $0x28] ss:$16 sps:$4 sm:$0xff]   ;;  %v992_v9 = vld [vmem:[%s1430_s1 + $0x44] ss:$16 sps:$4 sm:$0xff]  }
   0x4   :  { %521 = vmatprep.subr.bf16.mxu0 %v986_v5  ;;  %627 = vmatprep.subr.bf16.mxu1 %v988_v6  ;;  %v994_v10 = vld [vmem:[%s1430_s1 + $0x4c] ss:$16 sps:$4 sm:$0xff]   ;;  %v996_v11 = vld [vmem:[%s1430_s1 + $0x40] ss:$16 sps:$4 sm:$0xff]   ;;  %v997_v12 = vld [vmem:[%s1430_s1 + $0x48] ss:$16 sps:$4 sm:$0xff]  }
   0x5   :  { %v998_v13 = vld [vmem:[%s1430_s1 + $0x64] ss:$16 sps:$4 sm:$0xff]   ;;  %v1000_v14 = vld [vmem:[%s1430_s1 + $0x6c] ss:$16 sps:$4 sm:$0xff]   ;;  %v1002_v15 = vld [vmem:[%s1430_s1 + $0x60] ss:$16 sps:$4 sm:$0xff]  }
   0x6   :  { %v1003_v16 = vld [vmem:[%s1430_s1 + $0x68] ss:$16 sps:$4 sm:$0xff]   ;;  %v1004_v17 = vld [vmem:[%s1430_s1 + $0x84] ss:$16 sps:$4 sm:$0xff]   ;;  %v1006_v18 = vld [vmem:[%s1430_s1 + $0x8c] ss:$16 sps:$4 sm:$0xff]  }
   0x7   :  { %522 = vmatpush1.bf16.msra.mxu0 %v990_v7  ;;  %628 = vmatpush1.bf16.msra.mxu1 %v991_v8  ;;  %v1008_v19 = vld [vmem:[%s1430_s1 + $0x80] ss:$16 sps:$4 sm:$0xff]   ;;  %v1009_v20 = vld [vmem:[%s1430_s1 + $0x88] ss:$16 sps:$4 sm:$0xff]   ;;  %v1010_v21 = vld [vmem:[%s1430_s1 + $0xa4] ss:$16 sps:$4 sm:$0xff]  }
   0x8   :  { %523 = vmatprep.subr.bf16.mxu0 %v992_v9  ;;  %629 = vmatprep.subr.bf16.mxu1 %v994_v10  ;;  %v1012_v22 = vld [vmem:[%s1430_s1 + $0xac] ss:$16 sps:$4 sm:$0xff]   ;;  %v1014_v23 = vld [vmem:[%s1430_s1 + $0xa0] ss:$16 sps:$4 sm:$0xff]   ;;  %v1015_v24 = vld [vmem:[%s1430_s1 + $0xa8] ss:$16 sps:$4 sm:$0xff]  }
   0x9   :  { %v1016_v25 = vld [vmem:[%s1430_s1 + $0xc4] ss:$16 sps:$4 sm:$0xff]   ;;  %v1018_v26 = vld [vmem:[%s1430_s1 + $0xcc] ss:$16 sps:$4 sm:$0xff]   ;;  %v1020_v27 = vld [vmem:[%s1430_s1 + $0xc0] ss:$16 sps:$4 sm:$0xff]  }
   0xa   :  { %v1021_v28 = vld [vmem:[%s1430_s1 + $0xc8] ss:$16 sps:$4 sm:$0xff]   ;;  %v1022_v29 = vld [vmem:[%s1430_s1 + $0xe4] ss:$16 sps:$4 sm:$0xff]   ;;  %v1024_v30 = vld [vmem:[%s1430_s1 + $0xec] ss:$16 sps:$4 sm:$0xff]  }
   0xb   :  { %524 = vmatpush1.bf16.msra.mxu0 %v996_v11  ;;  %630 = vmatpush1.bf16.msra.mxu1 %v997_v12  ;;  %v1026_v31 = vld [vmem:[%s1430_s1 + $0xe0] ss:$16 sps:$4 sm:$0xff]   ;;  %v1027_v32 = vld [vmem:[%s1430_s1 + $0xe8] ss:$16 sps:$4 sm:$0xff]   ;;  %v1028_v33 = vld [vmem:[%s1430_s1 + $0x104] ss:$16 sps:$4 sm:$0xff]  }
   0xc   :  { %525 = vmatprep.subr.bf16.mxu0 %v998_v13  ;;  %631 = vmatprep.subr.bf16.mxu1 %v1000_v14  ;;  %v1030_v34 = vld [vmem:[%s1430_s1 + $0x10c] ss:$16 sps:$4 sm:$0xff]   ;;  %v1032_v35 = vld [vmem:[%s1430_s1 + $0x100] ss:$16 sps:$4 sm:$0xff]   ;;  %v1033_v36 = vld [vmem:[%s1430_s1 + $0x108] ss:$16 sps:$4 sm:$0xff]  }
   0xd   :  { %v1034_v37 = vld [vmem:[%s1430_s1 + $0x124] ss:$16 sps:$4 sm:$0xff]   ;;  %v1036_v38 = vld [vmem:[%s1430_s1 + $0x12c] ss:$16 sps:$4 sm:$0xff]   ;;  %v1038_v39 = vld [vmem:[%s1430_s1 + $0x120] ss:$16 sps:$4 sm:$0xff]  }
   0xe   :  { %v1039_v40 = vld [vmem:[%s1430_s1 + $0x128] ss:$16 sps:$4 sm:$0xff]   ;;  %v1040_v41 = vld [vmem:[%s1430_s1 + $0x144] ss:$16 sps:$4 sm:$0xff]   ;;  %v1042_v42 = vld [vmem:[%s1430_s1 + $0x14c] ss:$16 sps:$4 sm:$0xff]  }
   0xf   :  { %526 = vmatpush1.bf16.msra.mxu0 %v1002_v15  ;;  %632 = vmatpush1.bf16.msra.mxu1 %v1003_v16  ;;  %v1044_v43 = vld [vmem:[%s1430_s1 + $0x140] ss:$16 sps:$4 sm:$0xff]   ;;  %v1045_v44 = vld [vmem:[%s1430_s1 + $0x148] ss:$16 sps:$4 sm:$0xff]   ;;  %v1046_v45 = vld [vmem:[%s1430_s1 + $0x164] ss:$16 sps:$4 sm:$0xff]  }
  0x10   :  { %527 = vmatprep.subr.bf16.mxu0 %v1004_v17  ;;  %633 = vmatprep.subr.bf16.mxu1 %v1006_v18  ;;  %v1048_v46 = vld [vmem:[%s1430_s1 + $0x16c] ss:$16 sps:$4 sm:$0xff]   ;;  %v1050_v47 = vld [vmem:[%s1430_s1 + $0x160] ss:$16 sps:$4 sm:$0xff]   ;;  %v1051_v48 = vld [vmem:[%s1430_s1 + $0x168] ss:$16 sps:$4 sm:$0xff]  }
  0x11   :  { %v1078_v49 = vld [vmem:[%s1431_s0 + $0x4] ss:$12 sps:$4 sm:$0xff]   ;;  %v1054_v51 = vld [vmem:[%s1430_s1 + $0x18c] ss:$16 sps:$4 sm:$0xff]   ;;  %v1057_v53 = vld [vmem:[%s1430_s1 + $0x188] ss:$16 sps:$4 sm:$0xff]  }
  0x12   :  { %v1052_v50 = vld [vmem:[%s1430_s1 + $0x184] ss:$16 sps:$4 sm:$0xff]   ;;  %551 = vmatprep.mubr.bf16.mxu0 %v1078_v49  ;;  %657 = vmatprep.mubr.bf16.mxu1 %v1078_v49  ;;  %v1056_v52 = vld [vmem:[%s1430_s1 + $0x180] ss:$16 sps:$4 sm:$0xff]   ;;  %v1060_v55 = vld [vmem:[%s1430_s1 + $0x1ac] ss:$16 sps:$4 sm:$0xff]  }
  0x13   :  { %528 = vmatpush1.bf16.msra.mxu0 %v1008_v19  ;;  %634 = vmatpush1.bf16.msra.mxu1 %v1009_v20  ;;  %v1058_v54 = vld [vmem:[%s1430_s1 + $0x1a4] ss:$16 sps:$4 sm:$0xff]   ;;  %v1062_v56 = vld [vmem:[%s1430_s1 + $0x1a0] ss:$16 sps:$4 sm:$0xff]   ;;  %v1063_v57 = vld [vmem:[%s1430_s1 + $0x1a8] ss:$16 sps:$4 sm:$0xff]  }
  0x14   :  { %529 = vmatprep.subr.bf16.mxu0 %v1010_v21  ;;  %635 = vmatprep.subr.bf16.mxu1 %v1012_v22  ;;  %v98_v58 = vld [vmem:[%s1432_s2] sm:$0xff]  ;;  %v1066_v60 = vld [vmem:[%s1430_s1 + $0x1cc] ss:$16 sps:$4 sm:$0xff]   ;;  %v100_v61 = vld [vmem:[%s1432_s2 + $0x10] sm:$0xff] }
  0x15   :  { %v1064_v59 = vld [vmem:[%s1430_s1 + $0x1c4] ss:$16 sps:$4 sm:$0xff]   ;;  %104 = vperm.xlu0 %978, %v98_v58   ;;  %114 = vperm.xlu1 %979, %v100_v61   ;;  %v99_v62 = vld [vmem:[%s1432_s2 + $0x8] sm:$0xff]  ;;  %v101_v63 = vld [vmem:[%s1432_s2 + $0x18] sm:$0xff] }
  0x16   :  { %v1068_v0 = vld [vmem:[%s1430_s1 + $0x1c0] ss:$16 sps:$4 sm:$0xff]   ;;  %v1069_v2 = vld [vmem:[%s1430_s1 + $0x1c8] ss:$16 sps:$4 sm:$0xff]   ;;  %v1070_v3 = vld [vmem:[%s1430_s1 + $0x1e4] ss:$16 sps:$4 sm:$0xff]  }
  0x17   :  { %530 = vmatpush1.bf16.msra.mxu0 %v1014_v23  ;;  %636 = vmatpush1.bf16.msra.mxu1 %v1015_v24  ;;  %v1072_v4 = vld [vmem:[%s1430_s1 + $0x1ec] ss:$16 sps:$4 sm:$0xff]   ;;  %v1074_v5 = vld [vmem:[%s1430_s1 + $0x1e0] ss:$16 sps:$4 sm:$0xff]   ;;  %v1075_v6 = vld [vmem:[%s1430_s1 + $0x1e8] ss:$16 sps:$4 sm:$0xff]  }
  0x18   :  { %531 = vmatprep.subr.bf16.mxu0 %v1016_v25  ;;  %637 = vmatprep.subr.bf16.mxu1 %v1018_v26  ;;  %v1081_v7 = vld [vmem:[%s1430_s1 + $0x204] ss:$16 sps:$4 sm:$0xff]   ;;  %v1084_v8 = vld [vmem:[%s1430_s1 + $0x20c] ss:$16 sps:$4 sm:$0xff]   ;;  %v1079_v10 = vld [vmem:[%s1430_s1 + $0x200] ss:$16 sps:$4 sm:$0xff]  }
  0x19   :  { %109 = vperm.xlu0 %978, %v99_v62   ;;  %119 = vperm.xlu1 %979, %v101_v63   ;;  %v1076_v9 = vld [vmem:[%s1431_s0] ss:$12 sps:$4 sm:$0xff]   ;;  %v1082_v11 = vld [vmem:[%s1430_s1 + $0x208] ss:$16 sps:$4 sm:$0xff]   ;;  %v1090_v13 = vld [vmem:[%s1430_s1 + $0x224] ss:$16 sps:$4 sm:$0xff]  }
  0x1a   :  { %v1085_v12 = vld [vmem:[%s1431_s0 + $0x1c] ss:$12 sps:$4 sm:$0xff]   ;;  %v1088_v15 = vld [vmem:[%s1430_s1 + $0x220] ss:$16 sps:$4 sm:$0xff]   ;;  %v1087_v17 = vld [vmem:[%s1431_s0 + $0x18] ss:$12 sps:$4 sm:$0xff]  }
  0x1b   :  { %532 = vmatpush1.bf16.msra.mxu0 %v1020_v27  ;;  %638 = vmatpush1.bf16.msra.mxu1 %v1021_v28  ;;  %v1093_v14 = vld [vmem:[%s1430_s1 + $0x22c] ss:$16 sps:$4 sm:$0xff]   ;;  %v1091_v16 = vld [vmem:[%s1430_s1 + $0x228] ss:$16 sps:$4 sm:$0xff]   ;;  %v731_v21 = vld [vmem:[%s1433_s3] sm:$0xff] }
  0x1c   :  { %533 = vmatprep.subr.bf16.mxu0 %v1022_v29  ;;  %639 = vmatprep.subr.bf16.mxu1 %v1024_v30  ;;  %v1094_v18 = vld [vmem:[%s1431_s0 + $0x8] ss:$12 sps:$4 sm:$0xff]   ;;  %v1095_v19 = vld [vmem:[%s1431_s0 + $0x20] ss:$12 sps:$4 sm:$0xff]   ;;  %v739_v26 = vunpack.c.l.bf16 %v731_v21  ;;  %v740_v28 = vunpack.c.h.bf16 %v731_v21  ;;  %v738_v61 = vld [vmem:[%s1433_s3 + $0x38] sm:$0xff] }
  0x1d   :  { %v732_v22 = vld [vmem:[%s1433_s3 + $0x8] sm:$0xff]  ;;  %v733_v23 = vld [vmem:[%s1433_s3 + $0x10] sm:$0xff]  ;;  %v1389_v24 = vld [vmem:[%s1433_s3 + $0x20] sm:$0xff] }
  0x1e   :  { %v1394_v25 = vld [vmem:[%s1433_s3 + $0x28] sm:$0xff]  ;;  %v741_v27 = vunpack.c.l.bf16 %v732_v22  ;;  %v742_v29 = vunpack.c.h.bf16 %v732_v22 }
  0x1f   :  { %534 = vmatpush1.bf16.msra.mxu0 %v1026_v31  ;;  %640 = vmatpush1.bf16.msra.mxu1 %v1027_v32  ;;  %v750_v49 = vunpack.c.h.bf16 %v1394_v25 }
  0x20   :  { %535 = vmatprep.subr.bf16.mxu0 %v1028_v33  ;;  %641 = vmatprep.subr.bf16.mxu1 %v1030_v34  ;;  %v743_v34 = vunpack.c.l.bf16 %v733_v23 }
  0x23   :  { %536 = vmatpush1.bf16.msra.mxu0 %v1032_v35  ;;  %642 = vmatpush1.bf16.msra.mxu1 %v1033_v36  ;;  %v744_v36 = vunpack.c.h.bf16 %v733_v23  ;;  %v754_v23 = vunpack.c.h.bf16 %v738_v61 }
  0x24   :  { %537 = vmatprep.subr.bf16.mxu0 %v1034_v37  ;;  %643 = vmatprep.subr.bf16.mxu1 %v1036_v38 }
  0x27   :  { %538 = vmatpush1.bf16.msra.mxu0 %v1038_v39  ;;  %644 = vmatpush1.bf16.msra.mxu1 %v1039_v40 }
  0x28   :  { %539 = vmatprep.subr.bf16.mxu0 %v1040_v41  ;;  %645 = vmatprep.subr.bf16.mxu1 %v1042_v42  ;;  %v747_v42 = vunpack.c.l.bf16 %v1389_v24 }
  0x2b   :  { %540 = vmatpush1.bf16.msra.mxu0 %v1044_v43  ;;  %646 = vmatpush1.bf16.msra.mxu1 %v1045_v44  ;;  %v749_v43 = vunpack.c.l.bf16 %v1394_v25 }
  0x2c   :  { %541 = vmatprep.subr.bf16.mxu0 %v1046_v45  ;;  %647 = vmatprep.subr.bf16.mxu1 %v1048_v46 }
  0x2f   :  { %542 = vmatpush1.bf16.msra.mxu0 %v1050_v47  ;;  %648 = vmatpush1.bf16.msra.mxu1 %v1051_v48  ;;  %v748_v48 = vunpack.c.h.bf16 %v1389_v24 }
  0x30   :  { %543 = vmatprep.subr.bf16.mxu0 %v1052_v50  ;;  %649 = vmatprep.subr.bf16.mxu1 %v1054_v51 }
  0x33   :  { %544 = vmatpush1.bf16.msra.mxu0 %v1056_v52  ;;  %650 = vmatpush1.bf16.msra.mxu1 %v1057_v53 }
  0x34   :  { %545 = vmatprep.subr.bf16.mxu0 %v1058_v54  ;;  %651 = vmatprep.subr.bf16.mxu1 %v1060_v55 }
  0x37   :  { %546 = vmatpush1.bf16.msra.mxu0 %v1062_v56  ;;  %652 = vmatpush1.bf16.msra.mxu1 %v1063_v57 }
  0x38   :  { %547 = vmatprep.subr.bf16.mxu0 %v1064_v59  ;;  %653 = vmatprep.subr.bf16.mxu1 %v1066_v60  ;;  %v737_v60 = vld [vmem:[%s1433_s3 + $0x30] sm:$0xff] }
  0x39   :  { %v752_v22 = vunpack.c.h.bf16 %v737_v60 }
  0x3b   :  { %548 = vmatpush1.bf16.msra.mxu0 %v1068_v0  ;;  %654 = vmatpush1.bf16.msra.mxu1 %v1069_v2 }
  0x3c   :  { %549 = vmatprep.subr.bf16.mxu0 %v1070_v3  ;;  %655 = vmatprep.subr.bf16.mxu1 %v1072_v4 }
  0x3f   :  { %550 = vmatpush1.bf16.msra.mxu0 %v1074_v5  ;;  %656 = vmatpush1.bf16.msra.mxu1 %v1075_v6 }
  0x40   :  { %572 = vmatprep.subr.bf16.mxu0 %v1081_v7  ;;  %678 = vmatprep.subr.bf16.mxu1 %v1084_v8 }
  0x42   :  { %552 = vmatmul.mubr.bf16.vlgmr.msra.gmra.mrb[0].mxu0 %v1076_v9  ;;  %658 = vmatmul.mubr.bf16.vlgmr.msra.gmra.mrb[0].mxu1 %v1076_v9 }
  0x43   :  { %573 = vmatpush1.bf16.msra.mxu0 %v1079_v10  ;;  %679 = vmatpush1.bf16.msra.mxu1 %v1082_v11  ;;  %v751_v10 = vunpack.c.l.bf16 %v737_v60  ;;  %v753_v11 = vunpack.c.l.bf16 %v738_v61 }
  0x44   :  { %561 = vmatprep.mubr.bf16.mxu0 %v1085_v12  ;;  %667 = vmatprep.mubr.bf16.mxu1 %v1085_v12 }
  0x45   :  { %574 = vmatprep.subr.bf16.mxu0 %v1090_v13  ;;  %680 = vmatprep.subr.bf16.mxu1 %v1093_v14 }
  0x47   :  { %575 = vmatpush1.bf16.msra.mxu0 %v1088_v15  ;;  %681 = vmatpush1.bf16.msra.mxu1 %v1091_v16 }
  0x4a   :  { %562 = vmatmul.mubr.bf16.gmra.mrb[4].mxu0 %v1087_v17  ;;  %668 = vmatmul.mubr.bf16.gmra.mrb[4].mxu1 %v1087_v17 }
  0x4b   :  { %604 = vmatprep.mubr.bf16.mxu0 %v1096_v1  ;;  %710 = vmatprep.mubr.bf16.mxu1 %v1096_v1 }
  0x52   :  { %925 = vmatmul.mubr.msk.bf16.vlgmr.msra.gmra.mrb[0].mxu0 %vm512_vm0, %v1094_v18  ;;  %927 = vmatmul.mubr.msk.bf16.vlgmr.msra.gmra.mrb[0].mxu1 %vm512_vm0, %v1094_v18 }
  0x53   :  { %614 = vmatprep.mubr.bf16.mxu0 %v1096_v1  ;;  %720 = vmatprep.mubr.bf16.mxu1 %v1096_v1  ;;  %v734_v1 = vld [vmem:[%s1433_s3 + $0x18] sm:$0xff] }
  0x54   :  { %v745_v35 = vunpack.c.l.bf16 %v734_v1  ;;  %v746_v37 = vunpack.c.h.bf16 %v734_v1 }
  0x5a   :  { %926 = vmatmul.mubr.msk.bf16.gmra.mrb[4].mxu0 %vm512_vm0, %v1095_v19  ;;  %928 = vmatmul.mubr.msk.bf16.gmra.mrb[4].mxu1 %vm512_vm0, %v1095_v19 }
  0x94   :  { %v105_v20 = vpop.permute.xlu0 %104  ;;  %v115_v31 = vpop.permute.xlu1 %114 }
  0x98   :  { %v110_v30 = vpop.permute.xlu0 %109  ;;  %v120_v9 = vpop.permute.xlu1 %119 }
 0x125   :  { %v606_v32 = vpop.f32.mrb[0].mxu0  ;;  %v712_v33 = vpop.f32.mrb[0].mxu1 }
 0x126   :  { %v945_v38 = vadd.f32 %v606_v32, %v105_v20  ;;  %v953_v39 = vadd.f32 %v712_v33, %v105_v20  ;;  %v608_v40 = vpop.f32.mrb[1].mxu0  ;;  %v714_v41 = vpop.f32.mrb[1].mxu1 }
 0x127   :  { %v946_v44 = vadd.f32 %v608_v40, %v105_v20  ;;  %v954_v45 = vadd.f32 %v714_v41, %v105_v20  ;;  %v610_v46 = vpop.f32.mrb[2].mxu0  ;;  %v716_v47 = vpop.f32.mrb[2].mxu1 }
 0x128   :  { %v755_v50 = vadd.f32 %v945_v38, %v739_v26  ;;  %v757_v51 = vadd.f32 %v953_v39, %v741_v27  ;;  %v947_v52 = vadd.f32 %v610_v46, %v110_v30  ;;  %v955_v53 = vadd.f32 %v716_v47, %v110_v30  ;;  %v612_v54 = vpop.f32.mrb[3].mxu0  ;;  %v718_v55 = vpop.f32.mrb[3].mxu1 }
 0x129   :  { %v756_v56 = vadd.f32 %v946_v44, %v740_v28  ;;  %v758_v57 = vadd.f32 %v954_v45, %v742_v29  ;;  %v948_v58 = vadd.f32 %v612_v54, %v110_v30  ;;  %v956_v59 = vadd.f32 %v718_v55, %v110_v30 }
 0x12a   :  { %v771_v62 = vmax.f32 %v755_v50, 0.0  ;;  %v773_v63 = vmax.f32 %v757_v51, 0.0  ;;  %v759_v0 = vadd.f32 %v947_v52, %v743_v34  ;;  %v761_v2 = vadd.f32 %v955_v53, %v745_v35 }
 0x12b   :  { %v772_v3 = vmax.f32 %v756_v56, 0.0  ;;  %v774_v4 = vmax.f32 %v758_v57, 0.0  ;;  %v760_v5 = vadd.f32 %v948_v58, %v744_v36  ;;  %v762_v6 = vadd.f32 %v956_v59, %v746_v37 }
 0x12c   :  { %v775_v7 = vmax.f32 %v759_v0, 0.0  ;;  %v777_v8 = vmax.f32 %v761_v2, 0.0 }
 0x12d   :  { %v937_v12 = vpack.c.bf16 %v772_v3, %v771_v62  ;;  %v938_v13 = vpack.c.bf16 %v774_v4, %v773_v63  ;;  %v776_v14 = vmax.f32 %v760_v5, 0.0  ;;  %v778_v15 = vmax.f32 %v762_v6, 0.0  ;;  %v616_v16 = vpop.f32.mrb[4].mxu0  ;;  %v722_v17 = vpop.f32.mrb[4].mxu1 }
 0x12e   :  { %v949_v18 = vadd.f32 %v616_v16, %v115_v31  ;;  %v957_v19 = vadd.f32 %v722_v17, %v115_v31  ;;  %v618_v20 = vpop.f32.mrb[5].mxu0  ;;  %v724_v21 = vpop.f32.mrb[5].mxu1 }
 0x12f   :  { %835 = vst [vmem:[%s1434_s4] sm:$0xff] %v937_v12  ;;  %836 = vst [vmem:[%s1434_s4 + $0x8] sm:$0xff] %v938_v13  ;;  %v939_v1 = vpack.c.bf16 %v776_v14, %v775_v7  ;;  %v940_v24 = vpack.c.bf16 %v778_v15, %v777_v8  ;;  %v950_v25 = vadd.f32 %v618_v20, %v115_v31  ;;  %v620_v27 = vpop.f32.mrb[6].mxu0  ;;  %v726_v28 = vpop.f32.mrb[6].mxu1 }
 0x130   :  { %v958_v26 = vadd.f32 %v724_v21, %v115_v31  ;;  %v763_v29 = vadd.f32 %v949_v18, %v747_v42  ;;  %v765_v30 = vadd.f32 %v957_v19, %v749_v43  ;;  %v951_v32 = vadd.f32 %v620_v27, %v120_v9  ;;  %v622_v34 = vpop.f32.mrb[7].mxu0  ;;  %v728_v35 = vpop.f32.mrb[7].mxu1 }
 0x131   :  { %v959_v33 = vadd.f32 %v726_v28, %v120_v9  ;;  %837 = vst [vmem:[%s1434_s4 + $0x10] sm:$0xff] %v939_v1  ;;  %838 = vst [vmem:[%s1434_s4 + $0x18] sm:$0xff] %v940_v24  ;;  %v764_v36 = vadd.f32 %v950_v25, %v748_v48  ;;  %v952_v38 = vadd.f32 %v622_v34, %v120_v9 }
 0x132   :  { %v766_v37 = vadd.f32 %v958_v26, %v750_v49  ;;  %v960_v31 = vadd.f32 %v728_v35, %v120_v9  ;;  %v779_v39 = vmax.f32 %v763_v29, 0.0  ;;  %v781_v40 = vmax.f32 %v765_v30, 0.0 }
 0x133   :  { %v767_v41 = vadd.f32 %v951_v32, %v751_v10  ;;  %v769_v42 = vadd.f32 %v959_v33, %v753_v11  ;;  %v780_v43 = vmax.f32 %v764_v36, 0.0  ;;  %v768_v45 = vadd.f32 %v952_v38, %v752_v22 }
 0x134   :  { %v782_v44 = vmax.f32 %v766_v37, 0.0  ;;  %v770_v46 = vadd.f32 %v960_v31, %v754_v23 }
 0x135   :  { %v783_v47 = vmax.f32 %v767_v41, 0.0  ;;  %v785_v50 = vmax.f32 %v769_v42, 0.0  ;;  %v941_v51 = vpack.c.bf16 %v780_v43, %v779_v39  ;;  %v784_v53 = vmax.f32 %v768_v45, 0.0 }
 0x136   :  { %v942_v52 = vpack.c.bf16 %v782_v44, %v781_v40  ;;  %v786_v54 = vmax.f32 %v770_v46, 0.0 }
 0x137   :  { %839 = vst [vmem:[%s1434_s4 + $0x20] sm:$0xff] %v941_v51  ;;  %v943_v48 = vpack.c.bf16 %v784_v53, %v783_v47 }
 0x138   :  { %840 = vst [vmem:[%s1434_s4 + $0x28] sm:$0xff] %v942_v52  ;;  %v944_v49 = vpack.c.bf16 %v786_v54, %v785_v50 }
 0x139   :  { %841 = vst [vmem:[%s1434_s4 + $0x30] sm:$0xff] %v943_v48 }
 0x13a   :  { %842 = vst [vmem:[%s1434_s4 + $0x38] sm:$0xff] %v944_v49 }

// kernel: resnet20_forward.32
= control target key start
LH: loop header
LB: loop body
LE: loop exit
PB: predicated region body
PF: predicated region fallthrough
CT: control target
= control target key end

     0   :  { %v940_v1 = vmov 0   ;;  %vm291_vm0 = vcmask 261120   ;;  %s1200_s2 = inlined_call_operand.vmem [shape: bf16[288,128], index: 2, kind: input, shape index: {}]   ;;  %s1201_s0 = inlined_call_operand.vmem [shape: bf16[64,288], index: 0, kind: input, shape index: {}]   ;;  %s1202_s1 = inlined_call_operand.vmem [shape: bf16[64,32], index: 1, kind: input, shape index: {}]   ;;  %s1203_s3 = inlined_call_operand.vmem [shape: f32[64,1], index: 3, kind: input, shape index: {}]   ;;  %s1204_s4 = inlined_call_operand.vmem [shape: f32[64,1], index: 4, kind: input, shape index: {}]   ;;  %s1205_s6 = inlined_call_operand.vmem [shape: bf16[64,128], index: 6, kind: output, shape index: {1}]   ;;  %s1206_s5 = inlined_call_operand.vmem [shape: bf16[64,128], index: 5, kind: output, shape index: {0}]  }
   0x1   :  { %v900_v0 = vld [vmem:[%s1200_s2 + $0x40] sm:$0xff]   ;;  %899 = vset.pattern.permute.xlu1 %v940_v1  ;;  %898 = vset.pattern.permute.xlu0 %v940_v1  ;;  %v903_v4 = vld [vmem:[%s1200_s2 + $0x48] sm:$0xff]   ;;  %v906_v7 = vld [vmem:[%s1200_s2 + $0x50] sm:$0xff]  }
   0x2   :  { %v901_v2 = vld [vmem:[%s1200_s2] sm:$0xff]   ;;  %821 = vmatprep.subr.bf16.mxu0 %v900_v0  ;;  %v904_v5 = vld [vmem:[%s1200_s2 + $0x8] sm:$0xff]   ;;  %v907_v8 = vld [vmem:[%s1200_s2 + $0x10] sm:$0xff]  }
   0x3   :  { %v902_v3 = vld [vmem:[%s1200_s2 + $0x80] sm:$0xff]   ;;  %822 = vmatpush3.bf16.msra.mxu0 %v901_v2  ;;  %v905_v6 = vld [vmem:[%s1200_s2 + $0x88] sm:$0xff]   ;;  %v910_v11 = vld [vmem:[%s1200_s2 + $0x58] sm:$0xff]  }
   0x4   :  { %873 = vmatprep.subr.bf16.mxu1 %v902_v3  ;;  %823 = vmatprep.subr.bf16.mxu0 %v903_v4  ;;  %v908_v9 = vld [vmem:[%s1201_s0 + $0x8] ss:$12 sps:$4 sm:$0xff]   ;;  %v909_v10 = vld [vmem:[%s1201_s0 + $0x20] ss:$12 sps:$4 sm:$0xff]   ;;  %v911_v12 = vld [vmem:[%s1200_s2 + $0x18] sm:$0xff]  }
   0x5   :  { %874 = vmatpush3.bf16.msra.mxu1 %v902_v3  ;;  %877 = vmatprep.mubr.msk.bf16.mxu1 %vm291_vm0, %v908_v9  ;;  %v912_v13 = vld [vmem:[%s1200_s2 + $0x60] sm:$0xff]   ;;  %v915_v16 = vld [vmem:[%s1201_s0 + $0x50] ss:$12 sps:$4 sm:$0xff]   ;;  %v917_v18 = vld [vmem:[%s1200_s2 + $0x68] sm:$0xff]  }
   0x6   :  { %875 = vmatprep.subr.bf16.mxu1 %v905_v6  ;;  %v913_v14 = vld [vmem:[%s1200_s2 + $0x20] sm:$0xff]   ;;  %v918_v19 = vld [vmem:[%s1200_s2 + $0x28] sm:$0xff]   ;;  %v920_v21 = vld [vmem:[%s1200_s2 + $0x70] sm:$0xff]  }
   0x7   :  { %824 = vmatpush3.bf16.msra.mxu0 %v904_v5  ;;  %v914_v15 = vld [vmem:[%s1201_s0 + $0x38] ss:$12 sps:$4 sm:$0xff]   ;;  %v919_v20 = vld [vmem:[%s1200_s2 + $0x48] sm:$0xff]   ;;  %v921_v22 = vld [vmem:[%s1200_s2 + $0x30] sm:$0xff]  }
   0x8   :  { %825 = vmatprep.subr.bf16.mxu0 %v906_v7  ;;  %v916_v17 = vld [vmem:[%s1200_s2 + $0x40] sm:$0xff]   ;;  %v923_v24 = vld [vmem:[%s1202_s1 + $0x8] sm:$0xff]   ;;  %v924_v25 = vld [vmem:[%s1200_s2 + $0x78] sm:$0xff]  }
   0x9   :  { %876 = vmatpush3.bf16.msra.mxu1 %v905_v6  ;;  %v922_v23 = vld [vmem:[%s1202_s1] sm:$0xff]   ;;  %v925_v26 = vld [vmem:[%s1200_s2 + $0x38] sm:$0xff]   ;;  %v929_v28 = vld [vmem:[%s1202_s1 + $0x10] sm:$0xff]  }
   0xa   :  { %885 = vmatprep.subr.bf16.mxu1 %v916_v17  ;;  %v928_v27 = vld [vmem:[%s1201_s0 + $0x4] ss:$12 sps:$4 sm:$0xff]   ;;  %v926_v29 = vld [vmem:[%s1201_s0] ss:$12 sps:$4 sm:$0xff]   ;;  %v931_v30 = vld [vmem:[%s1201_s0 + $0x1c] ss:$12 sps:$4 sm:$0xff]  }
   0xb   :  { %826 = vmatpush3.bf16.msra.mxu0 %v907_v8  ;;  %336 = vmatprep.mubr.bf16.mxu0 %v928_v27  ;;  %v930_v31 = vld [vmem:[%s1202_s1 + $0x18] sm:$0xff]   ;;  %v77_v32 = vld [vmem:[%s1203_s3 + $0x10] sm:$0xff]  ;;  %v75_v33 = vld [vmem:[%s1203_s3] sm:$0xff] }
   0xc   :  { %878 = vmatmul.mubr.msk.bf16.vlgmr.msra.gmra.mrb[0].mxu1 %vm291_vm0, %v909_v10  ;;  %827 = vmatprep.subr.bf16.mxu0 %v910_v11  ;;  %v78_v34 = vld [vmem:[%s1203_s3 + $0x18] sm:$0xff]  ;;  %v76_v35 = vld [vmem:[%s1203_s3 + $0x8] sm:$0xff]  ;;  %v934_v37 = vld [vmem:[%s1201_s0 + $0x34] ss:$12 sps:$4 sm:$0xff]  }
   0xd   :  { %881 = vmatprep.mubr.msk.bf16.mxu1 %vm291_vm0, %v914_v15  ;;  %886 = vmatpush3.bf16.msra.mxu1 %v916_v17  ;;  %v933_v36 = vld [vmem:[%s1201_s0 + $0x18] ss:$12 sps:$4 sm:$0xff]   ;;  %v80_v38 = vld [vmem:[%s1203_s3 + $0x28] sm:$0xff]  ;;  %v81_v41 = vld [vmem:[%s1203_s3 + $0x30] sm:$0xff] }
   0xe   :  { %887 = vmatprep.subr.bf16.mxu1 %v919_v20  ;;  %95 = vperm.xlu1 %899, %v77_v32   ;;  %v79_v39 = vld [vmem:[%s1203_s3 + $0x20] sm:$0xff]  ;;  %v82_v40 = vld [vmem:[%s1203_s3 + $0x38] sm:$0xff]  ;;  %v495_v44 = vld [vmem:[%s1204_s4 + $0x8] sm:$0xff] }
   0xf   :  { %828 = vmatpush3.bf16.msra.mxu0 %v911_v12  ;;  %85 = vperm.xlu0 %898, %v75_v33   ;;  %v936_v42 = vld [vmem:[%s1201_s0 + $0x30] ss:$12 sps:$4 sm:$0xff]   ;;  %v937_v43 = vld [vmem:[%s1201_s0 + $0x4c] ss:$12 sps:$4 sm:$0xff]   ;;  %v494_v45 = vld [vmem:[%s1204_s4] sm:$0xff] }
  0x10   :  { %829 = vmatprep.subr.bf16.mxu0 %v912_v13  ;;  %v497_v46 = vld [vmem:[%s1204_s4 + $0x18] sm:$0xff]  ;;  %v496_v47 = vld [vmem:[%s1204_s4 + $0x10] sm:$0xff]  ;;  %v499_v49 = vld [vmem:[%s1204_s4 + $0x28] sm:$0xff] }
  0x11   :  { %888 = vmatpush3.bf16.msra.mxu1 %v919_v20  ;;  %v939_v48 = vld [vmem:[%s1201_s0 + $0x48] ss:$12 sps:$4 sm:$0xff]   ;;  %v498_v50 = vld [vmem:[%s1204_s4 + $0x20] sm:$0xff]  ;;  %v501_v51 = vld [vmem:[%s1204_s4 + $0x38] sm:$0xff] }
  0x12   :  { %100 = vperm.xlu1 %899, %v78_v34   ;;  %v500_v52 = vld [vmem:[%s1204_s4 + $0x30] sm:$0xff] }
  0x13   :  { %830 = vmatpush3.bf16.msra.mxu0 %v913_v14  ;;  %90 = vperm.xlu0 %898, %v76_v35  }
  0x14   :  { %882 = vmatmul.mubr.msk.bf16.gmra.mrb[4].mxu1 %vm291_vm0, %v915_v16  ;;  %831 = vmatprep.subr.bf16.mxu0 %v917_v18 }
  0x15   :  { %889 = vmatprep.mubr.msk.bf16.mxu1 %vm291_vm0, %v922_v23 }
  0x16   :  { %110 = vperm.xlu1 %899, %v80_v38  }
  0x17   :  { %832 = vmatpush3.bf16.msra.mxu0 %v918_v19  ;;  %105 = vperm.xlu0 %898, %v79_v39  }
  0x18   :  { %833 = vmatprep.subr.bf16.mxu0 %v920_v21 }
  0x1a   :  { %120 = vperm.xlu1 %899, %v82_v40  }
  0x1b   :  { %834 = vmatpush3.bf16.msra.mxu0 %v921_v22  ;;  %115 = vperm.xlu0 %898, %v81_v41  }
  0x1c   :  { %890 = vmatmul.mubr.msk.bf16.vlgmr.msra.gmra.mrb[8].mxu1 %vm291_vm0, %v923_v24  ;;  %835 = vmatprep.subr.bf16.mxu0 %v924_v25 }
  0x1d   :  { %893 = vmatprep.mubr.msk.bf16.mxu1 %vm291_vm0, %v929_v28 }
  0x1e   :  { %509 = vperm.xlu1 %899, %v495_v44  }
  0x1f   :  { %836 = vmatpush3.bf16.msra.mxu0 %v925_v26  ;;  %504 = vperm.xlu0 %898, %v494_v45  }
  0x22   :  { %337 = vmatmul.mubr.bf16.vlgmr.msra.gmra.mrb[0].mxu0 %v926_v29  ;;  %519 = vperm.xlu1 %899, %v497_v46  }
  0x23   :  { %344 = vmatprep.mubr.bf16.mxu0 %v931_v30  ;;  %514 = vperm.xlu0 %898, %v496_v47  }
  0x24   :  { %894 = vmatmul.mubr.msk.bf16.gmra.mrb[12].mxu1 %vm291_vm0, %v930_v31 }
  0x26   :  { %529 = vperm.xlu1 %899, %v499_v49  }
  0x27   :  { %524 = vperm.xlu0 %898, %v498_v50  }
  0x2a   :  { %345 = vmatmul.mubr.bf16.gmra.mrb[4].mxu0 %v933_v36  ;;  %539 = vperm.xlu1 %899, %v501_v51  }
  0x2b   :  { %352 = vmatprep.mubr.bf16.mxu0 %v934_v37  ;;  %534 = vperm.xlu0 %898, %v500_v52  }
  0x32   :  { %353 = vmatmul.mubr.bf16.gmra.mrb[8].mxu0 %v936_v42 }
  0x33   :  { %360 = vmatprep.mubr.bf16.mxu0 %v937_v43 }
  0x3a   :  { %361 = vmatmul.mubr.bf16.gmra.mrb[12].mxu0 %v939_v48 }
  0x8d   :  { %v1140_v54 = vpop.permute.xlu1 %95 }
  0x8e   :  { %v86_v53 = vpop.permute.xlu0 %85 }
  0x91   :  { %v1142_v56 = vpop.permute.xlu1 %100 }
  0x92   :  { %v91_v55 = vpop.permute.xlu0 %90 }
  0x95   :  { %v1146_v58 = vpop.permute.xlu1 %110 }
  0x96   :  { %v1144_v57 = vpop.permute.xlu0 %105 }
  0x99   :  { %v1150_v60 = vpop.permute.xlu1 %120 }
  0x9a   :  { %v1148_v59 = vpop.permute.xlu0 %115 }
  0x9d   :  { %v510_v2 = vpop.permute.xlu1 %509 }
  0x9e   :  { %v505_v1 = vpop.permute.xlu0 %504 }
  0xa1   :  { %v520_v7 = vpop.permute.xlu1 %519 }
  0xa2   :  { %v515_v6 = vpop.permute.xlu0 %514 }
  0xa5   :  { %v530_v13 = vpop.permute.xlu1 %529 }
  0xa6   :  { %v525_v10 = vpop.permute.xlu0 %524 }
  0xa9   :  { %v540_v24 = vpop.permute.xlu1 %539 }
  0xaa   :  { %v535_v22 = vpop.permute.xlu0 %534 }
  0xdf   :  { %v1152_v61 = vpop.f32.mrb[0].mxu1 }
  0xe0   :  { %v403_v62 = vpop.f32.mrb[1].mxu1 }
  0xe1   :  { %v1154_v63 = vpop.f32.mrb[2].mxu1 }
  0xe2   :  { %v406_v0 = vpop.f32.mrb[3].mxu1 }
  0xe7   :  { %v1156_v3 = vpop.f32.mrb[4].mxu1 }
  0xe8   :  { %v1158_v4 = vpop.f32.mrb[5].mxu1 }
  0xe9   :  { %v1160_v5 = vpop.f32.mrb[6].mxu1 }
  0xea   :  { %v1162_v8 = vpop.f32.mrb[7].mxu1 }
  0xef   :  { %v891_v9 = vpop.f32.mrb[8].mxu1 }
  0xf0   :  { %v629_v11 = vadd.f32 %v891_v9, %v515_v6  ;;  %v620_v12 = vpop.f32.mrb[9].mxu1 }
  0xf1   :  { %v621_v14 = vadd.f32 %v620_v12, %v505_v1  ;;  %v892_v15 = vpop.f32.mrb[10].mxu1 }
  0xf2   :  { %v632_v16 = vadd.f32 %v892_v15, %v520_v7  ;;  %v623_v17 = vpop.f32.mrb[11].mxu1 }
  0xf3   :  { %v624_v18 = vadd.f32 %v623_v17, %v510_v2 }
  0xf4   :  { %v803_v19 = vpack.c.bf16 %v632_v16, %v629_v11 }
  0xf5   :  { %v837_v20 = vpop.f32.mrb[0].mxu0  ;;  %v798_v21 = vpack.c.bf16 %v624_v18, %v621_v14 }
  0xf6   :  { %818 = vst [vmem:[%s1205_s6 + $0x8] sm:$0xff] %v803_v19   ;;  %v838_v23 = vpop.f32.mrb[1].mxu0 }
  0xf7   :  { %v839_v25 = vadd.f32 %v838_v23, %v837_v20  ;;  %799 = vst [vmem:[%s1205_s6] sm:$0xff] %v798_v21   ;;  %v840_v26 = vpop.f32.mrb[2].mxu0  ;;  %v895_v27 = vpop.f32.mrb[12].mxu1 }
  0xf8   :  { %v841_v28 = vpop.f32.mrb[3].mxu0  ;;  %v636_v29 = vpop.f32.mrb[13].mxu1  ;;  %v645_v30 = vadd.f32 %v895_v27, %v535_v22 }
  0xf9   :  { %v339_v31 = vadd.f32 %v839_v25, %v86_v53  ;;  %v842_v32 = vadd.f32 %v841_v28, %v840_v26  ;;  %v637_v33 = vadd.f32 %v636_v29, %v525_v10  ;;  %v896_v34 = vpop.f32.mrb[14].mxu1 }
  0xfa   :  { %v648_v35 = vadd.f32 %v896_v34, %v540_v24  ;;  %v639_v36 = vpop.f32.mrb[15].mxu1 }
  0xfb   :  { %v404_v37 = vadd.f32 %v403_v62, %v339_v31  ;;  %v342_v38 = vadd.f32 %v842_v32, %v91_v55  ;;  %v640_v39 = vadd.f32 %v639_v36, %v530_v13 }
  0xfc   :  { %v813_v40 = vpack.c.bf16 %v648_v35, %v645_v30 }
  0xfd   :  { %v407_v41 = vadd.f32 %v406_v0, %v342_v38  ;;  %v808_v42 = vpack.c.bf16 %v640_v39, %v637_v33  ;;  %v843_v43 = vpop.f32.mrb[4].mxu0  ;;  %v434_v45 = vmax.f32 %v404_v37, 0.0 }
  0xfe   :  { %820 = vst [vmem:[%s1205_s6 + $0x18] sm:$0xff] %v813_v40   ;;  %v844_v44 = vpop.f32.mrb[5].mxu0 }
  0xff   :  { %v435_v46 = vmax.f32 %v407_v41, 0.0  ;;  %819 = vst [vmem:[%s1205_s6 + $0x10] sm:$0xff] %v808_v42   ;;  %v845_v47 = vadd.f32 %v844_v44, %v843_v43  ;;  %v846_v48 = vpop.f32.mrb[6].mxu0 }
 0x100   :  { %v847_v49 = vpop.f32.mrb[7].mxu0 }
 0x101   :  { %v778_v50 = vpack.c.bf16 %v435_v46, %v434_v45  ;;  %v347_v51 = vadd.f32 %v845_v47, %v1140_v54  ;;  %v848_v52 = vadd.f32 %v847_v49, %v846_v48 }
 0x103   :  { %779 = vst [vmem:[%s1206_s5] sm:$0xff] %v778_v50   ;;  %v412_v53 = vadd.f32 %v1152_v61, %v347_v51  ;;  %v350_v55 = vadd.f32 %v848_v52, %v1142_v56 }
 0x105   :  { %v415_v62 = vadd.f32 %v1154_v63, %v350_v55  ;;  %v849_v0 = vpop.f32.mrb[8].mxu0  ;;  %v436_v2 = vmax.f32 %v412_v53, 0.0 }
 0x106   :  { %v850_v1 = vpop.f32.mrb[9].mxu0 }
 0x107   :  { %v437_v6 = vmax.f32 %v415_v62, 0.0  ;;  %v851_v7 = vadd.f32 %v850_v1, %v849_v0  ;;  %v852_v9 = vpop.f32.mrb[10].mxu0 }
 0x108   :  { %v853_v10 = vpop.f32.mrb[11].mxu0 }
 0x109   :  { %v783_v11 = vpack.c.bf16 %v437_v6, %v436_v2  ;;  %v355_v54 = vadd.f32 %v851_v7, %v1144_v57  ;;  %v854_v12 = vadd.f32 %v853_v10, %v852_v9 }
 0x10b   :  { %815 = vst [vmem:[%s1206_s5 + $0x8] sm:$0xff] %v783_v11   ;;  %v420_v61 = vadd.f32 %v1158_v4, %v355_v54  ;;  %v358_v56 = vadd.f32 %v854_v12, %v1146_v58 }
 0x10d   :  { %v423_v63 = vadd.f32 %v1162_v8, %v358_v56  ;;  %v855_v13 = vpop.f32.mrb[12].mxu0  ;;  %v438_v15 = vmax.f32 %v420_v61, 0.0 }
 0x10e   :  { %v856_v14 = vpop.f32.mrb[13].mxu0 }
 0x10f   :  { %v439_v16 = vmax.f32 %v423_v63, 0.0  ;;  %v857_v17 = vadd.f32 %v856_v14, %v855_v13  ;;  %v858_v18 = vpop.f32.mrb[14].mxu0 }
 0x110   :  { %v859_v19 = vpop.f32.mrb[15].mxu0 }
 0x111   :  { %v788_v20 = vpack.c.bf16 %v439_v16, %v438_v15  ;;  %v363_v57 = vadd.f32 %v857_v17, %v1148_v59  ;;  %v860_v21 = vadd.f32 %v859_v19, %v858_v18 }
 0x113   :  { %816 = vst [vmem:[%s1206_s5 + $0x10] sm:$0xff] %v788_v20   ;;  %v428_v4 = vadd.f32 %v1156_v3, %v363_v57  ;;  %v366_v58 = vadd.f32 %v860_v21, %v1150_v60 }
 0x115   :  { %v431_v8 = vadd.f32 %v1160_v5, %v366_v58  ;;  %v440_v22 = vmax.f32 %v428_v4, 0.0 }
 0x117   :  { %v441_v23 = vmax.f32 %v431_v8, 0.0 }
 0x119   :  { %v793_v24 = vpack.c.bf16 %v441_v23, %v440_v22 }
 0x11b   :  { %817 = vst [vmem:[%s1206_s5 + $0x18] sm:$0xff] %v793_v24  }

// kernel: resnet20_forward.34
= control target key start
LH: loop header
LB: loop body
LE: loop exit
PB: predicated region body
PF: predicated region fallthrough
CT: control target
= control target key end

     0   :  { %v1013_v1 = vmov 0   ;;  %vm475_vm0 = vcmask 523264   ;;  %s1245_s1 = inlined_call_operand.vmem [shape: bf16[576,128], index: 1, kind: input, shape index: {}]   ;;  %s1246_s0 = inlined_call_operand.vmem [shape: bf16[64,576], index: 0, kind: input, shape index: {}]   ;;  %s1247_s2 = inlined_call_operand.vmem [shape: f32[64,1], index: 2, kind: input, shape index: {}]   ;;  %s1248_s3 = inlined_call_operand.vmem [shape: bf16[64,128], index: 3, kind: output, shape index: {}]  }
   0x1   :  { %v949_v0 = vld [vmem:[%s1245_s1 + $0x40] sm:$0xff]   ;;  %947 = vset.pattern.permute.xlu0 %v1013_v1  ;;  %948 = vset.pattern.permute.xlu1 %v1013_v1  ;;  %v953_v5 = vld [vmem:[%s1245_s1 + $0x48] sm:$0xff]   ;;  %v957_v9 = vld [vmem:[%s1245_s1 + $0x50] sm:$0xff]  }
   0x2   :  { %v950_v2 = vld [vmem:[%s1245_s1 + $0xc0] sm:$0xff]   ;;  %834 = vmatprep.subr.bf16.mxu0 %v949_v0  ;;  %v954_v6 = vld [vmem:[%s1245_s1 + $0xc8] sm:$0xff]   ;;  %v958_v10 = vld [vmem:[%s1245_s1 + $0xd0] sm:$0xff]  }
   0x3   :  { %v951_v3 = vld [vmem:[%s1245_s1] sm:$0xff]   ;;  %874 = vmatprep.subr.bf16.mxu1 %v950_v2  ;;  %v955_v7 = vld [vmem:[%s1245_s1 + $0x8] sm:$0xff]   ;;  %v959_v11 = vld [vmem:[%s1245_s1 + $0x10] sm:$0xff]  }
   0x4   :  { %v952_v4 = vld [vmem:[%s1245_s1 + $0x80] sm:$0xff]   ;;  %835 = vmatpush3.bf16.msra.mxu0 %v951_v3  ;;  %v956_v8 = vld [vmem:[%s1245_s1 + $0x88] sm:$0xff]   ;;  %v960_v12 = vld [vmem:[%s1245_s1 + $0x90] sm:$0xff]  }
   0x5   :  { %875 = vmatpush3.bf16.msra.mxu1 %v952_v4  ;;  %836 = vmatprep.subr.bf16.mxu0 %v953_v5  ;;  %v961_v13 = vld [vmem:[%s1245_s1 + $0x58] sm:$0xff]   ;;  %v965_v17 = vld [vmem:[%s1245_s1 + $0x60] sm:$0xff]   ;;  %v969_v21 = vld [vmem:[%s1245_s1 + $0x68] sm:$0xff]  }
   0x6   :  { %876 = vmatprep.subr.bf16.mxu1 %v954_v6  ;;  %v962_v14 = vld [vmem:[%s1245_s1 + $0xd8] sm:$0xff]   ;;  %v966_v18 = vld [vmem:[%s1245_s1 + $0xe0] sm:$0xff]   ;;  %v970_v22 = vld [vmem:[%s1245_s1 + $0xe8] sm:$0xff]  }
   0x7   :  { %v963_v15 = vld [vmem:[%s1245_s1 + $0x18] sm:$0xff]   ;;  %v967_v19 = vld [vmem:[%s1245_s1 + $0x20] sm:$0xff]   ;;  %v971_v23 = vld [vmem:[%s1245_s1 + $0x28] sm:$0xff]  }
   0x8   :  { %837 = vmatpush3.bf16.msra.mxu0 %v955_v7  ;;  %v964_v16 = vld [vmem:[%s1245_s1 + $0x98] sm:$0xff]   ;;  %v968_v20 = vld [vmem:[%s1245_s1 + $0xa0] sm:$0xff]   ;;  %v972_v24 = vld [vmem:[%s1245_s1 + $0xa8] sm:$0xff]  }
   0x9   :  { %877 = vmatpush3.bf16.msra.mxu1 %v956_v8  ;;  %838 = vmatprep.subr.bf16.mxu0 %v957_v9  ;;  %v973_v25 = vld [vmem:[%s1245_s1 + $0x70] sm:$0xff]   ;;  %v977_v29 = vld [vmem:[%s1245_s1 + $0x78] sm:$0xff]   ;;  %v986_v36 = vld [vmem:[%s1246_s0 + $0xc] ss:$20 sps:$4 sm:$0xff]  }
   0xa   :  { %878 = vmatprep.subr.bf16.mxu1 %v958_v10  ;;  %v974_v26 = vld [vmem:[%s1245_s1 + $0xf0] sm:$0xff]   ;;  %v978_v30 = vld [vmem:[%s1245_s1 + $0xf8] sm:$0xff]   ;;  %v987_v37 = vld [vmem:[%s1245_s1 + $0x100] sm:$0xff]   ;;  %585 = vmatprep.mubr.bf16.mxu1 %v986_v36 }
   0xb   :  { %v975_v27 = vld [vmem:[%s1245_s1 + $0x30] sm:$0xff]   ;;  %v979_v31 = vld [vmem:[%s1245_s1 + $0x38] sm:$0xff]   ;;  %v988_v38 = vld [vmem:[%s1246_s0 + $0x2c] ss:$20 sps:$4 sm:$0xff]  }
   0xc   :  { %839 = vmatpush3.bf16.msra.mxu0 %v959_v11  ;;  %v976_v28 = vld [vmem:[%s1245_s1 + $0xb0] sm:$0xff]   ;;  %v980_v32 = vld [vmem:[%s1245_s1 + $0xb8] sm:$0xff]   ;;  %v994_v40 = vld [vmem:[%s1245_s1 + $0x108] sm:$0xff]  }
   0xd   :  { %879 = vmatpush3.bf16.msra.mxu1 %v960_v12  ;;  %840 = vmatprep.subr.bf16.mxu0 %v961_v13  ;;  %v981_v33 = vld [vmem:[%s1246_s0] ss:$20 sps:$4 sm:$0xff]   ;;  %v983_v34 = vld [vmem:[%s1246_s0 + $0x4] ss:$20 sps:$4 sm:$0xff]   ;;  %v984_v35 = vld [vmem:[%s1246_s0 + $0x8] ss:$20 sps:$4 sm:$0xff]  }
   0xe   :  { %880 = vmatprep.subr.bf16.mxu1 %v962_v14  ;;  %520 = vmatprep.mubr.bf16.mxu0 %v983_v34  ;;  %v990_v39 = vld [vmem:[%s1246_s0 + $0x34] ss:$20 sps:$4 sm:$0xff]   ;;  %v993_v42 = vld [vmem:[%s1246_s0 + $0x30] ss:$20 sps:$4 sm:$0xff]   ;;  %v1008_v46 = vld [vmem:[%s1245_s1 + $0x118] sm:$0xff]  }
   0xf   :  { %v992_v41 = vld [vmem:[%s1246_s0 + $0x28] ss:$20 sps:$4 sm:$0xff]   ;;  %v1001_v45 = vld [vmem:[%s1245_s1 + $0x110] sm:$0xff]   ;;  %v1000_v48 = vld [vmem:[%s1246_s0 + $0x58] ss:$20 sps:$4 sm:$0xff]  }
  0x10   :  { %841 = vmatpush3.bf16.msra.mxu0 %v963_v15  ;;  %v995_v43 = vld [vmem:[%s1246_s0 + $0x54] ss:$20 sps:$4 sm:$0xff]   ;;  %v997_v44 = vld [vmem:[%s1246_s0 + $0x5c] ss:$20 sps:$4 sm:$0xff]   ;;  %v1004_v50 = vld [vmem:[%s1246_s0 + $0x84] ss:$20 sps:$4 sm:$0xff]  }
  0x11   :  { %881 = vmatpush3.bf16.msra.mxu1 %v964_v16  ;;  %842 = vmatprep.subr.bf16.mxu0 %v965_v17  ;;  %v999_v47 = vld [vmem:[%s1246_s0 + $0x50] ss:$20 sps:$4 sm:$0xff]   ;;  %v112_v53 = vld [vmem:[%s1247_s2 + $0x8] sm:$0xff]  ;;  %v114_v54 = vld [vmem:[%s1247_s2 + $0x18] sm:$0xff] }
  0x12   :  { %882 = vmatprep.subr.bf16.mxu1 %v966_v18  ;;  %v1002_v49 = vld [vmem:[%s1246_s0 + $0x7c] ss:$20 sps:$4 sm:$0xff]   ;;  %v111_v51 = vld [vmem:[%s1247_s2] sm:$0xff]  ;;  %v1006_v55 = vld [vmem:[%s1246_s0 + $0x78] ss:$20 sps:$4 sm:$0xff]  }
  0x13   :  { %v113_v52 = vld [vmem:[%s1247_s2 + $0x10] sm:$0xff]  ;;  %121 = vperm.xlu0 %947, %v111_v51   ;;  %v115_v58 = vld [vmem:[%s1247_s2 + $0x20] sm:$0xff]  ;;  %v116_v60 = vld [vmem:[%s1247_s2 + $0x28] sm:$0xff] }
  0x14   :  { %843 = vmatpush3.bf16.msra.mxu0 %v967_v19  ;;  %131 = vperm.xlu1 %948, %v113_v52   ;;  %v1007_v56 = vld [vmem:[%s1246_s0 + $0x80] ss:$20 sps:$4 sm:$0xff]   ;;  %v1009_v57 = vld [vmem:[%s1246_s0 + $0x10] ss:$20 sps:$4 sm:$0xff]   ;;  %v118_v62 = vld [vmem:[%s1247_s2 + $0x38] sm:$0xff] }
  0x15   :  { %883 = vmatpush3.bf16.msra.mxu1 %v968_v20  ;;  %844 = vmatprep.subr.bf16.mxu0 %v969_v21  ;;  %v1010_v59 = vld [vmem:[%s1246_s0 + $0x60] ss:$20 sps:$4 sm:$0xff]   ;;  %v1011_v63 = vld [vmem:[%s1246_s0 + $0x38] ss:$20 sps:$4 sm:$0xff]   ;;  %v1012_v0 = vld [vmem:[%s1246_s0 + $0x88] ss:$20 sps:$4 sm:$0xff]  }
  0x16   :  { %884 = vmatprep.subr.bf16.mxu1 %v970_v22  ;;  %v117_v61 = vld [vmem:[%s1247_s2 + $0x30] sm:$0xff] }
  0x17   :  { %126 = vperm.xlu0 %947, %v112_v53  }
  0x18   :  { %845 = vmatpush3.bf16.msra.mxu0 %v971_v23  ;;  %136 = vperm.xlu1 %948, %v114_v54  }
  0x19   :  { %885 = vmatpush3.bf16.msra.mxu1 %v972_v24  ;;  %846 = vmatprep.subr.bf16.mxu0 %v973_v25 }
  0x1a   :  { %886 = vmatprep.subr.bf16.mxu1 %v974_v26 }
  0x1b   :  { %141 = vperm.xlu0 %947, %v115_v58  }
  0x1c   :  { %847 = vmatpush3.bf16.msra.mxu0 %v975_v27  ;;  %146 = vperm.xlu1 %948, %v116_v60  }
  0x1d   :  { %887 = vmatpush3.bf16.msra.mxu1 %v976_v28  ;;  %848 = vmatprep.subr.bf16.mxu0 %v977_v29 }
  0x1e   :  { %888 = vmatprep.subr.bf16.mxu1 %v978_v30 }
  0x1f   :  { %151 = vperm.xlu0 %947, %v117_v61  }
  0x20   :  { %849 = vmatpush3.bf16.msra.mxu0 %v979_v31  ;;  %156 = vperm.xlu1 %948, %v118_v62  }
  0x21   :  { %889 = vmatpush3.bf16.msra.mxu1 %v980_v32  ;;  %922 = vmatprep.subr.bf16.mxu0 %v987_v37 }
  0x22   :  { %938 = vmatprep.subr.bf16.mxu1 %v987_v37 }
  0x23   :  { %521 = vmatmul.mubr.bf16.vlgmr.msra.gmra.mrb[0].mxu0 %v981_v33 }
  0x24   :  { %586 = vmatmul.mubr.bf16.vlgmr.msra.gmra.mrb[0].mxu1 %v984_v35  ;;  %923 = vmatpush3.bf16.msra.mxu0 %v987_v37 }
  0x25   :  { %942 = vmatpush3.bf16.msra.mxu1 %v987_v37  ;;  %528 = vmatprep.mubr.bf16.mxu0 %v988_v38 }
  0x26   :  { %593 = vmatprep.mubr.bf16.mxu1 %v990_v39  ;;  %924 = vmatprep.subr.bf16.mxu0 %v994_v40 }
  0x27   :  { %939 = vmatprep.subr.bf16.mxu1 %v994_v40 }
  0x28   :  { %925 = vmatpush3.bf16.msra.mxu0 %v994_v40 }
  0x29   :  { %943 = vmatpush3.bf16.msra.mxu1 %v994_v40  ;;  %926 = vmatprep.subr.bf16.mxu0 %v1001_v45 }
  0x2a   :  { %940 = vmatprep.subr.bf16.mxu1 %v1001_v45 }
  0x2b   :  { %529 = vmatmul.mubr.bf16.gmra.mrb[4].mxu0 %v992_v41 }
  0x2c   :  { %594 = vmatmul.mubr.bf16.gmra.mrb[4].mxu1 %v993_v42  ;;  %536 = vmatprep.mubr.bf16.mxu0 %v995_v43 }
  0x2d   :  { %601 = vmatprep.mubr.bf16.mxu1 %v997_v44  ;;  %927 = vmatpush3.bf16.msra.mxu0 %v1001_v45 }
  0x2e   :  { %944 = vmatpush3.bf16.msra.mxu1 %v1001_v45  ;;  %928 = vmatprep.subr.bf16.mxu0 %v1008_v46 }
  0x2f   :  { %941 = vmatprep.subr.bf16.mxu1 %v1008_v46 }
  0x31   :  { %929 = vmatpush3.bf16.msra.mxu0 %v1008_v46 }
  0x32   :  { %945 = vmatpush3.bf16.msra.mxu1 %v1008_v46 }
  0x33   :  { %537 = vmatmul.mubr.bf16.gmra.mrb[8].mxu0 %v999_v47 }
  0x34   :  { %602 = vmatmul.mubr.bf16.gmra.mrb[8].mxu1 %v1000_v48  ;;  %544 = vmatprep.mubr.bf16.mxu0 %v1002_v49 }
  0x35   :  { %609 = vmatprep.mubr.bf16.mxu1 %v1004_v50 }
  0x3b   :  { %545 = vmatmul.mubr.bf16.gmra.mrb[12].mxu0 %v1006_v55 }
  0x3c   :  { %610 = vmatmul.mubr.bf16.gmra.mrb[12].mxu1 %v1007_v56  ;;  %930 = vmatprep.mubr.msk.bf16.mxu0 %vm475_vm0, %v1009_v57 }
  0x3d   :  { %934 = vmatprep.mubr.msk.bf16.mxu1 %vm475_vm0, %v1010_v59 }
  0x43   :  { %931 = vmatmul.mubr.msk.bf16.vlgmr.msra.gmra.mrb[16].mxu0 %vm475_vm0, %v1011_v63 }
  0x44   :  { %935 = vmatmul.mubr.msk.bf16.vlgmr.msra.gmra.mrb[16].mxu1 %vm475_vm0, %v1012_v0 }
  0x92   :  { %v122_v1 = vpop.permute.xlu0 %121 }
  0x93   :  { %v132_v18 = vpop.permute.xlu1 %131 }
  0x96   :  { %v127_v3 = vpop.permute.xlu0 %126 }
  0x97   :  { %v137_v33 = vpop.permute.xlu1 %136 }
  0x9a   :  { %v142_v36 = vpop.permute.xlu0 %141 }
  0x9b   :  { %v147_v50 = vpop.permute.xlu1 %146 }
  0x9e   :  { %v152_v54 = vpop.permute.xlu0 %151 }
  0xf6   :  { %v850_v2 = vpop.f32.mrb[0].mxu0 }
  0xf7   :  { %v890_v4 = vpop.f32.mrb[0].mxu1  ;;  %v851_v5 = vpop.f32.mrb[1].mxu0 }
  0xf8   :  { %v852_v6 = vadd.f32 %v851_v5, %v850_v2  ;;  %v891_v7 = vpop.f32.mrb[1].mxu1  ;;  %v853_v8 = vpop.f32.mrb[2].mxu0 }
  0xf9   :  { %v892_v9 = vadd.f32 %v891_v7, %v890_v4  ;;  %v893_v10 = vpop.f32.mrb[2].mxu1  ;;  %v854_v11 = vpop.f32.mrb[3].mxu0 }
  0xfa   :  { %v523_v12 = vadd.f32 %v852_v6, %v122_v1  ;;  %v855_v13 = vadd.f32 %v854_v11, %v853_v8  ;;  %v894_v14 = vpop.f32.mrb[3].mxu1  ;;  %v157_v4 = vpop.permute.xlu1 %156 }
  0xfb   :  { %v895_v15 = vadd.f32 %v894_v14, %v893_v10 }
  0xfc   :  { %v526_v16 = vadd.f32 %v855_v13, %v127_v3  ;;  %v588_v17 = vadd.f32 %v892_v9, %v523_v12 }
  0xfe   :  { %v856_v19 = vpop.f32.mrb[4].mxu0  ;;  %v1230_v20 = vadd.f32 %v895_v15, %v526_v16 }
  0xff   :  { %v896_v21 = vpop.f32.mrb[4].mxu1  ;;  %v857_v22 = vpop.f32.mrb[5].mxu0 }
 0x100   :  { %v858_v23 = vadd.f32 %v857_v22, %v856_v19  ;;  %v897_v24 = vpop.f32.mrb[5].mxu1  ;;  %v859_v25 = vpop.f32.mrb[6].mxu0 }
 0x101   :  { %v898_v26 = vadd.f32 %v897_v24, %v896_v21  ;;  %v899_v27 = vpop.f32.mrb[6].mxu1  ;;  %v860_v28 = vpop.f32.mrb[7].mxu0 }
 0x102   :  { %v531_v29 = vadd.f32 %v858_v23, %v132_v18  ;;  %v861_v30 = vadd.f32 %v860_v28, %v859_v25  ;;  %v900_v31 = vpop.f32.mrb[7].mxu1 }
 0x103   :  { %v901_v32 = vadd.f32 %v900_v31, %v899_v27 }
 0x104   :  { %v534_v34 = vadd.f32 %v861_v30, %v137_v33  ;;  %v596_v35 = vadd.f32 %v898_v26, %v531_v29 }
 0x106   :  { %v862_v37 = vpop.f32.mrb[8].mxu0  ;;  %v599_v38 = vadd.f32 %v901_v32, %v534_v34 }
 0x107   :  { %v902_v39 = vpop.f32.mrb[8].mxu1  ;;  %v863_v40 = vpop.f32.mrb[9].mxu0 }
 0x108   :  { %v864_v41 = vadd.f32 %v863_v40, %v862_v37  ;;  %v903_v42 = vpop.f32.mrb[9].mxu1  ;;  %v865_v43 = vpop.f32.mrb[10].mxu0 }
 0x109   :  { %v904_v44 = vadd.f32 %v903_v42, %v902_v39  ;;  %v905_v45 = vpop.f32.mrb[10].mxu1  ;;  %v866_v46 = vpop.f32.mrb[11].mxu0 }
 0x10a   :  { %v539_v47 = vadd.f32 %v864_v41, %v142_v36  ;;  %v867_v48 = vadd.f32 %v866_v46, %v865_v43  ;;  %v906_v49 = vpop.f32.mrb[11].mxu1 }
 0x10b   :  { %v907_v51 = vadd.f32 %v906_v49, %v905_v45 }
 0x10c   :  { %v542_v52 = vadd.f32 %v867_v48, %v147_v50  ;;  %v604_v53 = vadd.f32 %v904_v44, %v539_v47 }
 0x10e   :  { %v868_v55 = vpop.f32.mrb[12].mxu0  ;;  %v607_v56 = vadd.f32 %v907_v51, %v542_v52 }
 0x10f   :  { %v908_v57 = vpop.f32.mrb[12].mxu1  ;;  %v869_v58 = vpop.f32.mrb[13].mxu0 }
 0x110   :  { %v870_v59 = vadd.f32 %v869_v58, %v868_v55  ;;  %v909_v60 = vpop.f32.mrb[13].mxu1  ;;  %v871_v61 = vpop.f32.mrb[14].mxu0 }
 0x111   :  { %v910_v62 = vadd.f32 %v909_v60, %v908_v57  ;;  %v911_v63 = vpop.f32.mrb[14].mxu1  ;;  %v872_v0 = vpop.f32.mrb[15].mxu0 }
 0x112   :  { %v547_v1 = vadd.f32 %v870_v59, %v152_v54  ;;  %v873_v2 = vadd.f32 %v872_v0, %v871_v61  ;;  %v912_v3 = vpop.f32.mrb[15].mxu1 }
 0x113   :  { %v913_v5 = vadd.f32 %v912_v3, %v911_v63 }
 0x114   :  { %v550_v6 = vadd.f32 %v873_v2, %v157_v4  ;;  %v612_v7 = vadd.f32 %v910_v62, %v547_v1 }
 0x116   :  { %v932_v8 = vpop.f32.mrb[16].mxu0  ;;  %v615_v9 = vadd.f32 %v913_v5, %v550_v6 }
 0x117   :  { %v661_v10 = vadd.f32 %v932_v8, %v596_v35  ;;  %v936_v11 = vpop.f32.mrb[16].mxu1  ;;  %v652_v12 = vpop.f32.mrb[17].mxu0 }
 0x118   :  { %v677_v13 = vadd.f32 %v936_v11, %v612_v7  ;;  %v653_v14 = vadd.f32 %v652_v12, %v588_v17  ;;  %v668_v15 = vpop.f32.mrb[17].mxu1  ;;  %v933_v16 = vpop.f32.mrb[18].mxu0 }
 0x119   :  { %v669_v18 = vadd.f32 %v668_v15, %v604_v53  ;;  %v664_v19 = vadd.f32 %v933_v16, %v599_v38  ;;  %v937_v21 = vpop.f32.mrb[18].mxu1  ;;  %v655_v22 = vpop.f32.mrb[19].mxu0  ;;  %v685_v26 = vmax.f32 %v661_v10, 0.0 }
 0x11a   :  { %v680_v23 = vadd.f32 %v937_v21, %v615_v9  ;;  %v656_v24 = vadd.f32 %v655_v22, %v1230_v20  ;;  %v671_v25 = vpop.f32.mrb[19].mxu1  ;;  %v689_v29 = vmax.f32 %v677_v13, 0.0  ;;  %v683_v30 = vmax.f32 %v653_v14, 0.0 }
 0x11b   :  { %v686_v27 = vmax.f32 %v664_v19, 0.0  ;;  %v672_v28 = vadd.f32 %v671_v25, %v607_v56  ;;  %v687_v33 = vmax.f32 %v669_v18, 0.0 }
 0x11c   :  { %v690_v31 = vmax.f32 %v680_v23, 0.0  ;;  %v684_v32 = vmax.f32 %v656_v24, 0.0 }
 0x11d   :  { %v819_v34 = vpack.c.bf16 %v686_v27, %v685_v26  ;;  %v688_v17 = vmax.f32 %v672_v28, 0.0 }
 0x11e   :  { %v829_v35 = vpack.c.bf16 %v690_v31, %v689_v29  ;;  %v814_v36 = vpack.c.bf16 %v684_v32, %v683_v30 }
 0x11f   :  { %831 = vst [vmem:[%s1248_s3 + $0x8] sm:$0xff] %v819_v34   ;;  %v824_v37 = vpack.c.bf16 %v688_v17, %v687_v33 }
 0x120   :  { %833 = vst [vmem:[%s1248_s3 + $0x18] sm:$0xff] %v829_v35   ;;  %815 = vst [vmem:[%s1248_s3] sm:$0xff] %v814_v36  }
 0x121   :  { %832 = vst [vmem:[%s1248_s3 + $0x10] sm:$0xff] %v824_v37  }

// kernel: resnet20_forward.33
= control target key start
LH: loop header
LB: loop body
LE: loop exit
PB: predicated region body
PF: predicated region fallthrough
CT: control target
= control target key end

     0   :  { %v1059_v1 = vmov 0   ;;  %vm478_vm0 = vcmask 523264   ;;  %s1311_s1 = inlined_call_operand.vmem [shape: bf16[576,128], index: 1, kind: input, shape index: {}]   ;;  %s1312_s0 = inlined_call_operand.vmem [shape: bf16[64,576], index: 0, kind: input, shape index: {}]   ;;  %s1313_s2 = inlined_call_operand.vmem [shape: f32[64,1], index: 2, kind: input, shape index: {}]   ;;  %s1314_s3 = inlined_call_operand.vmem [shape: bf16[64,128], index: 3, kind: input, shape index: {}]   ;;  %s1315_s4 = inlined_call_operand.vmem [shape: bf16[64,128], index: 4, kind: output, shape index: {}]  }
   0x1   :  { %v995_v0 = vld [vmem:[%s1311_s1 + $0x40] sm:$0xff]   ;;  %993 = vset.pattern.permute.xlu0 %v1059_v1  ;;  %994 = vset.pattern.permute.xlu1 %v1059_v1  ;;  %v999_v5 = vld [vmem:[%s1311_s1 + $0x48] sm:$0xff]   ;;  %v1003_v9 = vld [vmem:[%s1311_s1 + $0x50] sm:$0xff]  }
   0x2   :  { %v996_v2 = vld [vmem:[%s1311_s1 + $0xc0] sm:$0xff]   ;;  %880 = vmatprep.subr.bf16.mxu0 %v995_v0  ;;  %v1000_v6 = vld [vmem:[%s1311_s1 + $0xc8] sm:$0xff]   ;;  %v1004_v10 = vld [vmem:[%s1311_s1 + $0xd0] sm:$0xff]  }
   0x3   :  { %v997_v3 = vld [vmem:[%s1311_s1] sm:$0xff]   ;;  %920 = vmatprep.subr.bf16.mxu1 %v996_v2  ;;  %v1001_v7 = vld [vmem:[%s1311_s1 + $0x8] sm:$0xff]   ;;  %v1005_v11 = vld [vmem:[%s1311_s1 + $0x10] sm:$0xff]  }
   0x4   :  { %v998_v4 = vld [vmem:[%s1311_s1 + $0x80] sm:$0xff]   ;;  %881 = vmatpush3.bf16.msra.mxu0 %v997_v3  ;;  %v1002_v8 = vld [vmem:[%s1311_s1 + $0x88] sm:$0xff]   ;;  %v1006_v12 = vld [vmem:[%s1311_s1 + $0x90] sm:$0xff]  }
   0x5   :  { %921 = vmatpush3.bf16.msra.mxu1 %v998_v4  ;;  %882 = vmatprep.subr.bf16.mxu0 %v999_v5  ;;  %v1007_v13 = vld [vmem:[%s1311_s1 + $0x58] sm:$0xff]   ;;  %v1011_v17 = vld [vmem:[%s1311_s1 + $0x60] sm:$0xff]   ;;  %v1015_v21 = vld [vmem:[%s1311_s1 + $0x68] sm:$0xff]  }
   0x6   :  { %922 = vmatprep.subr.bf16.mxu1 %v1000_v6  ;;  %v1008_v14 = vld [vmem:[%s1311_s1 + $0xd8] sm:$0xff]   ;;  %v1012_v18 = vld [vmem:[%s1311_s1 + $0xe0] sm:$0xff]   ;;  %v1016_v22 = vld [vmem:[%s1311_s1 + $0xe8] sm:$0xff]  }
   0x7   :  { %v1009_v15 = vld [vmem:[%s1311_s1 + $0x18] sm:$0xff]   ;;  %v1013_v19 = vld [vmem:[%s1311_s1 + $0x20] sm:$0xff]   ;;  %v1017_v23 = vld [vmem:[%s1311_s1 + $0x28] sm:$0xff]  }
   0x8   :  { %883 = vmatpush3.bf16.msra.mxu0 %v1001_v7  ;;  %v1010_v16 = vld [vmem:[%s1311_s1 + $0x98] sm:$0xff]   ;;  %v1014_v20 = vld [vmem:[%s1311_s1 + $0xa0] sm:$0xff]   ;;  %v1018_v24 = vld [vmem:[%s1311_s1 + $0xa8] sm:$0xff]  }
   0x9   :  { %923 = vmatpush3.bf16.msra.mxu1 %v1002_v8  ;;  %884 = vmatprep.subr.bf16.mxu0 %v1003_v9  ;;  %v1019_v25 = vld [vmem:[%s1311_s1 + $0x70] sm:$0xff]   ;;  %v1023_v29 = vld [vmem:[%s1311_s1 + $0x78] sm:$0xff]   ;;  %v1032_v36 = vld [vmem:[%s1312_s0 + $0xc] ss:$20 sps:$4 sm:$0xff]  }
   0xa   :  { %924 = vmatprep.subr.bf16.mxu1 %v1004_v10  ;;  %v1020_v26 = vld [vmem:[%s1311_s1 + $0xf0] sm:$0xff]   ;;  %v1024_v30 = vld [vmem:[%s1311_s1 + $0xf8] sm:$0xff]   ;;  %v1033_v37 = vld [vmem:[%s1311_s1 + $0x100] sm:$0xff]   ;;  %588 = vmatprep.mubr.bf16.mxu1 %v1032_v36 }
   0xb   :  { %v1021_v27 = vld [vmem:[%s1311_s1 + $0x30] sm:$0xff]   ;;  %v1025_v31 = vld [vmem:[%s1311_s1 + $0x38] sm:$0xff]   ;;  %v1034_v38 = vld [vmem:[%s1312_s0 + $0x2c] ss:$20 sps:$4 sm:$0xff]  }
   0xc   :  { %885 = vmatpush3.bf16.msra.mxu0 %v1005_v11  ;;  %v1022_v28 = vld [vmem:[%s1311_s1 + $0xb0] sm:$0xff]   ;;  %v1026_v32 = vld [vmem:[%s1311_s1 + $0xb8] sm:$0xff]   ;;  %v1040_v40 = vld [vmem:[%s1311_s1 + $0x108] sm:$0xff]  }
   0xd   :  { %925 = vmatpush3.bf16.msra.mxu1 %v1006_v12  ;;  %886 = vmatprep.subr.bf16.mxu0 %v1007_v13  ;;  %v1027_v33 = vld [vmem:[%s1312_s0] ss:$20 sps:$4 sm:$0xff]   ;;  %v1029_v34 = vld [vmem:[%s1312_s0 + $0x4] ss:$20 sps:$4 sm:$0xff]   ;;  %v1030_v35 = vld [vmem:[%s1312_s0 + $0x8] ss:$20 sps:$4 sm:$0xff]  }
   0xe   :  { %926 = vmatprep.subr.bf16.mxu1 %v1008_v14  ;;  %523 = vmatprep.mubr.bf16.mxu0 %v1029_v34  ;;  %v1036_v39 = vld [vmem:[%s1312_s0 + $0x34] ss:$20 sps:$4 sm:$0xff]   ;;  %v1039_v42 = vld [vmem:[%s1312_s0 + $0x30] ss:$20 sps:$4 sm:$0xff]   ;;  %v1054_v46 = vld [vmem:[%s1311_s1 + $0x118] sm:$0xff]  }
   0xf   :  { %v1038_v41 = vld [vmem:[%s1312_s0 + $0x28] ss:$20 sps:$4 sm:$0xff]   ;;  %v1047_v45 = vld [vmem:[%s1311_s1 + $0x110] sm:$0xff]   ;;  %v1046_v48 = vld [vmem:[%s1312_s0 + $0x58] ss:$20 sps:$4 sm:$0xff]  }
  0x10   :  { %887 = vmatpush3.bf16.msra.mxu0 %v1009_v15  ;;  %v1041_v43 = vld [vmem:[%s1312_s0 + $0x54] ss:$20 sps:$4 sm:$0xff]   ;;  %v1043_v44 = vld [vmem:[%s1312_s0 + $0x5c] ss:$20 sps:$4 sm:$0xff]   ;;  %v1050_v50 = vld [vmem:[%s1312_s0 + $0x84] ss:$20 sps:$4 sm:$0xff]  }
  0x11   :  { %927 = vmatpush3.bf16.msra.mxu1 %v1010_v16  ;;  %888 = vmatprep.subr.bf16.mxu0 %v1011_v17  ;;  %v1045_v47 = vld [vmem:[%s1312_s0 + $0x50] ss:$20 sps:$4 sm:$0xff]   ;;  %v115_v53 = vld [vmem:[%s1313_s2 + $0x8] sm:$0xff]  ;;  %v117_v54 = vld [vmem:[%s1313_s2 + $0x18] sm:$0xff] }
  0x12   :  { %928 = vmatprep.subr.bf16.mxu1 %v1012_v18  ;;  %v1048_v49 = vld [vmem:[%s1312_s0 + $0x7c] ss:$20 sps:$4 sm:$0xff]   ;;  %v114_v51 = vld [vmem:[%s1313_s2] sm:$0xff]  ;;  %v1052_v55 = vld [vmem:[%s1312_s0 + $0x78] ss:$20 sps:$4 sm:$0xff]  }
  0x13   :  { %v116_v52 = vld [vmem:[%s1313_s2 + $0x10] sm:$0xff]  ;;  %124 = vperm.xlu0 %993, %v114_v51   ;;  %v118_v58 = vld [vmem:[%s1313_s2 + $0x20] sm:$0xff]  ;;  %v119_v60 = vld [vmem:[%s1313_s2 + $0x28] sm:$0xff] }
  0x14   :  { %889 = vmatpush3.bf16.msra.mxu0 %v1013_v19  ;;  %134 = vperm.xlu1 %994, %v116_v52   ;;  %v1053_v56 = vld [vmem:[%s1312_s0 + $0x80] ss:$20 sps:$4 sm:$0xff]   ;;  %v1055_v57 = vld [vmem:[%s1312_s0 + $0x10] ss:$20 sps:$4 sm:$0xff]   ;;  %v121_v62 = vld [vmem:[%s1313_s2 + $0x38] sm:$0xff] }
  0x15   :  { %929 = vmatpush3.bf16.msra.mxu1 %v1014_v20  ;;  %890 = vmatprep.subr.bf16.mxu0 %v1015_v21  ;;  %v1056_v59 = vld [vmem:[%s1312_s0 + $0x60] ss:$20 sps:$4 sm:$0xff]   ;;  %v1057_v63 = vld [vmem:[%s1312_s0 + $0x38] ss:$20 sps:$4 sm:$0xff]   ;;  %v1058_v0 = vld [vmem:[%s1312_s0 + $0x88] ss:$20 sps:$4 sm:$0xff]  }
  0x16   :  { %930 = vmatprep.subr.bf16.mxu1 %v1016_v22  ;;  %v120_v61 = vld [vmem:[%s1313_s2 + $0x30] sm:$0xff] }
  0x17   :  { %129 = vperm.xlu0 %993, %v115_v53  }
  0x18   :  { %891 = vmatpush3.bf16.msra.mxu0 %v1017_v23  ;;  %139 = vperm.xlu1 %994, %v117_v54  }
  0x19   :  { %931 = vmatpush3.bf16.msra.mxu1 %v1018_v24  ;;  %892 = vmatprep.subr.bf16.mxu0 %v1019_v25 }
  0x1a   :  { %932 = vmatprep.subr.bf16.mxu1 %v1020_v26 }
  0x1b   :  { %144 = vperm.xlu0 %993, %v118_v58  }
  0x1c   :  { %893 = vmatpush3.bf16.msra.mxu0 %v1021_v27  ;;  %149 = vperm.xlu1 %994, %v119_v60  }
  0x1d   :  { %933 = vmatpush3.bf16.msra.mxu1 %v1022_v28  ;;  %894 = vmatprep.subr.bf16.mxu0 %v1023_v29 }
  0x1e   :  { %934 = vmatprep.subr.bf16.mxu1 %v1024_v30 }
  0x1f   :  { %154 = vperm.xlu0 %993, %v120_v61  }
  0x20   :  { %895 = vmatpush3.bf16.msra.mxu0 %v1025_v31  ;;  %159 = vperm.xlu1 %994, %v121_v62  }
  0x21   :  { %935 = vmatpush3.bf16.msra.mxu1 %v1026_v32  ;;  %968 = vmatprep.subr.bf16.mxu0 %v1033_v37 }
  0x22   :  { %984 = vmatprep.subr.bf16.mxu1 %v1033_v37 }
  0x23   :  { %524 = vmatmul.mubr.bf16.vlgmr.msra.gmra.mrb[0].mxu0 %v1027_v33 }
  0x24   :  { %589 = vmatmul.mubr.bf16.vlgmr.msra.gmra.mrb[0].mxu1 %v1030_v35  ;;  %969 = vmatpush3.bf16.msra.mxu0 %v1033_v37 }
  0x25   :  { %988 = vmatpush3.bf16.msra.mxu1 %v1033_v37  ;;  %531 = vmatprep.mubr.bf16.mxu0 %v1034_v38 }
  0x26   :  { %596 = vmatprep.mubr.bf16.mxu1 %v1036_v39  ;;  %970 = vmatprep.subr.bf16.mxu0 %v1040_v40 }
  0x27   :  { %985 = vmatprep.subr.bf16.mxu1 %v1040_v40 }
  0x28   :  { %971 = vmatpush3.bf16.msra.mxu0 %v1040_v40 }
  0x29   :  { %989 = vmatpush3.bf16.msra.mxu1 %v1040_v40  ;;  %972 = vmatprep.subr.bf16.mxu0 %v1047_v45 }
  0x2a   :  { %986 = vmatprep.subr.bf16.mxu1 %v1047_v45 }
  0x2b   :  { %532 = vmatmul.mubr.bf16.gmra.mrb[4].mxu0 %v1038_v41 }
  0x2c   :  { %597 = vmatmul.mubr.bf16.gmra.mrb[4].mxu1 %v1039_v42  ;;  %539 = vmatprep.mubr.bf16.mxu0 %v1041_v43 }
  0x2d   :  { %604 = vmatprep.mubr.bf16.mxu1 %v1043_v44  ;;  %973 = vmatpush3.bf16.msra.mxu0 %v1047_v45 }
  0x2e   :  { %990 = vmatpush3.bf16.msra.mxu1 %v1047_v45  ;;  %974 = vmatprep.subr.bf16.mxu0 %v1054_v46 }
  0x2f   :  { %987 = vmatprep.subr.bf16.mxu1 %v1054_v46 }
  0x31   :  { %975 = vmatpush3.bf16.msra.mxu0 %v1054_v46 }
  0x32   :  { %991 = vmatpush3.bf16.msra.mxu1 %v1054_v46 }
  0x33   :  { %540 = vmatmul.mubr.bf16.gmra.mrb[8].mxu0 %v1045_v47 }
  0x34   :  { %605 = vmatmul.mubr.bf16.gmra.mrb[8].mxu1 %v1046_v48  ;;  %547 = vmatprep.mubr.bf16.mxu0 %v1048_v49 }
  0x35   :  { %612 = vmatprep.mubr.bf16.mxu1 %v1050_v50 }
  0x3b   :  { %548 = vmatmul.mubr.bf16.gmra.mrb[12].mxu0 %v1052_v55 }
  0x3c   :  { %613 = vmatmul.mubr.bf16.gmra.mrb[12].mxu1 %v1053_v56  ;;  %976 = vmatprep.mubr.msk.bf16.mxu0 %vm478_vm0, %v1055_v57 }
  0x3d   :  { %980 = vmatprep.mubr.msk.bf16.mxu1 %vm478_vm0, %v1056_v59 }
  0x43   :  { %977 = vmatmul.mubr.msk.bf16.vlgmr.msra.gmra.mrb[16].mxu0 %vm478_vm0, %v1057_v63 }
  0x44   :  { %981 = vmatmul.mubr.msk.bf16.vlgmr.msra.gmra.mrb[16].mxu1 %vm478_vm0, %v1058_v0 }
  0x92   :  { %v125_v1 = vpop.permute.xlu0 %124 }
  0x93   :  { %v135_v18 = vpop.permute.xlu1 %134 }
  0x96   :  { %v130_v3 = vpop.permute.xlu0 %129 }
  0x97   :  { %v140_v33 = vpop.permute.xlu1 %139 }
  0x9a   :  { %v145_v36 = vpop.permute.xlu0 %144 }
  0x9b   :  { %v150_v50 = vpop.permute.xlu1 %149 }
  0x9e   :  { %v155_v54 = vpop.permute.xlu0 %154 }
  0xf6   :  { %v896_v2 = vpop.f32.mrb[0].mxu0 }
  0xf7   :  { %v936_v4 = vpop.f32.mrb[0].mxu1  ;;  %v897_v5 = vpop.f32.mrb[1].mxu0 }
  0xf8   :  { %v898_v6 = vadd.f32 %v897_v5, %v896_v2  ;;  %v937_v7 = vpop.f32.mrb[1].mxu1  ;;  %v899_v8 = vpop.f32.mrb[2].mxu0 }
  0xf9   :  { %v938_v9 = vadd.f32 %v937_v7, %v936_v4  ;;  %v939_v10 = vpop.f32.mrb[2].mxu1  ;;  %v900_v11 = vpop.f32.mrb[3].mxu0  ;;  %v874_v4 = vld [vmem:[%s1314_s3 + $0x8] sm:$0xff]   ;;  %v876_v7 = vld [vmem:[%s1314_s3 + $0x18] sm:$0xff]  }
  0xfa   :  { %v526_v12 = vadd.f32 %v898_v6, %v125_v1  ;;  %v901_v13 = vadd.f32 %v900_v11, %v899_v8  ;;  %v940_v14 = vpop.f32.mrb[3].mxu1  ;;  %v160_v5 = vpop.permute.xlu1 %159  ;;  %v839_v8 = vld [vmem:[%s1314_s3] sm:$0xff]   ;;  %v875_v11 = vld [vmem:[%s1314_s3 + $0x10] sm:$0xff]  }
  0xfb   :  { %v941_v15 = vadd.f32 %v940_v14, %v939_v10  ;;  %v852_v14 = vunpack.c.l.bf16 %v876_v7 }
  0xfc   :  { %v529_v16 = vadd.f32 %v901_v13, %v130_v3  ;;  %v1281_v17 = vadd.f32 %v938_v9, %v526_v12  ;;  %v844_v12 = vunpack.c.l.bf16 %v874_v4 }
  0xfe   :  { %v902_v19 = vpop.f32.mrb[4].mxu0  ;;  %v1283_v20 = vadd.f32 %v941_v15, %v529_v16  ;;  %v840_v15 = vunpack.c.l.bf16 %v839_v8 }
  0xff   :  { %v942_v21 = vpop.f32.mrb[4].mxu1  ;;  %v903_v22 = vpop.f32.mrb[5].mxu0 }
 0x100   :  { %v904_v23 = vadd.f32 %v903_v22, %v902_v19  ;;  %v943_v24 = vpop.f32.mrb[5].mxu1  ;;  %v905_v25 = vpop.f32.mrb[6].mxu0  ;;  %v848_v22 = vunpack.c.l.bf16 %v875_v11 }
 0x101   :  { %v944_v26 = vadd.f32 %v943_v24, %v942_v21  ;;  %v945_v27 = vpop.f32.mrb[6].mxu1  ;;  %v906_v28 = vpop.f32.mrb[7].mxu0 }
 0x102   :  { %v534_v29 = vadd.f32 %v904_v23, %v135_v18  ;;  %v907_v30 = vadd.f32 %v906_v28, %v905_v25  ;;  %v946_v31 = vpop.f32.mrb[7].mxu1  ;;  %v845_v23 = vunpack.c.h.bf16 %v874_v4  ;;  %v853_v28 = vunpack.c.h.bf16 %v876_v7 }
 0x103   :  { %v947_v32 = vadd.f32 %v946_v31, %v945_v27 }
 0x104   :  { %v537_v34 = vadd.f32 %v907_v30, %v140_v33  ;;  %v599_v35 = vadd.f32 %v944_v26, %v534_v29  ;;  %v841_v29 = vunpack.c.h.bf16 %v839_v8 }
 0x106   :  { %v908_v37 = vpop.f32.mrb[8].mxu0  ;;  %v602_v38 = vadd.f32 %v947_v32, %v537_v34 }
 0x107   :  { %v948_v39 = vpop.f32.mrb[8].mxu1  ;;  %v909_v40 = vpop.f32.mrb[9].mxu0 }
 0x108   :  { %v910_v41 = vadd.f32 %v909_v40, %v908_v37  ;;  %v949_v42 = vpop.f32.mrb[9].mxu1  ;;  %v911_v43 = vpop.f32.mrb[10].mxu0 }
 0x109   :  { %v950_v44 = vadd.f32 %v949_v42, %v948_v39  ;;  %v951_v45 = vpop.f32.mrb[10].mxu1  ;;  %v912_v46 = vpop.f32.mrb[11].mxu0 }
 0x10a   :  { %v542_v47 = vadd.f32 %v910_v41, %v145_v36  ;;  %v913_v48 = vadd.f32 %v912_v46, %v911_v43  ;;  %v952_v49 = vpop.f32.mrb[11].mxu1  ;;  %v849_v36 = vunpack.c.h.bf16 %v875_v11 }
 0x10b   :  { %v953_v51 = vadd.f32 %v952_v49, %v951_v45 }
 0x10c   :  { %v545_v52 = vadd.f32 %v913_v48, %v150_v50  ;;  %v607_v53 = vadd.f32 %v950_v44, %v542_v47 }
 0x10e   :  { %v914_v55 = vpop.f32.mrb[12].mxu0  ;;  %v610_v56 = vadd.f32 %v953_v51, %v545_v52 }
 0x10f   :  { %v954_v57 = vpop.f32.mrb[12].mxu1  ;;  %v915_v58 = vpop.f32.mrb[13].mxu0 }
 0x110   :  { %v916_v59 = vadd.f32 %v915_v58, %v914_v55  ;;  %v955_v60 = vpop.f32.mrb[13].mxu1  ;;  %v917_v61 = vpop.f32.mrb[14].mxu0 }
 0x111   :  { %v956_v62 = vadd.f32 %v955_v60, %v954_v57  ;;  %v957_v63 = vpop.f32.mrb[14].mxu1  ;;  %v918_v0 = vpop.f32.mrb[15].mxu0 }
 0x112   :  { %v550_v1 = vadd.f32 %v916_v59, %v155_v54  ;;  %v919_v2 = vadd.f32 %v918_v0, %v917_v61  ;;  %v958_v3 = vpop.f32.mrb[15].mxu1 }
 0x113   :  { %v959_v6 = vadd.f32 %v958_v3, %v957_v63 }
 0x114   :  { %v553_v9 = vadd.f32 %v919_v2, %v160_v5  ;;  %v615_v10 = vadd.f32 %v956_v62, %v550_v1 }
 0x116   :  { %v978_v13 = vpop.f32.mrb[16].mxu0  ;;  %v618_v16 = vadd.f32 %v959_v6, %v553_v9 }
 0x117   :  { %v664_v18 = vadd.f32 %v978_v13, %v599_v35  ;;  %v982_v19 = vpop.f32.mrb[16].mxu1  ;;  %v655_v21 = vpop.f32.mrb[17].mxu0 }
 0x118   :  { %v680_v24 = vadd.f32 %v982_v19, %v615_v10  ;;  %v656_v25 = vadd.f32 %v655_v21, %v1281_v17  ;;  %v671_v26 = vpop.f32.mrb[17].mxu1  ;;  %v979_v27 = vpop.f32.mrb[18].mxu0 }
 0x119   :  { %v704_v30 = vadd.f32 %v844_v12, %v664_v18  ;;  %v672_v31 = vadd.f32 %v671_v26, %v607_v53  ;;  %v667_v32 = vadd.f32 %v979_v27, %v602_v38  ;;  %v983_v33 = vpop.f32.mrb[18].mxu1  ;;  %v658_v34 = vpop.f32.mrb[19].mxu0 }
 0x11a   :  { %v708_v37 = vadd.f32 %v852_v14, %v680_v24  ;;  %v702_v39 = vadd.f32 %v840_v15, %v656_v25  ;;  %v683_v35 = vadd.f32 %v983_v33, %v618_v16  ;;  %v659_v40 = vadd.f32 %v658_v34, %v1283_v20  ;;  %v674_v41 = vpop.f32.mrb[19].mxu1 }
 0x11b   :  { %v706_v42 = vadd.f32 %v848_v22, %v672_v31  ;;  %v705_v43 = vadd.f32 %v845_v23, %v667_v32  ;;  %v675_v44 = vadd.f32 %v674_v41, %v610_v56  ;;  %v712_v46 = vmax.f32 %v704_v30, 0.0 }
 0x11c   :  { %v709_v17 = vadd.f32 %v853_v28, %v683_v35  ;;  %v703_v45 = vadd.f32 %v841_v29, %v659_v40  ;;  %v716_v49 = vmax.f32 %v708_v37, 0.0  ;;  %v710_v50 = vmax.f32 %v702_v39, 0.0 }
 0x11d   :  { %v713_v47 = vmax.f32 %v705_v43, 0.0  ;;  %v707_v48 = vadd.f32 %v849_v36, %v675_v44  ;;  %v714_v52 = vmax.f32 %v706_v42, 0.0 }
 0x11e   :  { %v717_v38 = vmax.f32 %v709_v17, 0.0  ;;  %v711_v51 = vmax.f32 %v703_v45, 0.0 }
 0x11f   :  { %v862_v53 = vpack.c.bf16 %v713_v47, %v712_v46  ;;  %v715_v54 = vmax.f32 %v707_v48, 0.0 }
 0x120   :  { %v872_v55 = vpack.c.bf16 %v717_v38, %v716_v49  ;;  %v857_v57 = vpack.c.bf16 %v711_v51, %v710_v50 }
 0x121   :  { %877 = vst [vmem:[%s1315_s4 + $0x8] sm:$0xff] %v862_v53   ;;  %v867_v20 = vpack.c.bf16 %v715_v54, %v714_v52 }
 0x122   :  { %879 = vst [vmem:[%s1315_s4 + $0x18] sm:$0xff] %v872_v55   ;;  %858 = vst [vmem:[%s1315_s4] sm:$0xff] %v857_v57  }
 0x123   :  { %878 = vst [vmem:[%s1315_s4 + $0x10] sm:$0xff] %v867_v20  }

</bundles_post_ra>
